<compile_context>
chip_gen: v7x
topology: tpu7x:2x2x1
jax: 0.10.0
libtpu: 0.0.40
codegen_flags: <defaults>
</compile_context>

<pallas_src>
import math
import types

import jax
import jax.numpy as jnp
from jax.experimental import pallas as pl
from jax.experimental.pallas import tpu as pltpu


# bf16 MXU inputs double MXU throughput on v6e/v7x and halve activation DMA
# bytes; accumulation stays f32 via preferred_element_type.  Set to
# jnp.float32 for bitwise-closer parity with the f32 PyTorch reference.
MXU_DTYPE = jnp.bfloat16

# Target patch rows (TRH * W) per grid step.  ~512 rows amortizes the ~0.35us
# per-step overhead while keeping per-step VMEM small; sweep per generation
# (can go 1024-2048 on v5e/v6e's 128 MiB VMEM, keep ~512 on v7x's 64 MiB).
_ROWS_TARGET = 512

_VMEM_LIMIT_BYTES = 48 * 1024 * 1024


def _pick_row_block(H, W):
    """Largest divisor TRH of H with TRH*W <= _ROWS_TARGET, keeping >= 2 row
    blocks whenever possible (pipelining + megacore sharding on v7x)."""
    best = 1
    for d in range(2, H + 1):
        if H % d == 0 and d * W <= _ROWS_TARGET and (H // d) >= 2:
            best = d
    return best


def _pad_img(x, KH, KW):
    """Cast to the MXU dtype and apply 'same' spatial zero padding."""
    ph, pw = KH // 2, KW // 2
    x = x.astype(MXU_DTYPE)
    if ph or pw:
        x = jnp.pad(x, ((0, 0), (ph, ph), (pw, pw), (0, 0)))
    return x


# ------------------------- generic fused-conv kernel ------------------------

def _conv_im2col(imgs, weight, bias, KH, KW, H, W, *, extras=(), epilogue,
                 out_channels, out_dtypes, trans_per_pix=0):
    """Fused 'same' conv over one or more NHWC images, im2col done in-kernel.

    imgs    : list of spatially padded MXU_DTYPE arrays (N, H+2ph, W+2pw, Ci).
              Each image is DMA'd to VMEM once per batch element and stays
              resident across the row grid.
    weight  : (KH*KW*sum(Ci), Cout_total); rows ordered
              [img0 taps (kh, kw, cin) | img1 taps | ...].
    bias    : (Cout_total,)
    extras  : per-pixel NHWC tensors, row-tiled with the output and handed to
              `epilogue(acc_f32, *extra_tiles)`; the epilogue returns one value
              (or a tuple) of shape (rows, out_channels[i]).
    """
    N = imgs[0].shape[0]
    ph, pw = KH // 2, KW // 2
    Hp, Wp = H + 2 * ph, W + 2 * pw
    cins = [int(im.shape[-1]) for im in imgs]
    KC = KH * KW * sum(cins)
    Cout_total = int(weight.shape[-1])

    TRH = _pick_row_block(H, W)
    nrb = H // TRH

    weight = weight.astype(MXU_DTYPE)
    bias = bias.reshape(1, Cout_total).astype(jnp.float32)

    n_img, n_ext, n_out = len(imgs), len(extras), len(out_channels)

    def kernel(*refs):
        img_refs = refs[:n_img]
        w_ref = refs[n_img]
        b_ref = refs[n_img + 1]
        ext_refs = refs[n_img + 2:n_img + 2 + n_ext]
        out_refs = refs[n_img + 2 + n_ext:n_img + 2 + n_ext + n_out]
        patch_ref = refs[-1]

        row0 = pl.multiple_of(pl.program_id(1) * TRH, TRH)

        # In-VMEM im2col: copy each (kh, kw) tap of each image into its column
        # band of the patch scratch (masked stores handle unaligned channels).
        col = 0
        for img_ref in img_refs:
            ci = img_ref.shape[-1]
            for kh in range(KH):
                for kw in range(KW):
                    patch_ref[:, :, col:col + ci] = img_ref[
                        pl.ds(row0 + kh, TRH), kw:kw + W, :]
                    col += ci

        # One MXU matmul over the full K*Cin contraction, f32 accumulation.
        patches = patch_ref[...].reshape(TRH * W, KC)
        acc = jnp.dot(patches, w_ref[...], preferred_element_type=jnp.float32)
        acc = acc + b_ref[...]

        ext_vals = [e[...].reshape(TRH * W, e.shape[-1]) for e in ext_refs]
        res = epilogue(acc, *ext_vals)
        if not isinstance(res, tuple):
            res = (res,)
        for o_ref, r in zip(out_refs, res):
            o_ref[...] = r.reshape(TRH, W, o_ref.shape[-1]).astype(o_ref.dtype)

    img_specs = [pl.BlockSpec((None, Hp, Wp, c), lambda n, r: (n, 0, 0, 0))
                 for c in cins]
    w_spec = pl.BlockSpec(weight.shape, lambda n, r: (0, 0))
    b_spec = pl.BlockSpec(bias.shape, lambda n, r: (0, 0))
    ext_specs = [pl.BlockSpec((None, TRH, W, int(e.shape[-1])),
                              lambda n, r: (n, r, 0, 0)) for e in extras]
    out_specs = tuple(pl.BlockSpec((None, TRH, W, c), lambda n, r: (n, r, 0, 0))
                      for c in out_channels)
    out_shape = tuple(jax.ShapeDtypeStruct((N, H, W, c), d)
                      for c, d in zip(out_channels, out_dtypes))

    bytes_accessed = (sum(im.size * im.dtype.itemsize for im in imgs)
                      + weight.size * weight.dtype.itemsize
                      + bias.size * 4
                      + sum(e.size * e.dtype.itemsize for e in extras)
                      + sum(N * H * W * c * jnp.dtype(d).itemsize
                            for c, d in zip(out_channels, out_dtypes)))
    cost = pl.CostEstimate(
        flops=int(2 * N * H * W * KC * Cout_total),
        transcendentals=int(trans_per_pix * N * H * W),
        bytes_accessed=int(bytes_accessed))

    res = pl.pallas_call(
        kernel,
        grid=(N, nrb),
        in_specs=img_specs + [w_spec, b_spec] + ext_specs,
        out_specs=out_specs,
        out_shape=out_shape,
        scratch_shapes=[pltpu.VMEM((TRH, W, KC), MXU_DTYPE)],
        compiler_params=pltpu.CompilerParams(
            dimension_semantics=("parallel", "parallel"),
            vmem_limit_bytes=_VMEM_LIMIT_BYTES),
        cost_estimate=cost,
    )(*imgs, weight, bias, *extras)
    return res if isinstance(res, tuple) else (res,)


def conv2d(x, w, b, act="none", scale=1.0, out_dtype=jnp.float32):
    """'same' conv2d matching nn.Conv2d(padding=k//2).  x: NHWC."""
    N, H, W, _ = x.shape
    KH, KW, Cin, Cout = w.shape

    def epi(acc):
        if act == "relu":
            acc = jnp.maximum(acc, 0.0)
        if scale != 1.0:
            acc = acc * scale
        return acc

    (out,) = _conv_im2col(
        [_pad_img(x, KH, KW)], w.reshape(KH * KW * Cin, Cout), b, KH, KW, H, W,
        epilogue=epi, out_channels=(Cout,), out_dtypes=(out_dtype,))
    return out


# ------------------------------- JAX glue ops -------------------------------

def pool2x(x):
    # F.avg_pool2d(x, 3, stride=2, padding=1), count_include_pad=True
    s = jax.lax.reduce_window(
        x, 0.0, jax.lax.add,
        window_dimensions=(1, 3, 3, 1),
        window_strides=(1, 2, 2, 1),
        padding=((0, 0), (1, 1), (1, 1), (0, 0)))
    return s / 9.0


def interp(x, dest):
    # F.interpolate(x, dest.shape[2:], mode='bilinear', align_corners=True)
    N, H, W, C = x.shape
    out_h, out_w = dest.shape[1], dest.shape[2]
    ys = jnp.linspace(0.0, H - 1.0, out_h)
    xs = jnp.linspace(0.0, W - 1.0, out_w)
    y0 = jnp.clip(jnp.floor(ys).astype(jnp.int32), 0, max(H - 2, 0))
    x0 = jnp.clip(jnp.floor(xs).astype(jnp.int32), 0, max(W - 2, 0))
    y1 = jnp.minimum(y0 + 1, H - 1)
    x1 = jnp.minimum(x0 + 1, W - 1)
    wy = (ys - y0.astype(jnp.float32))[None, :, None, None]
    wx = (xs - x0.astype(jnp.float32))[None, None, :, None]
    top = x[:, y0, :, :] * (1.0 - wy) + x[:, y1, :, :] * wy
    return top[:, :, x0, :] * (1.0 - wx) + top[:, :, x1, :] * wx


# ------------------------------- Model blocks -------------------------------

def motion_encoder(p, flow, corr):
    N, H, W, _ = flow.shape
    cor = conv2d(corr, p["convc1"]["w"], p["convc1"]["b"], act="relu",
                 out_dtype=MXU_DTYPE)
    cor = conv2d(cor, p["convc2"]["w"], p["convc2"]["b"], act="relu",
                 out_dtype=MXU_DTYPE)
    flo = conv2d(flow, p["convf1"]["w"], p["convf1"]["b"], act="relu",
                 out_dtype=MXU_DTYPE)
    flo = conv2d(flo, p["convf2"]["w"], p["convf2"]["b"], act="relu",
                 out_dtype=MXU_DTYPE)

    # Final conv reads [cor | flo]: pass the two images separately (shared
    # in-kernel im2col, no host-side concat); weight rows are permuted to
    # [cor-taps | flo-taps].
    wt = p["conv"]["w"]                               # (3, 3, 128, 126)
    KH, KW, _, Cout = wt.shape
    weight = jnp.concatenate(
        [wt[:, :, :64, :].reshape(KH * KW * 64, Cout),
         wt[:, :, 64:, :].reshape(KH * KW * 64, Cout)], axis=0)

    def epi(acc):
        return jnp.maximum(acc, 0.0)

    (out,) = _conv_im2col(
        [_pad_img(cor, KH, KW), _pad_img(flo, KH, KW)], weight, p["conv"]["b"],
        KH, KW, H, W, epilogue=epi, out_channels=(Cout,),
        out_dtypes=(MXU_DTYPE,))
    return jnp.concatenate([out, flow.astype(MXU_DTYPE)], axis=-1)


def conv_gru(p, h, cz, cr, cq, x_list):
    """ConvGRU as two fused pallas_calls; the padded x image is shared."""
    N, H, W, hidden = h.shape
    xs = [a.astype(MXU_DTYPE) for a in x_list]
    x = xs[0] if len(xs) == 1 else jnp.concatenate(xs, axis=-1)
    Cx = x.shape[-1]

    def split_rows(w):        # (3,3,hidden+Cx,Cout) -> rows [h-taps | x-taps]
        Cout = w.shape[-1]
        wh = w[:, :, :hidden, :].reshape(9 * hidden, Cout)
        wx = w[:, :, hidden:, :].reshape(9 * Cx, Cout)
        return wh, wx

    wzh, wzx = split_rows(p["convz"]["w"])
    wrh, wrx = split_rows(p["convr"]["w"])
    w_zr = jnp.concatenate([jnp.concatenate([wzh, wrh], axis=-1),
                            jnp.concatenate([wzx, wrx], axis=-1)], axis=0)
    b_zr = jnp.concatenate([p["convz"]["b"], p["convr"]["b"]])

    xp = _pad_img(x, 3, 3)          # shared between the zr and q convs
    hp = _pad_img(h, 3, 3)
    czcr = jnp.concatenate([cz, cr], axis=-1)

    def zr_epi(acc, czcr_rows, h_rows):
        g = acc + czcr_rows.astype(jnp.float32)
        # sigmoid = 1 / (1 + exp(-g)): exp on the EUP, approx reciprocal.
        sig = pl.reciprocal(1.0 + jnp.exp(-g), approx=True)
        z = sig[:, :hidden]
        rh = sig[:, hidden:] * h_rows.astype(jnp.float32)
        return z, rh

    z, rh = _conv_im2col(
        [hp, xp], w_zr, b_zr, 3, 3, H, W,
        extras=(czcr, h), epilogue=zr_epi,
        out_channels=(hidden, hidden), out_dtypes=(MXU_DTYPE, MXU_DTYPE),
        trans_per_pix=2 * hidden)

    wqh, wqx = split_rows(p["convq"]["w"])
    w_q = jnp.concatenate([wqh, wqx], axis=0)

    def q_epi(acc, cq_rows, z_rows, h_rows):
        q = jnp.tanh(acc + cq_rows.astype(jnp.float32))
        zf = z_rows.astype(jnp.float32)
        return (1.0 - zf) * h_rows.astype(jnp.float32) + zf * q

    (h_new,) = _conv_im2col(
        [_pad_img(rh, 3, 3), xp], w_q, p["convq"]["b"], 3, 3, H, W,
        extras=(cq, z, h), epilogue=q_epi,
        out_channels=(hidden,), out_dtypes=(jnp.float32,),
        trans_per_pix=hidden)
    return h_new


def flow_and_mask_heads(p_flow, p_mask, x):
    """flow_head.conv1 and mask.conv1 both read net[0]: one fused 512-wide conv."""
    N, H, W, _ = x.shape
    c_f = p_flow["conv1"]["w"].shape[-1]
    c_m = p_mask["conv1"]["w"].shape[-1]
    w1 = jnp.concatenate([p_flow["conv1"]["w"], p_mask["conv1"]["w"]], axis=-1)
    b1 = jnp.concatenate([p_flow["conv1"]["b"], p_mask["conv1"]["b"]])
    KH, KW, Cin, _ = w1.shape

    def epi1(acc):
        acc = jnp.maximum(acc, 0.0)
        return acc[:, :c_f], acc[:, c_f:]

    y_f, y_m = _conv_im2col(
        [_pad_img(x, KH, KW)], w1.reshape(KH * KW * Cin, c_f + c_m), b1,
        KH, KW, H, W, epilogue=epi1,
        out_channels=(c_f, c_m), out_dtypes=(MXU_DTYPE, MXU_DTYPE))

    delta_flow = conv2d(y_f, p_flow["conv2"]["w"], p_flow["conv2"]["b"])
    mask = conv2d(y_m, p_mask["conv2"]["w"], p_mask["conv2"]["b"], scale=0.25)
    return delta_flow, mask


def basic_multi_update_block(params, args, net, inp, corr=None, flow=None,
                             iter08=True, iter16=True, iter32=True,
                             update=True):
    net = list(net)
    if iter32:
        net[2] = conv_gru(params["gru32"], net[2], *inp[2], [pool2x(net[1])])
    if iter16:
        if args.n_gru_layers > 2:
            net[1] = conv_gru(params["gru16"], net[1], *inp[1],
                              [pool2x(net[0]), interp(net[2], net[1])])
        else:
            net[1] = conv_gru(params["gru16"], net[1], *inp[1],
                              [pool2x(net[0])])
    if iter08:
        motion_features = motion_encoder(params["encoder"], flow, corr)
        if args.n_gru_layers > 1:
            net[0] = conv_gru(params["gru08"], net[0], *inp[0],
                              [motion_features, interp(net[1], net[0])])
        else:
            net[0] = conv_gru(params["gru08"], net[0], *inp[0],
                              [motion_features])
    if not update:
        return net
    delta_flow, mask = flow_and_mask_heads(params["flow_head"], params["mask"],
                                           net[0])
    return net, mask, delta_flow


# ------------------------------- Param init --------------------------------

def init_params(key, args, hidden_dims):
    cor_planes = args.corr_levels * (2 * args.corr_radius + 1)
    keys = iter(jax.random.split(key, 64))

    def conv(kh, kw, cin, cout):
        k1, k2 = jax.random.split(next(keys))
        scale = 1.0 / math.sqrt(kh * kw * cin)
        w = jax.random.uniform(k1, (kh, kw, cin, cout), jnp.float32,
                               -scale, scale)
        b = jax.random.uniform(k2, (cout,), jnp.float32, -scale, scale)
        return {"w": w, "b": b}

    hd0, hd1, hd2 = hidden_dims
    enc_out = 128

    def gru(hidden, inp_dim):
        return {"convz": conv(3, 3, hidden + inp_dim, hidden),
                "convr": conv(3, 3, hidden + inp_dim, hidden),
                "convq": conv(3, 3, hidden + inp_dim, hidden)}

    factor = 2 ** args.n_downsample
    return {
        "encoder": {
            "convc1": conv(1, 1, cor_planes, 64),
            "convc2": conv(3, 3, 64, 64),
            "convf1": conv(7, 7, 2, 64),
            "convf2": conv(3, 3, 64, 64),
            "conv":   conv(3, 3, 128, 126),
        },
        "gru08": gru(hd2, enc_out + hd1 * (args.n_gru_layers > 1)),
        "gru16": gru(hd1, hd0 * (args.n_gru_layers == 3) + hd2),
        "gru32": gru(hd0, hd1),
        "flow_head": {"conv1": conv(3, 3, hd2, 256),
                      "conv2": conv(3, 3, 256, 2)},
        "mask": {"conv1": conv(3, 3, hd2, 256),
                 "conv2": conv(1, 1, 256, factor ** 2 * 9)},
    }


# ----------------------------------- main -----------------------------------

if __name__ == "__main__":
    args = types.SimpleNamespace(corr_levels=2, corr_radius=2,
                                 n_gru_layers=3, n_downsample=2)
    # Realistic RAFT-Stereo hidden widths: keeps GRU / head outputs lane-dense
    # (multiples of 128) so stores are unmasked and MXU columns stay busy.
    hidden_dims = [128, 128, 128]

    key = jax.random.PRNGKey(0)
    kp, kd = jax.random.split(key)
    params = init_params(kp, args, hidden_dims)

    N, H, W = 2, 32, 32          # 1/8-resolution spatial size (W%8==0 at all levels)
    hd0, hd1, hd2 = hidden_dims
    cor_planes = args.corr_levels * (2 * args.corr_radius + 1)

    dk = iter(jax.random.split(kd, 16))
    net = [
        jax.random.normal(next(dk), (N, H, W, hd2), jnp.float32),
        jax.random.normal(next(dk), (N, H // 2, W // 2, hd1), jnp.float32),
        jax.random.normal(next(dk), (N, H // 4, W // 4, hd0), jnp.float32),
    ]
    inp = [
        [jax.random.normal(next(dk), net[i].shape, jnp.float32)
         for _ in range(3)]
        for i in range(3)
    ]
    corr = jax.random.normal(next(dk), (N, H, W, cor_planes), jnp.float32)
    flow = jax.random.normal(next(dk), (N, H, W, 2), jnp.float32)

    out_net, mask, delta_flow = basic_multi_update_block(
        params, args, net, inp, corr=corr, flow=flow)
    jax.block_until_ready((out_net, mask, delta_flow))
    print("KERNEL_OK")
</pallas_src>

<mosaic_0001>
module attributes {stable_mosaic.version = 11 : i64} {
  func.func @kernel(%arg0: i32, %arg1: i32, %arg2: memref<1x10x10x128xbf16, #tpu.memory_space<vmem>>, %arg3: memref<1x10x10x128xbf16, #tpu.memory_space<vmem>>, %arg4: memref<2304x256xbf16, #tpu.memory_space<vmem>>, %arg5: memref<1x256xf32, #tpu.memory_space<vmem>>, %arg6: memref<1x4x8x256xf32, #tpu.memory_space<vmem>>, %arg7: memref<1x4x8x128xf32, #tpu.memory_space<vmem>>, %arg8: memref<1x4x8x128xbf16, #tpu.memory_space<vmem>>, %arg9: memref<1x4x8x128xbf16, #tpu.memory_space<vmem>>, %arg10: memref<4x8x2304xbf16, #tpu.memory_space<vmem>>) attributes {dimension_semantics = [#tpu.dimension_semantics<parallel>, #tpu.dimension_semantics<parallel>], iteration_bounds = array<i64: 2, 2>, scalar_prefetch = 0 : i64, scratch_operands = 1 : i64, tpu.core_type = #tpu.core_type<tc>, window_params = [{transform_indices = @transform_0, window_bounds = array<i64: 1, 10, 10, 128>}, {transform_indices = @transform_1, window_bounds = array<i64: 1, 10, 10, 128>}, {pipeline_mode = #tpu.pipeline_mode<synchronous>, transform_indices = @transform_2, window_bounds = array<i64: 2304, 256>}, {pipeline_mode = #tpu.pipeline_mode<synchronous>, transform_indices = @transform_3, window_bounds = array<i64: 1, 256>}, {transform_indices = @transform_4, window_bounds = array<i64: 1, 4, 8, 256>}, {transform_indices = @transform_5, window_bounds = array<i64: 1, 4, 8, 128>}, {transform_indices = @transform_6, window_bounds = array<i64: 1, 4, 8, 128>}, {transform_indices = @transform_7, window_bounds = array<i64: 1, 4, 8, 128>}]} {
    %c4_i32 = arith.constant 4 : i32
    %0 = arith.muli %arg1, %c4_i32 : i32
    %1 = tpu.assume_multiple %0, 4 : i32
    %c0_i32 = arith.constant 0 : i32
    %2 = arith.addi %1, %c0_i32 : i32
    %c0 = arith.constant 0 : index
    %3 = arith.index_cast %2 : i32 to index
    %c0_0 = arith.constant 0 : index
    %c0_1 = arith.constant 0 : index
    %4 = vector.load %arg2[%c0, %3, %c0_0, %c0_1] : memref<1x10x10x128xbf16, #tpu.memory_space<vmem>>, vector<1x4x8x128xbf16>
    %5 = vector.shape_cast %4 : vector<1x4x8x128xbf16> to vector<4x8x128xbf16>
    %c0_2 = arith.constant 0 : index
    %c0_3 = arith.constant 0 : index
    %c0_4 = arith.constant 0 : index
    %6 = vector.load %arg10[%c0_2, %c0_3, %c0_4] : memref<4x8x2304xbf16, #tpu.memory_space<vmem>>, vector<4x8x128xbf16>
    tpu.vector_store %arg10[%c0_2, %c0_3, %c0_4], %5 {strides = array<i32>} : memref<4x8x2304xbf16, #tpu.memory_space<vmem>>, vector<4x8x128xbf16>,
    %c0_i32_5 = arith.constant 0 : i32
    %7 = arith.addi %1, %c0_i32_5 : i32
    %c0_6 = arith.constant 0 : index
    %8 = arith.index_cast %7 : i32 to index
    %c1 = arith.constant 1 : index
    %c0_7 = arith.constant 0 : index
    %9 = vector.load %arg2[%c0_6, %8, %c1, %c0_7] : memref<1x10x10x128xbf16, #tpu.memory_space<vmem>>, vector<1x4x8x128xbf16>
    %10 = vector.shape_cast %9 : vector<1x4x8x128xbf16> to vector<4x8x128xbf16>
    %c0_8 = arith.constant 0 : index
    %c0_9 = arith.constant 0 : index
    %c128 = arith.constant 128 : index
    %11 = vector.load %arg10[%c0_8, %c0_9, %c128] : memref<4x8x2304xbf16, #tpu.memory_space<vmem>>, vector<4x8x128xbf16>
    tpu.vector_store %arg10[%c0_8, %c0_9, %c128], %10 {strides = array<i32>} : memref<4x8x2304xbf16, #tpu.memory_space<vmem>>, vector<4x8x128xbf16>,
    %c0_i32_10 = arith.constant 0 : i32
    %12 = arith.addi %1, %c0_i32_10 : i32
    %c0_11 = arith.constant 0 : index
    %13 = arith.index_cast %12 : i32 to index
    %c2 = arith.constant 2 : index
    %c0_12 = arith.constant 0 : index
    %14 = vector.load %arg2[%c0_11, %13, %c2, %c0_12] : memref<1x10x10x128xbf16, #tpu.memory_space<vmem>>, vector<1x4x8x128xbf16>
    %15 = vector.shape_cast %14 : vector<1x4x8x128xbf16> to vector<4x8x128xbf16>
    %c0_13 = arith.constant 0 : index
    %c0_14 = arith.constant 0 : index
    %c256 = arith.constant 256 : index
    %16 = vector.load %arg10[%c0_13, %c0_14, %c256] : memref<4x8x2304xbf16, #tpu.memory_space<vmem>>, vector<4x8x128xbf16>
    tpu.vector_store %arg10[%c0_13, %c0_14, %c256], %15 {strides = array<i32>} : memref<4x8x2304xbf16, #tpu.memory_space<vmem>>, vector<4x8x128xbf16>,
    %c1_i32 = arith.constant 1 : i32
    %17 = arith.addi %1, %c1_i32 : i32
    %c0_15 = arith.constant 0 : index
    %18 = arith.index_cast %17 : i32 to index
    %c0_16 = arith.constant 0 : index
    %c0_17 = arith.constant 0 : index
    %19 = vector.load %arg2[%c0_15, %18, %c0_16, %c0_17] : memref<1x10x10x128xbf16, #tpu.memory_space<vmem>>, vector<1x4x8x128xbf16>
    %20 = vector.shape_cast %19 : vector<1x4x8x128xbf16> to vector<4x8x128xbf16>
    %c0_18 = arith.constant 0 : index
    %c0_19 = arith.constant 0 : index
    %c384 = arith.constant 384 : index
    %21 = vector.load %arg10[%c0_18, %c0_19, %c384] : memref<4x8x2304xbf16, #tpu.memory_space<vmem>>, vector<4x8x128xbf16>
    tpu.vector_store %arg10[%c0_18, %c0_19, %c384], %20 {strides = array<i32>} : memref<4x8x2304xbf16, #tpu.memory_space<vmem>>, vector<4x8x128xbf16>,
    %c1_i32_20 = arith.constant 1 : i32
    %22 = arith.addi %1, %c1_i32_20 : i32
    %c0_21 = arith.constant 0 : index
    %23 = arith.index_cast %22 : i32 to index
    %c1_22 = arith.constant 1 : index
    %c0_23 = arith.constant 0 : index
    %24 = vector.load %arg2[%c0_21, %23, %c1_22, %c0_23] : memref<1x10x10x128xbf16, #tpu.memory_space<vmem>>, vector<1x4x8x128xbf16>
    %25 = vector.shape_cast %24 : vector<1x4x8x128xbf16> to vector<4x8x128xbf16>
    %c0_24 = arith.constant 0 : index
    %c0_25 = arith.constant 0 : index
    %c512 = arith.constant 512 : index
    %26 = vector.load %arg10[%c0_24, %c0_25, %c512] : memref<4x8x2304xbf16, #tpu.memory_space<vmem>>, vector<4x8x128xbf16>
    tpu.vector_store %arg10[%c0_24, %c0_25, %c512], %25 {strides = array<i32>} : memref<4x8x2304xbf16, #tpu.memory_space<vmem>>, vector<4x8x128xbf16>,
    %c1_i32_26 = arith.constant 1 : i32
    %27 = arith.addi %1, %c1_i32_26 : i32
    %c0_27 = arith.constant 0 : index
    %28 = arith.index_cast %27 : i32 to index
    %c2_28 = arith.constant 2 : index
    %c0_29 = arith.constant 0 : index
    %29 = vector.load %arg2[%c0_27, %28, %c2_28, %c0_29] : memref<1x10x10x128xbf16, #tpu.memory_space<vmem>>, vector<1x4x8x128xbf16>
    %30 = vector.shape_cast %29 : vector<1x4x8x128xbf16> to vector<4x8x128xbf16>
    %c0_30 = arith.constant 0 : index
    %c0_31 = arith.constant 0 : index
    %c640 = arith.constant 640 : index
    %31 = vector.load %arg10[%c0_30, %c0_31, %c640] : memref<4x8x2304xbf16, #tpu.memory_space<vmem>>, vector<4x8x128xbf16>
    tpu.vector_store %arg10[%c0_30, %c0_31, %c640], %30 {strides = array<i32>} : memref<4x8x2304xbf16, #tpu.memory_space<vmem>>, vector<4x8x128xbf16>,
    %c2_i32 = arith.constant 2 : i32
    %32 = arith.addi %1, %c2_i32 : i32
    %c0_32 = arith.constant 0 : index
    %33 = arith.index_cast %32 : i32 to index
    %c0_33 = arith.constant 0 : index
    %c0_34 = arith.constant 0 : index
    %34 = vector.load %arg2[%c0_32, %33, %c0_33, %c0_34] : memref<1x10x10x128xbf16, #tpu.memory_space<vmem>>, vector<1x4x8x128xbf16>
    %35 = vector.shape_cast %34 : vector<1x4x8x128xbf16> to vector<4x8x128xbf16>
    %c0_35 = arith.constant 0 : index
    %c0_36 = arith.constant 0 : index
    %c768 = arith.constant 768 : index
    %36 = vector.load %arg10[%c0_35, %c0_36, %c768] : memref<4x8x2304xbf16, #tpu.memory_space<vmem>>, vector<4x8x128xbf16>
    tpu.vector_store %arg10[%c0_35, %c0_36, %c768], %35 {strides = array<i32>} : memref<4x8x2304xbf16, #tpu.memory_space<vmem>>, vector<4x8x128xbf16>,
    %c2_i32_37 = arith.constant 2 : i32
    %37 = arith.addi %1, %c2_i32_37 : i32
    %c0_38 = arith.constant 0 : index
    %38 = arith.index_cast %37 : i32 to index
    %c1_39 = arith.constant 1 : index
    %c0_40 = arith.constant 0 : index
    %39 = vector.load %arg2[%c0_38, %38, %c1_39, %c0_40] : memref<1x10x10x128xbf16, #tpu.memory_space<vmem>>, vector<1x4x8x128xbf16>
    %40 = vector.shape_cast %39 : vector<1x4x8x128xbf16> to vector<4x8x128xbf16>
    %c0_41 = arith.constant 0 : index
    %c0_42 = arith.constant 0 : index
    %c896 = arith.constant 896 : index
    %41 = vector.load %arg10[%c0_41, %c0_42, %c896] : memref<4x8x2304xbf16, #tpu.memory_space<vmem>>, vector<4x8x128xbf16>
    tpu.vector_store %arg10[%c0_41, %c0_42, %c896], %40 {strides = array<i32>} : memref<4x8x2304xbf16, #tpu.memory_space<vmem>>, vector<4x8x128xbf16>,
    %c2_i32_43 = arith.constant 2 : i32
    %42 = arith.addi %1, %c2_i32_43 : i32
    %c0_44 = arith.constant 0 : index
    %43 = arith.index_cast %42 : i32 to index
    %c2_45 = arith.constant 2 : index
    %c0_46 = arith.constant 0 : index
    %44 = vector.load %arg2[%c0_44, %43, %c2_45, %c0_46] : memref<1x10x10x128xbf16, #tpu.memory_space<vmem>>, vector<1x4x8x128xbf16>
    %45 = vector.shape_cast %44 : vector<1x4x8x128xbf16> to vector<4x8x128xbf16>
    %c0_47 = arith.constant 0 : index
    %c0_48 = arith.constant 0 : index
    %c1024 = arith.constant 1024 : index
    %46 = vector.load %arg10[%c0_47, %c0_48, %c1024] : memref<4x8x2304xbf16, #tpu.memory_space<vmem>>, vector<4x8x128xbf16>
    tpu.vector_store %arg10[%c0_47, %c0_48, %c1024], %45 {strides = array<i32>} : memref<4x8x2304xbf16, #tpu.memory_space<vmem>>, vector<4x8x128xbf16>,
    %c0_i32_49 = arith.constant 0 : i32
    %47 = arith.addi %1, %c0_i32_49 : i32
    %c0_50 = arith.constant 0 : index
    %48 = arith.index_cast %47 : i32 to index
    %c0_51 = arith.constant 0 : index
    %c0_52 = arith.constant 0 : index
    %49 = vector.load %arg3[%c0_50, %48, %c0_51, %c0_52] : memref<1x10x10x128xbf16, #tpu.memory_space<vmem>>, vector<1x4x8x128xbf16>
    %50 = vector.shape_cast %49 : vector<1x4x8x128xbf16> to vector<4x8x128xbf16>
    %c0_53 = arith.constant 0 : index
    %c0_54 = arith.constant 0 : index
    %c1152 = arith.constant 1152 : index
    %51 = vector.load %arg10[%c0_53, %c0_54, %c1152] : memref<4x8x2304xbf16, #tpu.memory_space<vmem>>, vector<4x8x128xbf16>
    tpu.vector_store %arg10[%c0_53, %c0_54, %c1152], %50 {strides = array<i32>} : memref<4x8x2304xbf16, #tpu.memory_space<vmem>>, vector<4x8x128xbf16>,
    %c0_i32_55 = arith.constant 0 : i32
    %52 = arith.addi %1, %c0_i32_55 : i32
    %c0_56 = arith.constant 0 : index
    %53 = arith.index_cast %52 : i32 to index
    %c1_57 = arith.constant 1 : index
    %c0_58 = arith.constant 0 : index
    %54 = vector.load %arg3[%c0_56, %53, %c1_57, %c0_58] : memref<1x10x10x128xbf16, #tpu.memory_space<vmem>>, vector<1x4x8x128xbf16>
    %55 = vector.shape_cast %54 : vector<1x4x8x128xbf16> to vector<4x8x128xbf16>
    %c0_59 = arith.constant 0 : index
    %c0_60 = arith.constant 0 : index
    %c1280 = arith.constant 1280 : index
    %56 = vector.load %arg10[%c0_59, %c0_60, %c1280] : memref<4x8x2304xbf16, #tpu.memory_space<vmem>>, vector<4x8x128xbf16>
    tpu.vector_store %arg10[%c0_59, %c0_60, %c1280], %55 {strides = array<i32>} : memref<4x8x2304xbf16, #tpu.memory_space<vmem>>, vector<4x8x128xbf16>,
    %c0_i32_61 = arith.constant 0 : i32
    %57 = arith.addi %1, %c0_i32_61 : i32
    %c0_62 = arith.constant 0 : index
    %58 = arith.index_cast %57 : i32 to index
    %c2_63 = arith.constant 2 : index
    %c0_64 = arith.constant 0 : index
    %59 = vector.load %arg3[%c0_62, %58, %c2_63, %c0_64] : memref<1x10x10x128xbf16, #tpu.memory_space<vmem>>, vector<1x4x8x128xbf16>
    %60 = vector.shape_cast %59 : vector<1x4x8x128xbf16> to vector<4x8x128xbf16>
    %c0_65 = arith.constant 0 : index
    %c0_66 = arith.constant 0 : index
    %c1408 = arith.constant 1408 : index
    %61 = vector.load %arg10[%c0_65, %c0_66, %c1408] : memref<4x8x2304xbf16, #tpu.memory_space<vmem>>, vector<4x8x128xbf16>
    tpu.vector_store %arg10[%c0_65, %c0_66, %c1408], %60 {strides = array<i32>} : memref<4x8x2304xbf16, #tpu.memory_space<vmem>>, vector<4x8x128xbf16>,
    %c1_i32_67 = arith.constant 1 : i32
    %62 = arith.addi %1, %c1_i32_67 : i32
    %c0_68 = arith.constant 0 : index
    %63 = arith.index_cast %62 : i32 to index
    %c0_69 = arith.constant 0 : index
    %c0_70 = arith.constant 0 : index
    %64 = vector.load %arg3[%c0_68, %63, %c0_69, %c0_70] : memref<1x10x10x128xbf16, #tpu.memory_space<vmem>>, vector<1x4x8x128xbf16>
    %65 = vector.shape_cast %64 : vector<1x4x8x128xbf16> to vector<4x8x128xbf16>
    %c0_71 = arith.constant 0 : index
    %c0_72 = arith.constant 0 : index
    %c1536 = arith.constant 1536 : index
    %66 = vector.load %arg10[%c0_71, %c0_72, %c1536] : memref<4x8x2304xbf16, #tpu.memory_space<vmem>>, vector<4x8x128xbf16>
    tpu.vector_store %arg10[%c0_71, %c0_72, %c1536], %65 {strides = array<i32>} : memref<4x8x2304xbf16, #tpu.memory_space<vmem>>, vector<4x8x128xbf16>,
    %c1_i32_73 = arith.constant 1 : i32
    %67 = arith.addi %1, %c1_i32_73 : i32
    %c0_74 = arith.constant 0 : index
    %68 = arith.index_cast %67 : i32 to index
    %c1_75 = arith.constant 1 : index
    %c0_76 = arith.constant 0 : index
    %69 = vector.load %arg3[%c0_74, %68, %c1_75, %c0_76] : memref<1x10x10x128xbf16, #tpu.memory_space<vmem>>, vector<1x4x8x128xbf16>
    %70 = vector.shape_cast %69 : vector<1x4x8x128xbf16> to vector<4x8x128xbf16>
    %c0_77 = arith.constant 0 : index
    %c0_78 = arith.constant 0 : index
    %c1664 = arith.constant 1664 : index
    %71 = vector.load %arg10[%c0_77, %c0_78, %c1664] : memref<4x8x2304xbf16, #tpu.memory_space<vmem>>, vector<4x8x128xbf16>
    tpu.vector_store %arg10[%c0_77, %c0_78, %c1664], %70 {strides = array<i32>} : memref<4x8x2304xbf16, #tpu.memory_space<vmem>>, vector<4x8x128xbf16>,
    %c1_i32_79 = arith.constant 1 : i32
    %72 = arith.addi %1, %c1_i32_79 : i32
    %c0_80 = arith.constant 0 : index
    %73 = arith.index_cast %72 : i32 to index
    %c2_81 = arith.constant 2 : index
    %c0_82 = arith.constant 0 : index
    %74 = vector.load %arg3[%c0_80, %73, %c2_81, %c0_82] : memref<1x10x10x128xbf16, #tpu.memory_space<vmem>>, vector<1x4x8x128xbf16>
    %75 = vector.shape_cast %74 : vector<1x4x8x128xbf16> to vector<4x8x128xbf16>
    %c0_83 = arith.constant 0 : index
    %c0_84 = arith.constant 0 : index
    %c1792 = arith.constant 1792 : index
    %76 = vector.load %arg10[%c0_83, %c0_84, %c1792] : memref<4x8x2304xbf16, #tpu.memory_space<vmem>>, vector<4x8x128xbf16>
    tpu.vector_store %arg10[%c0_83, %c0_84, %c1792], %75 {strides = array<i32>} : memref<4x8x2304xbf16, #tpu.memory_space<vmem>>, vector<4x8x128xbf16>,
    %c2_i32_85 = arith.constant 2 : i32
    %77 = arith.addi %1, %c2_i32_85 : i32
    %c0_86 = arith.constant 0 : index
    %78 = arith.index_cast %77 : i32 to index
    %c0_87 = arith.constant 0 : index
    %c0_88 = arith.constant 0 : index
    %79 = vector.load %arg3[%c0_86, %78, %c0_87, %c0_88] : memref<1x10x10x128xbf16, #tpu.memory_space<vmem>>, vector<1x4x8x128xbf16>
    %80 = vector.shape_cast %79 : vector<1x4x8x128xbf16> to vector<4x8x128xbf16>
    %c0_89 = arith.constant 0 : index
    %c0_90 = arith.constant 0 : index
    %c1920 = arith.constant 1920 : index
    %81 = vector.load %arg10[%c0_89, %c0_90, %c1920] : memref<4x8x2304xbf16, #tpu.memory_space<vmem>>, vector<4x8x128xbf16>
    tpu.vector_store %arg10[%c0_89, %c0_90, %c1920], %80 {strides = array<i32>} : memref<4x8x2304xbf16, #tpu.memory_space<vmem>>, vector<4x8x128xbf16>,
    %c2_i32_91 = arith.constant 2 : i32
    %82 = arith.addi %1, %c2_i32_91 : i32
    %c0_92 = arith.constant 0 : index
    %83 = arith.index_cast %82 : i32 to index
    %c1_93 = arith.constant 1 : index
    %c0_94 = arith.constant 0 : index
    %84 = vector.load %arg3[%c0_92, %83, %c1_93, %c0_94] : memref<1x10x10x128xbf16, #tpu.memory_space<vmem>>, vector<1x4x8x128xbf16>
    %85 = vector.shape_cast %84 : vector<1x4x8x128xbf16> to vector<4x8x128xbf16>
    %c0_95 = arith.constant 0 : index
    %c0_96 = arith.constant 0 : index
    %c2048 = arith.constant 2048 : index
    %86 = vector.load %arg10[%c0_95, %c0_96, %c2048] : memref<4x8x2304xbf16, #tpu.memory_space<vmem>>, vector<4x8x128xbf16>
    tpu.vector_store %arg10[%c0_95, %c0_96, %c2048], %85 {strides = array<i32>} : memref<4x8x2304xbf16, #tpu.memory_space<vmem>>, vector<4x8x128xbf16>,
    %c2_i32_97 = arith.constant 2 : i32
    %87 = arith.addi %1, %c2_i32_97 : i32
    %c0_98 = arith.constant 0 : index
    %88 = arith.index_cast %87 : i32 to index
    %c2_99 = arith.constant 2 : index
    %c0_100 = arith.constant 0 : index
    %89 = vector.load %arg3[%c0_98, %88, %c2_99, %c0_100] : memref<1x10x10x128xbf16, #tpu.memory_space<vmem>>, vector<1x4x8x128xbf16>
    %90 = vector.shape_cast %89 : vector<1x4x8x128xbf16> to vector<4x8x128xbf16>
    %c0_101 = arith.constant 0 : index
    %c0_102 = arith.constant 0 : index
    %c2176 = arith.constant 2176 : index
    %91 = vector.load %arg10[%c0_101, %c0_102, %c2176] : memref<4x8x2304xbf16, #tpu.memory_space<vmem>>, vector<4x8x128xbf16>
    tpu.vector_store %arg10[%c0_101, %c0_102, %c2176], %90 {strides = array<i32>} : memref<4x8x2304xbf16, #tpu.memory_space<vmem>>, vector<4x8x128xbf16>,
    %c0_103 = arith.constant 0 : index
    %c0_104 = arith.constant 0 : index
    %c0_105 = arith.constant 0 : index
    %92 = vector.load %arg10[%c0_103, %c0_104, %c0_105] : memref<4x8x2304xbf16, #tpu.memory_space<vmem>>, vector<4x8x2304xbf16>
    %93 = vector.shape_cast %92 : vector<4x8x2304xbf16> to vector<32x2304xbf16>
    %c0_106 = arith.constant 0 : index
    %c0_107 = arith.constant 0 : index
    %94 = vector.load %arg4[%c0_106, %c0_107] : memref<2304x256xbf16, #tpu.memory_space<vmem>>, vector<2304x256xbf16>
    %cst = arith.constant dense<0.000000e+00> : vector<32x256xf32>
    %95 = tpu.matmul %93, %94, %cst {dimension_numbers = #tpu.dot_dimension_numbers<[1], [0], [0], [1], [0, 0, 1, 1], [], []>} : vector<32x2304xbf16>, vector<2304x256xbf16>, vector<32x256xf32> -> vector<32x256xf32>
    %c0_108 = arith.constant 0 : index
    %c0_109 = arith.constant 0 : index
    %96 = vector.load %arg5[%c0_108, %c0_109] : memref<1x256xf32, #tpu.memory_space<vmem>>, vector<1x256xf32>
    %97 = vector.broadcast %96 : vector<1x256xf32> to vector<32x256xf32>
    %98 = arith.addf %95, %97 : vector<32x256xf32>
    %c0_110 = arith.constant 0 : index
    %c0_111 = arith.constant 0 : index
    %c0_112 = arith.constant 0 : index
    %c0_113 = arith.constant 0 : index
    %99 = vector.load %arg6[%c0_110, %c0_111, %c0_112, %c0_113] : memref<1x4x8x256xf32, #tpu.memory_space<vmem>>, vector<1x4x8x256xf32>
    %100 = vector.shape_cast %99 : vector<1x4x8x256xf32> to vector<4x8x256xf32>
    %101 = vector.shape_cast %100 : vector<4x8x256xf32> to vector<32x256xf32>
    %c0_114 = arith.constant 0 : index
    %c0_115 = arith.constant 0 : index
    %c0_116 = arith.constant 0 : index
    %c0_117 = arith.constant 0 : index
    %102 = vector.load %arg7[%c0_114, %c0_115, %c0_116, %c0_117] : memref<1x4x8x128xf32, #tpu.memory_space<vmem>>, vector<1x4x8x128xf32>
    %103 = vector.shape_cast %102 : vector<1x4x8x128xf32> to vector<4x8x128xf32>
    %104 = vector.shape_cast %103 : vector<4x8x128xf32> to vector<32x128xf32>
    %105 = arith.addf %98, %101 : vector<32x256xf32>
    %cst_118 = arith.constant 0.000000e+00 : f32
    %106 = vector.broadcast %cst_118 : f32 to vector<32x256xf32>
    %107 = arith.subf %106, %105 : vector<32x256xf32>
    %108 = math.exp %107 : vector<32x256xf32>
    %cst_119 = arith.constant 1.000000e+00 : f32
    %109 = vector.broadcast %cst_119 : f32 to vector<32x256xf32>
    %110 = arith.addf %109, %108 : vector<32x256xf32>
    %111 = tpu.reciprocal %110 {approx = true} : vector<32x256xf32> -> vector<32x256xf32>
    %112 = vector.extract_strided_slice %111 {offsets = [0, 0], sizes = [32, 128], strides = [1, 1]} : vector<32x256xf32> to vector<32x128xf32>
    %113 = vector.extract_strided_slice %111 {offsets = [0, 128], sizes = [32, 128], strides = [1, 1]} : vector<32x256xf32> to vector<32x128xf32>
    %114 = arith.mulf %113, %104 : vector<32x128xf32>
    %115 = vector.shape_cast %112 : vector<32x128xf32> to vector<4x8x128xf32>
    %116 = arith.truncf %115 : vector<4x8x128xf32> to vector<4x8x128xbf16>
    %c0_120 = arith.constant 0 : index
    %c0_121 = arith.constant 0 : index
    %c0_122 = arith.constant 0 : index
    %c0_123 = arith.constant 0 : index
    %117 = vector.load %arg8[%c0_120, %c0_121, %c0_122, %c0_123] : memref<1x4x8x128xbf16, #tpu.memory_space<vmem>>, vector<1x4x8x128xbf16>
    %118 = vector.shape_cast %117 : vector<1x4x8x128xbf16> to vector<4x8x128xbf16>
    %119 = vector.shape_cast %116 : vector<4x8x128xbf16> to vector<1x4x8x128xbf16>
    tpu.vector_store %arg8[%c0_120, %c0_121, %c0_122, %c0_123], %119 {strides = array<i32>} : memref<1x4x8x128xbf16, #tpu.memory_space<vmem>>, vector<1x4x8x128xbf16>,
    %120 = vector.shape_cast %114 : vector<32x128xf32> to vector<4x8x128xf32>
    %121 = arith.truncf %120 : vector<4x8x128xf32> to vector<4x8x128xbf16>
    %c0_124 = arith.constant 0 : index
    %c0_125 = arith.constant 0 : index
    %c0_126 = arith.constant 0 : index
    %c0_127 = arith.constant 0 : index
    %122 = vector.load %arg9[%c0_124, %c0_125, %c0_126, %c0_127] : memref<1x4x8x128xbf16, #tpu.memory_space<vmem>>, vector<1x4x8x128xbf16>
    %123 = vector.shape_cast %122 : vector<1x4x8x128xbf16> to vector<4x8x128xbf16>
    %124 = vector.shape_cast %121 : vector<4x8x128xbf16> to vector<1x4x8x128xbf16>
    tpu.vector_store %arg9[%c0_124, %c0_125, %c0_126, %c0_127], %124 {strides = array<i32>} : memref<1x4x8x128xbf16, #tpu.memory_space<vmem>>, vector<1x4x8x128xbf16>,
    return
  }
  func.func @transform_0(%arg0: i32, %arg1: i32) -> (i32, i32, i32, i32) {
    %c0_i32 = arith.constant 0 : i32
    %c0_i32_0 = arith.constant 0 : i32
    %c0_i32_1 = arith.constant 0 : i32
    %c0_i32_2 = arith.constant 0 : i32
    return %arg0, %c0_i32, %c0_i32_0, %c0_i32_1 : i32, i32, i32, i32
  }
  func.func @transform_1(%arg0: i32, %arg1: i32) -> (i32, i32, i32, i32) {
    %c0_i32 = arith.constant 0 : i32
    %c0_i32_0 = arith.constant 0 : i32
    %c0_i32_1 = arith.constant 0 : i32
    %c0_i32_2 = arith.constant 0 : i32
    return %arg0, %c0_i32, %c0_i32_0, %c0_i32_1 : i32, i32, i32, i32
  }
  func.func @transform_2(%arg0: i32, %arg1: i32) -> (i32, i32) {
    %c0_i32 = arith.constant 0 : i32
    %c0_i32_0 = arith.constant 0 : i32
    %c0_i32_1 = arith.constant 0 : i32
    return %c0_i32, %c0_i32_0 : i32, i32
  }
  func.func @transform_3(%arg0: i32, %arg1: i32) -> (i32, i32) {
    %c0_i32 = arith.constant 0 : i32
    %c0_i32_0 = arith.constant 0 : i32
    %c0_i32_1 = arith.constant 0 : i32
    return %c0_i32, %c0_i32_0 : i32, i32
  }
  func.func @transform_4(%arg0: i32, %arg1: i32) -> (i32, i32, i32, i32) {
    %c0_i32 = arith.constant 0 : i32
    %c0_i32_0 = arith.constant 0 : i32
    %c0_i32_1 = arith.constant 0 : i32
    return %arg0, %arg1, %c0_i32, %c0_i32_0 : i32, i32, i32, i32
  }
  func.func @transform_5(%arg0: i32, %arg1: i32) -> (i32, i32, i32, i32) {
    %c0_i32 = arith.constant 0 : i32
    %c0_i32_0 = arith.constant 0 : i32
    %c0_i32_1 = arith.constant 0 : i32
    return %arg0, %arg1, %c0_i32, %c0_i32_0 : i32, i32, i32, i32
  }
  func.func @transform_6(%arg0: i32, %arg1: i32) -> (i32, i32, i32, i32) {
    %c0_i32 = arith.constant 0 : i32
    %c0_i32_0 = arith.constant 0 : i32
    %c0_i32_1 = arith.constant 0 : i32
    return %arg0, %arg1, %c0_i32, %c0_i32_0 : i32, i32, i32, i32
  }
  func.func @transform_7(%arg0: i32, %arg1: i32) -> (i32, i32, i32, i32) {
    %c0_i32 = arith.constant 0 : i32
    %c0_i32_0 = arith.constant 0 : i32
    %c0_i32_1 = arith.constant 0 : i32
    return %arg0, %arg1, %c0_i32, %c0_i32_0 : i32, i32, i32, i32
  }
}

</mosaic_0001>

<bundles_post_ra>
// kernel: tpu_custom_call.1
= control target key start
LH: loop header
LB: loop body
LE: loop exit
PB: predicated region body
PF: predicated region fallthrough
CT: control target
= control target key end

     0   :  { %s6122_s0 = inlined_call_operand.vmem [shape: bf16[2,10,10,128], index: 0, kind: input, shape index: {}]   ;;  %s6123_s1 = inlined_call_operand.vmem [shape: bf16[2,10,10,128], index: 1, kind: input, shape index: {}]   ;;  %s6124_s2 = inlined_call_operand.hbm [shape: bf16[2304,256], index: 2, kind: input, shape index: {}]   ;;  %s6125_s3 = inlined_call_operand.hbm [shape: f32[1,256], index: 3, kind: input, shape index: {}]   ;;  %s6126_s4 = inlined_call_operand.hbm [shape: f32[2,8,8,256], index: 4, kind: input, shape index: {}]   ;;  %s6127_s5 = inlined_call_operand.hbm [shape: f32[2,8,8,128], index: 5, kind: input, shape index: {}]   ;;  %s6128_s6 = inlined_call_operand.hbm [shape: bf16[2,8,8,128], index: 6, kind: output, shape index: {0}]   ;;  %s6129_s7 = inlined_call_operand.hbm [shape: bf16[2,8,8,128], index: 7, kind: output, shape index: {1}]  }
   0x1   :  { %6150 = sst [smem:[#allocation23_spill]] %s6122_s0 }
   0x2   :  { %6151 = sst [smem:[#allocation24_spill]] %s6123_s1 }
   0x3   :  { %6152 = sst [smem:[#allocation25_spill]] %s6124_s2 }
   0x4   :  { %6153 = sst [smem:[#allocation26_spill]] %s6126_s4 }
   0x5   :  { %6154 = sst [smem:[#allocation27_spill]] %s6128_s6 }
   0x6   :  { %6155 = sst [smem:[#allocation28_spill]] %s6129_s7 }
   0x7   :  { %13 = vsyncpa [#allocation4], 0 }
   0x8   :  { %14 = vsyncpa [#allocation7], 0 }
   0x9   :  { %15 = vsyncpa [#allocation5], 0 }
   0xa   :  { %17 = vsyncpa [#allocation5 + $0x1], 0 }
   0xb   :  { %18 = vsyncpa [#allocation12], 0 }
   0xc   :  { %20 = vsyncpa [#allocation12 + $0x1], 0  ;;  %s5496_s24 = smov 0   ;;  %s5498_s25 = smov 0  }
   0xd   :  { %s5500_s26 = smov 0   ;;  %s5502_s27 = smov 0  }
   0xe   :  { %s5504_s28 = smov 0   ;;  %s5506_s29 = smov 0  }
   0xf   :  { %s5508_s30 = smov 0   ;;  %s5510_s8 = smov 0  }
  0x10 LB: > { %6156 = sst [smem:[#allocation18_spill]] %s5414_s24  ;;  %s5537_s9 = sadd.s32 4294967295, %s5442_s8   ;;  %s5442_s8 = sphi %s5510_s8, %s26_s8   ;;  %s5438_s30 = sphi %s5508_s30, %s6207_s30   ;;  %s5434_s29 = sphi %s5506_s29, %s6206_s29   ;;  %s5430_s28 = sphi %s5504_s28, %s6205_s28   ;;  %s5426_s27 = sphi %s5502_s27, %s6204_s27   ;;  %s5422_s26 = sphi %s5500_s26, %s6203_s26   ;;  %s5418_s25 = sphi %s5498_s25, %s6202_s25   ;;  %s5414_s24 = sphi %s5496_s24, %s6201_s24  }
  0x11   : > { %6157 = sst [smem:[#allocation19_spill]] %s5442_s8  ;;  %s3947_s10 = sadd.s32 4294967294, %s5442_s8  }
  0x12   : > { %p148_p0 = scmp.ne.s32.totalorder %s5422_s26, %s5418_s25  ;;  %p149_p1 = scmp.eq.s32.totalorder %s5442_s8, 0 }
  0x13   : > { %p154_p2 = scmp.ne.s32.totalorder %s5418_s25, %s5414_s24  ;;  %p6131_p3 = scmp.eq.s32.totalorder %s5537_s9, 0 }
  0x14   : > { %p208_p4 = scmp.eq.s32.totalorder %s5537_s9, 3  ;;  %p5548_p5 = por %p149_p1, %p148_p0 }
  0x15   : > { %p214_p6 = scmp.eq.s32.totalorder %s3947_s10, 3  ;;  %p5554_p7 = por %p6131_p3, %p154_p2 }
  0x16   : > { %p5558_p8 = por %p208_p4, %p148_p0  ;;  %p3948_p10 = scmp.ge.s32.totalorder %s5442_s8, 1 }
  0x17   : > { %s6159_s13 = scalar_select %p5554_p7, 1, 0 }
  0x18   : > { %s6160_s14 = scalar_select %p5558_p8, 1, 0 }
  0x19   : > { %p5562_p9 = por %p214_p6, %p154_p2  ;;  %p249_p11 = scmp.lt.s32.totalorder %s5442_s8, 5 }
  0x1a   : > { %6161 = sst [smem:[#allocation20_spill]] %s6160_s14  ;;  %s5444_s17 = smov [#allocation3]  }
  0x1b   : > { %s6162_s15 = scalar_select %p5562_p9, 1, 0 }
  0x1c   : > { %p5568_p12 = pnand %p3948_p10, %p249_p11  ;;  %s261_s18 = sshll.u32 %s5444_s17, 4  ;;  %s262_s18 = int_to_ptr.vmem [resolvable:$true] %s261_s18 }
  0x1d   : > { %6163 = sst [smem:[#allocation21_spill]] %s6162_s15  ;;  %p4594_p0 = scmp.lt.s32.totalorder %s5442_s8, 4 }
  0x1e   : > { %s6164_s16 = scalar_select %p5568_p12, 1, 0 }
  0x1f   : > { %p4571_p13 = pneg %p5568_p12  ;;  %p5583_p2 = pnand %p4594_p0, %p5548_p5 }
  0x20   : > { %s6167_s2 = sld [smem:[#allocation25_spill]] }
  0x21   : > { %p5577_p1 = pnand %p4571_p13, %p6131_p3 }
  0x22   : > { %s6166_s20 = scalar_select %p5583_p2, 1, 0 }
  0x23   : > { %p6147_p6 = pneg %p5577_p1 }
  0x26   : > { %s5188_s23 = scalar_lea.hbm %s6167_s2, 36864 }
  0x27   : > { %p5189_p4 = scmp.ne.s32.totalorder %s6167_s2, %s5188_s23  ;;  %p5195_p5 = scmp.lt.u32.totalorder %s5188_s23, %s6167_s2 }
  0x29   : > { %p5191_p10 = pnand %p6147_p6, %p5189_p4 }
  0x2b   : > { %p5192_p11 = pneg %p5191_p10 }
  0x2d   : > { %p5197_p13 = pnand %p5195_p5, %p5192_p11 }
  0x2f   : > { %5200 = shalt.err (!%p5197_p13)
}
  0x30   : > { %s5201_s15 = scalar_lea.vmem %s262_s18, 36864  ;;  %p5209_p8 = scmp.lt.s32.totalorder %s262_s18, %s262_s18 }
  0x31   : > { %p5202_p0 = scmp.ne.s32.totalorder %s262_s18, %s5201_s15  ;;  %p5210_p7 = scmp.lt.s32.totalorder %s5201_s15, %s5201_s15 }
  0x33   : > { %p5204_p3 = pnand %p5202_p0, %p6147_p6  ;;  %p5211_p12 = por %p5210_p7, %p5209_p8 }
  0x35   : > { %p5205_p9 = pneg %p5204_p3 }
  0x37   : > { %p5212_p2 = pnand %p5211_p12, %p5205_p9 }
  0x39   : > { %5215 = shalt.err (!%p5212_p2)
}
  0x3a   : > { %s6140_s21 = smov 128   ;;  %s6141_s11 = smov 8  }
  0x3b   : > { %4574 = dma.hbm_to_vmem [thread:$0]  (!%p5577_p1), %s6167_s2, 36864, %s262_s18, [#allocation4], %s6140_s21, %s6140_s21, %s6141_s11  }
  0x3c   : > { %s35_s23 = sadd.s32 1, %s5434_s29  ;;  %s38_s10 = sadd.s32 1, %s5438_s30 }
  0x3d   : > { %p36_p3 = scmp.ge.s32.totalorder %s35_s23, 2  ;;  %s302_s17 = sand.u32 1, %s5442_s8  }
  0x3e   : > { %s6146_s12 = sand.u32 1, %s5422_s26   ;;  %s4420_s14 = sshll.u32 %s5434_s29, 3 }
  0x3f   : > { %s6209_s23 = smov (%p36_p3, %s35_s23), 0  ;;  %s6211_s10 = smov (!%p36_p3, %s38_s10), %s5438_s30 }
  0x40   : > { %6168 = sst [smem:[#allocation22_spill]] %s6209_s23  ;;  %s137_s24 = ssub.s32 %s5434_s29, %s6209_s23 }
  0x41   : > { %p40_p7 = scmp.ge.s32.totalorder %s6211_s10, 2  ;;  %s3952_s7 = sshll.u32 %s6146_s12, 6 }
  0x42   : > { %s3955_s18 = sshll.u32 %s5438_s30, 4  ;;  %s306_s15 = scalar_lea.vmem [#allocation8], %s3952_s7 }
  0x43   : > { %s6213_s10 = smov (%p40_p7, %s6211_s10), 0  ;;  %s316_s22 = sshll.u32 %s306_s15, 4  ;;  %s5634_s22 = int_to_ptr.vmem [resolvable:$true] %s316_s22 }
  0x44   : > { %s136_s21 = ssub.s32 %s5438_s30, %s6213_s10  ;;  %s313_s11 = sadd.s32 %s4420_s14, %s3955_s18 }
  0x45   : > { %s138_s2 = sor.u32 %s137_s24, %s136_s21  ;;  %s3956_s8 = sshll.u32 %s313_s11, 7 }
  0x46   : > { %p139_p8 = scmp.eq.s32.totalorder %s138_s2, 0  ;;  %s6169_s4 = sld [smem:[#allocation26_spill]] }
  0x47   : > { %s6170_s12 = sadd.s32 1, %s5422_s26  ;;  %s5641_s7 = scalar_lea.sflag [#allocation4], %s302_s17 }
  0x48   : > { %s5639_s0 = scalar_select %p139_p8, %s5422_s26, %s6170_s12  }
  0x49   : > { %p6171_p12 = scmp.ne.s32.totalorder %s6166_s20, 0 }
  0x4b   : > { %p6148_p2 = pneg %p6171_p12 }
  0x4c   : > { %s5632_s23 = scalar_lea.hbm %s6169_s4, %s3956_s8  ;;  %s5221_s6 = scalar_lea.hbm %s6169_s4, 4096 }
  0x4d   : > { %s5216_s14 = scalar_lea.hbm %s5632_s23, 1024  ;;  %p5222_p11 = scmp.lt.u32.totalorder %s5632_s23, %s6169_s4 }
  0x4e   : > { %p5217_p9 = scmp.ne.s32.totalorder %s5632_s23, %s5216_s14  ;;  %p5223_p5 = scmp.lt.u32.totalorder %s5221_s6, %s5216_s14 }
  0x4f   : > { %p5225_p0 = scmp.lt.u32.totalorder %s5216_s14, %s5632_s23 }
  0x50   : > { %p5219_p4 = pnand %p6148_p2, %p5217_p9  ;;  %p5224_p13 = por %p5223_p5, %p5222_p11 }
  0x52   : > { %p5220_p10 = pneg %p5219_p4  ;;  %p5226_p3 = por %p5225_p0, %p5224_p13 }
  0x54   : > { %p5227_p7 = pnand %p5226_p3, %p5220_p10 }
  0x56   : > { %5230 = shalt.err (!%p5227_p7)
}
  0x57   : > { %s5231_s21 = scalar_lea.vmem %s5634_s22, 1024  ;;  %s5447_s11 = smov [#allocation8]  }
  0x58   : > { %p5232_p8 = scmp.ne.s32.totalorder %s5634_s22, %s5231_s21  ;;  %s5236_s17 = sshll.u32 %s5447_s11, 4  ;;  %s5237_s17 = int_to_ptr.vmem [resolvable:$false] %s5236_s17 }
  0x59   : > { %s5238_s12 = scalar_lea.vmem %s5237_s17, 2048  ;;  %p5239_p6 = scmp.lt.s32.totalorder %s5634_s22, %s5237_s17 }
  0x5a   : > { %p5234_p9 = pnand %p5232_p8, %p6148_p2  ;;  %p5240_p11 = scmp.lt.s32.totalorder %s5238_s12, %s5231_s21 }
  0x5c   : > { %p5235_p4 = pneg %p5234_p9  ;;  %p5241_p5 = por %p5240_p11, %p5239_p6 }
  0x5e   : > { %p5242_p13 = pnand %p5241_p5, %p5235_p4 }
  0x60   : > { %5245 = shalt.err (!%p5242_p13)
}
  0x61   : > { %s5448_s18 = smov 256   ;;  %s5449_s15 = smov 16  }
  0x62   : > { %4581 = dma.hbm_to_vmem [thread:$0]  (!%p6171_p12), %s5632_s23, 1024, %s5634_s22, %s5641_s7, %s5448_s18, %s5448_s18, %s5449_s15  }
  0x63   : > { %s5450_s14 = smov [#allocation6]   ;;  %s6172_s2 = sand.u32 1, %s5422_s26  }
  0x64   : > { %s275_s1 = sshll.u32 %s5450_s14, 4  ;;  %s3957_s6 = sshll.u32 %s6172_s2, 5  ;;  %s276_s1 = int_to_ptr.vmem [resolvable:$true] %s275_s1 }
  0x65   : > { %s5246_s21 = scalar_lea.hbm %s6125_s3, 32  ;;  %p6173_p10 = pneg %p5577_p1 }
  0x66   : > { %p5247_p6 = scmp.ne.s32.totalorder %s6125_s3, %s5246_s21  ;;  %p5253_p7 = scmp.lt.u32.totalorder %s5246_s21, %s6125_s3 }
  0x68   : > { %p5249_p0 = pnand %p5247_p6, %p6173_p10 }
  0x6a   : > { %p5250_p3 = pneg %p5249_p0 }
  0x6c   : > { %p5255_p8 = pnand %p5253_p7, %p5250_p3 }
  0x6e   : > { %5258 = shalt.err (!%p5255_p8)
}
  0x6f   : > { %s5259_s23 = scalar_lea.vmem %s276_s1, 32  ;;  %p6174_p4 = pmov %p6173_p10 }
  0x70   : > { %p5260_p9 = scmp.ne.s32.totalorder %s276_s1, %s5259_s23  ;;  %p5267_p13 = scmp.lt.s32.totalorder %s276_s1, %s276_s1 }
  0x71   : > { %p5268_p2 = scmp.lt.s32.totalorder %s5259_s23, %s5259_s23 }
  0x72   : > { %p5262_p11 = pnand %p5260_p9, %p6174_p4 }
  0x73   : > { %p5269_p12 = por %p5268_p2, %p5267_p13 }
  0x74   : > { %p5263_p5 = pneg %p5262_p11 }
  0x76   : > { %p5270_p6 = pnand %p5269_p12, %p5263_p5 }
  0x78   : > { %5273 = shalt.err (!%p5270_p6)
}
  0x79   : > { %4577 = dma.hbm_to_vmem [thread:$0]  (!%p5577_p1), %s6125_s3, 32, %s276_s1, [#allocation7]  }
  0x7a   : > { %s3958_s4 = sshll.u32 %s5434_s29, 2  ;;  %s3959_s15 = sshll.u32 %s5438_s30, 3 }
  0x7b   : > { %s336_s14 = sadd.s32 %s3959_s15, %s3958_s4  ;;  %s330_s2 = scalar_lea.vmem [#allocation9], %s3957_s6 }
  0x7c   : > { %s339_s24 = sshll.u32 %s330_s2, 4  ;;  %s3960_s8 = sshll.u32 %s336_s14, 7  ;;  %s5693_s24 = int_to_ptr.vmem [resolvable:$true] %s339_s24 }
  0x7d   : > { %s5698_s17 = scalar_lea.hbm %s6127_s5, %s3960_s8  ;;  %p6175_p1 = scmp.ne.s32.totalorder %s6166_s20, 0 }
  0x7e   : > { %s5274_s19 = scalar_lea.hbm %s5698_s17, 512  ;;  %s5279_s12 = scalar_lea.hbm %s6127_s5, 2048 }
  0x7f   : > { %p5275_p12 = scmp.ne.s32.totalorder %s5698_s17, %s5274_s19  ;;  %p6176_p2 = pneg %p6175_p1 }
  0x80   : > { %p5280_p3 = scmp.lt.u32.totalorder %s5698_s17, %s6127_s5  ;;  %p5281_p7 = scmp.lt.u32.totalorder %s5279_s12, %s5274_s19 }
  0x81   : > { %p5277_p10 = pnand %p5275_p12, %p6176_p2  ;;  %p5283_p9 = scmp.lt.u32.totalorder %s5274_s19, %s5698_s17 }
  0x82   : > { %p5282_p8 = por %p5281_p7, %p5280_p3 }
  0x83   : > { %p5278_p0 = pneg %p5277_p10 }
  0x84   : > { %p5284_p4 = por %p5283_p9, %p5282_p8 }
  0x86   : > { %p5285_p11 = pnand %p5284_p4, %p5278_p0 }
  0x88   : > { %5288 = shalt.err (!%p5285_p11)
}
  0x89   : > { %s5289_s18 = scalar_lea.vmem %s5693_s24, 512  ;;  %p6177_p13 = pmov %p6176_p2 }
  0x8a   : > { %p5290_p5 = scmp.ne.s32.totalorder %s5693_s24, %s5289_s18  ;;  %s5451_s4 = smov [#allocation9]  }
  0x8b   : > { %s5294_s15 = sshll.u32 %s5451_s4, 4  ;;  %s5295_s15 = int_to_ptr.vmem [resolvable:$false] %s5294_s15 }
  0x8c   : > { %p5292_p6 = pnand %p5290_p5, %p6177_p13  ;;  %s5296_s14 = scalar_lea.vmem %s5295_s15, 1024 }
  0x8d   : > { %p5297_p2 = scmp.lt.s32.totalorder %s5693_s24, %s5295_s15  ;;  %p5298_p10 = scmp.lt.s32.totalorder %s5296_s14, %s5289_s18 }
  0x8e   : > { %p5293_p12 = pneg %p5292_p6 }
  0x8f   : > { %p5299_p3 = por %p5298_p10, %p5297_p2 }
  0x91   : > { %p5300_p7 = pnand %p5299_p3, %p5293_p12 }
  0x93   : > { %5303 = shalt.err (!%p5300_p7)
}
  0x94   : > { %s6178_s2 = smov 8   ;;  %s6179_s8 = smov 128  }
  0x95   : > { %4584 = dma.hbm_to_vmem [thread:$0]  (!%p6175_p1), %s5698_s17, 512, %s5693_s24, %s5641_s7, %s6179_s8, %s6179_s8, %s6178_s2  }
  0x96   : > { %p6180_p0 = scmp.ne.s32.totalorder %s6164_s16, 0 }
  0x97   : > { %p6181_p8 = scmp.eq.s32.totalorder (!%p6180_p0), %s5537_s9, 0 }
  0x98   : > { %351 = sbr.rel (%p6180_p0) target bundleno = 780 (0x30c), region = 44 }
  0x9f   : > { %5393 = dma.done.wait (%p6181_p8), [#allocation4], 36864   ;;  %p6182_p9 = pmov %p6181_p8 }
  0xa0   : > { %p6183_p4 = pmov %p6181_p8 }
  0xa1   : > { %5395 = vsyncadd (%p6182_p9), [#allocation4], 4294930432 }
  0xa2   : > { %5397 = dma.done.wait (%p6183_p4), [#allocation7], 32   ;;  %p6184_p11 = pmov %p6183_p4 }
  0xa3   : > { %s361_s20 = sand.u32 1, %s5537_s9   ;;  %s5739_s7 = sand.u32 1, %s5418_s25  }
  0xa4   : > { %5399 = vsyncadd (%p6184_p11), [#allocation7], 4294967264  ;;  %s3964_s16 = sshll.u32 %s5739_s7, 6  ;;  %s362_s24 = scalar_lea.sflag [#allocation4], %s361_s20 }
  0xa5   : > { %s5742_s21 = scalar_lea.vmem [#allocation8], %s3964_s16  ;;  %p6185_p1 = scmp.ne.s32.totalorder %s6159_s13, 0 }
  0xa7   : > { %5401 = dma.done.wait (%p6185_p1), %s362_s24, 1536  }
  0xa8   : > { %5403 = vsyncadd (%p6185_p1), %s362_s24, 4294965760  ;;  %v4670_v0 = vld [vmem:[#allocation3 + $0x4] ss:$8 sps:$4 sm:$0xff]   ;;  %v4674_v2 = vld [vmem:[#allocation3] ss:$8 sps:$4 sm:$0xff]   ;;  %p425_p5 = scmp.lt.s32.totalorder %s5430_s28, 1 }
  0xa9   : > { %v4672_v1 = vld [vmem:[#allocation3 + $0x404] ss:$8 sps:$4 sm:$0xff]   ;;  %3139 = vmatprep.subr.bf16.mxu1 %v4670_v0  ;;  %v4675_v3 = vld [vmem:[#allocation3 + $0x400] ss:$8 sps:$4 sm:$0xff]   ;;  %v4676_v4 = vld [vmem:[#allocation3 + $0x14] ss:$8 sps:$4 sm:$0xff]  }
  0xaa   : > { %3351 = vmatprep.subr.bf16.mxu0 %v4672_v1  ;;  %3140 = vmatpush1.bf16.msra.mxu1 %v4674_v2  ;;  %v4678_v5 = vld [vmem:[#allocation3 + $0x414] ss:$8 sps:$4 sm:$0xff]   ;;  %v4680_v6 = vld [vmem:[#allocation3 + $0x10] ss:$8 sps:$4 sm:$0xff]   ;;  %v4682_v8 = vld [vmem:[#allocation3 + $0x24] ss:$8 sps:$4 sm:$0xff]  }
  0xab   : > { %3352 = vmatpush1.bf16.msra.mxu0 %v4675_v3  ;;  %3141 = vmatprep.subr.bf16.mxu1 %v4676_v4  ;;  %v4681_v7 = vld [vmem:[#allocation3 + $0x410] ss:$8 sps:$4 sm:$0xff]   ;;  %v4684_v9 = vld [vmem:[#allocation3 + $0x424] ss:$8 sps:$4 sm:$0xff]   ;;  %v4686_v10 = vld [vmem:[#allocation3 + $0x20] ss:$8 sps:$4 sm:$0xff]  }
  0xac   : > { %3353 = vmatprep.subr.bf16.mxu0 %v4678_v5  ;;  %v4687_v11 = vld [vmem:[#allocation3 + $0x420] ss:$8 sps:$4 sm:$0xff]   ;;  %v4688_v12 = vld [vmem:[#allocation3 + $0x34] ss:$8 sps:$4 sm:$0xff]   ;;  %v4692_v14 = vld [vmem:[#allocation3 + $0x30] ss:$8 sps:$4 sm:$0xff]  }
  0xad   : > { %v4690_v13 = vld [vmem:[#allocation3 + $0x434] ss:$8 sps:$4 sm:$0xff]   ;;  %v4693_v15 = vld [vmem:[#allocation3 + $0x430] ss:$8 sps:$4 sm:$0xff]   ;;  %v4694_v16 = vld [vmem:[#allocation3 + $0x44] ss:$8 sps:$4 sm:$0xff]  }
  0xae   : > { %3142 = vmatpush1.bf16.msra.mxu1 %v4680_v6  ;;  %v4696_v17 = vld [vmem:[#allocation3 + $0x444] ss:$8 sps:$4 sm:$0xff]   ;;  %v4698_v18 = vld [vmem:[#allocation3 + $0x40] ss:$8 sps:$4 sm:$0xff]   ;;  %v4700_v20 = vld [vmem:[#allocation3 + $0x54] ss:$8 sps:$4 sm:$0xff]  }
  0xaf   : > { %3354 = vmatpush1.bf16.msra.mxu0 %v4681_v7  ;;  %3143 = vmatprep.subr.bf16.mxu1 %v4682_v8  ;;  %v4699_v19 = vld [vmem:[#allocation3 + $0x440] ss:$8 sps:$4 sm:$0xff]   ;;  %v4702_v21 = vld [vmem:[#allocation3 + $0x454] ss:$8 sps:$4 sm:$0xff]   ;;  %v4704_v22 = vld [vmem:[#allocation3 + $0x50] ss:$8 sps:$4 sm:$0xff]  }
  0xb0   : > { %3355 = vmatprep.subr.bf16.mxu0 %v4684_v9  ;;  %v4705_v23 = vld [vmem:[#allocation3 + $0x450] ss:$8 sps:$4 sm:$0xff]   ;;  %v4706_v24 = vld [vmem:[#allocation3 + $0x64] ss:$8 sps:$4 sm:$0xff]   ;;  %v4710_v26 = vld [vmem:[#allocation3 + $0x60] ss:$8 sps:$4 sm:$0xff]  }
  0xb1   : > { %v4708_v25 = vld [vmem:[#allocation3 + $0x464] ss:$8 sps:$4 sm:$0xff]   ;;  %v4711_v27 = vld [vmem:[#allocation3 + $0x460] ss:$8 sps:$4 sm:$0xff]   ;;  %v4712_v28 = vld [vmem:[#allocation3 + $0x74] ss:$8 sps:$4 sm:$0xff]  }
  0xb2   : > { %3144 = vmatpush1.bf16.msra.mxu1 %v4686_v10  ;;  %v4714_v29 = vld [vmem:[#allocation3 + $0x474] ss:$8 sps:$4 sm:$0xff]   ;;  %v4716_v30 = vld [vmem:[#allocation3 + $0x70] ss:$8 sps:$4 sm:$0xff]   ;;  %v4718_v32 = vld [vmem:[#allocation3 + $0x84] ss:$8 sps:$4 sm:$0xff]  }
  0xb3   : > { %3356 = vmatpush1.bf16.msra.mxu0 %v4687_v11  ;;  %3145 = vmatprep.subr.bf16.mxu1 %v4688_v12  ;;  %v4717_v31 = vld [vmem:[#allocation3 + $0x470] ss:$8 sps:$4 sm:$0xff]   ;;  %v4720_v33 = vld [vmem:[#allocation3 + $0x484] ss:$8 sps:$4 sm:$0xff]   ;;  %s5750_s9 = scalar_select %p425_p5, %s5430_s28, 1  ;;  %vm542_vm2 = vcmask 1042432  }
  0xb4   : > { %3357 = vmatprep.subr.bf16.mxu0 %v4690_v13  ;;  %v4722_v34 = vld [vmem:[#allocation3 + $0x80] ss:$8 sps:$4 sm:$0xff]   ;;  %v4724_v36 = vld [vmem:[#allocation3 + $0x94] ss:$8 sps:$4 sm:$0xff]   ;;  %v4728_v38 = vld [vmem:[#allocation3 + $0x90] ss:$8 sps:$4 sm:$0xff]  }
  0xb5   : > { %v4723_v35 = vld [vmem:[#allocation3 + $0x480] ss:$8 sps:$4 sm:$0xff]   ;;  %v4726_v37 = vld [vmem:[#allocation3 + $0x494] ss:$8 sps:$4 sm:$0xff]   ;;  %s4554_s13 = smul.u32 80, %s5750_s9  ;;  %s6186_s19 = sld [smem:[#allocation23_spill]] }
  0xb6   : > { %3146 = vmatpush1.bf16.msra.mxu1 %v4692_v14  ;;  %v4729_v39 = vld [vmem:[#allocation3 + $0x490] ss:$8 sps:$4 sm:$0xff]   ;;  %v4730_v40 = vld [vmem:[#allocation3 + $0xa4] ss:$8 sps:$4 sm:$0xff]   ;;  %s4422_s6 = sshll.u32 %s5426_s27, 5  ;;  %vm543_vm3 = vcmask 1046532  }
  0xb7   : > { %3358 = vmatpush1.bf16.msra.mxu0 %v4693_v15  ;;  %3147 = vmatprep.subr.bf16.mxu1 %v4694_v16  ;;  %v4732_v41 = vld [vmem:[#allocation3 + $0x4a4] ss:$8 sps:$4 sm:$0xff]   ;;  %v4734_v42 = vld [vmem:[#allocation3 + $0xa0] ss:$8 sps:$4 sm:$0xff]   ;;  %vm459_vm0 = vsmask.f32 3328  ;;  %vm5780_vm4 = vmor %vm542_vm2, %vm543_vm3 }
  0xb8   : > { %3359 = vmatprep.subr.bf16.mxu0 %v4696_v17  ;;  %v4735_v43 = vld [vmem:[#allocation3 + $0x4a0] ss:$8 sps:$4 sm:$0xff]   ;;  %v4736_v44 = vld [vmem:[#allocation3 + $0xb4] ss:$8 sps:$4 sm:$0xff]   ;;  %vm460_vm1 = vsmask.f32 7440 }
  0xb9   : > { %v4738_v45 = vld [vmem:[#allocation3 + $0x4b4] ss:$8 sps:$4 sm:$0xff]   ;;  %v4740_v46 = vld [vmem:[#allocation3 + $0xb0] ss:$8 sps:$4 sm:$0xff]   ;;  %v4742_v49 = vld [vmem:[#allocation3 + $0xc4] ss:$8 sps:$4 sm:$0xff]  }
  0xba   : > { %3148 = vmatpush1.bf16.msra.mxu1 %v4698_v18  ;;  %v4741_v47 = vld [vmem:[#allocation3 + $0x4b0] ss:$8 sps:$4 sm:$0xff]   ;;  %v4744_v50 = vld [vmem:[#allocation3 + $0x4c4] ss:$8 sps:$4 sm:$0xff]   ;;  %s6187_s18 = sld [smem:[#allocation24_spill]]  ;;  %vm5790_vm5 = vmor %vm459_vm0, %vm460_vm1  ;;  %s4412_s14 = sshll.u32 %s5426_s27, 2 }
  0xbb   : > { %3360 = vmatpush1.bf16.msra.mxu0 %v4699_v19  ;;  %3149 = vmatprep.subr.bf16.mxu1 %v4700_v20  ;;  %s429_s1 = scalar_lea.vmem %s6186_s19, %s4554_s13  ;;  %v4746_v62 = vld [vmem:[#allocation3 + $0xc0] ss:$8 sps:$4 sm:$0xff]   ;;  %v4748_v2 = vld [vmem:[#allocation3 + $0xd4] ss:$8 sps:$4 sm:$0xff]   ;;  %v5134_v14 = vld [vmem:[#allocation3 + $0x8a4] ss:$8 sps:$4 sm:$0xff]  }
  0xbc   : > { %3361 = vmatprep.subr.bf16.mxu0 %v4702_v21  ;;  %s5761_s12 = scalar_lea.vmem %s429_s1, %s4422_s6  ;;  %v4747_v63 = vld [vmem:[#allocation3 + $0x4c0] ss:$8 sps:$4 sm:$0xff]   ;;  %v4750_v3 = vld [vmem:[#allocation3 + $0x4d4] ss:$8 sps:$4 sm:$0xff]   ;;  %s4413_s2 = sshll.u32 %s5430_s28, 3 }
  0xbd   : > { %v443_v48 = vld [vmem:[%s5761_s12] sm:$0xf]  ;;  %v444_v51 = vld [vmem:[%s5761_s12 + $0x8] sm:$0xf]  ;;  %v452_v53 = vld [vmem:[%s5761_s12 + $0x4] sm:$0x1]  ;;  %s6012_s16 = sadd.s32 %s4413_s2, %s4412_s14 }
  0xbe   : > { %3150 = vmatpush1.bf16.msra.mxu1 %v4704_v22  ;;  %447 = vst [vmem:[#allocation2] sm:$0xf] %v443_v48  ;;  %v451_v52 = vld [vmem:[%s5761_s12] sm:$0xf]  ;;  %448 = vst [vmem:[#allocation2 + $0x48] sm:$0xf] %v444_v51 }
  0xbf   : > { %3362 = vmatpush1.bf16.msra.mxu0 %v4705_v23  ;;  %3151 = vmatprep.subr.bf16.mxu1 %v4706_v24  ;;  %v453_v54 = vld [vmem:[%s5761_s12 + $0x8] sm:$0xf]  ;;  %v454_v55 = vld [vmem:[%s5761_s12 + $0xc] sm:$0x1]  ;;  %v463_v56 = vshrl.u32 %v451_v52, 16  ;;  %v466_v57 = vshll.u32 %v451_v52, 16 }
  0xc0   : > { %3363 = vmatprep.subr.bf16.mxu0 %v4708_v25  ;;  %s434_s4 = scalar_lea.vmem %s6187_s18, %s4554_s13  ;;  %v472_v58 = vshll.u32 %v452_v53, 16  ;;  %v477_v59 = vshrl.u32 %v453_v54, 16  ;;  %v480_v60 = vshll.u32 %v453_v54, 16  ;;  %v486_v61 = vshll.u32 %v454_v55, 16  ;;  %v4017_v9 = vld [vmem:[%s5761_s12 + $0x10] sm:$0xe] }
  0xc1   : > { %v465_v0 = vrot.slane %v463_v56, 4  ;;  %v468_v1 = vrot.slane %v466_v57, 5  ;;  %s5776_s15 = scalar_lea.vmem %s434_s4, %s4422_s6  ;;  %v4018_v11 = vld [vmem:[%s5761_s12 + $0x14] sm:$0x1]  ;;  %v4019_v12 = vld [vmem:[%s5761_s12 + $0x18] sm:$0xe] }
  0xc2   : > { %3152 = vmatpush1.bf16.msra.mxu1 %v4710_v26  ;;  %v474_v4 = vrot.slane %v472_v58, 5  ;;  %v479_v5 = vrot.slane %v477_v59, 4  ;;  %v482_v6 = vrot.slane %v480_v60, 5  ;;  %v488_v7 = vrot.slane %v486_v61, 5  ;;  %v4020_v13 = vld [vmem:[%s5761_s12 + $0x1c] sm:$0x1] }
  0xc3   : > { %3364 = vmatpush1.bf16.msra.mxu0 %v4711_v27  ;;  %3153 = vmatprep.subr.bf16.mxu1 %v4712_v28  ;;  %v469_v10 = vor.u32 %v468_v1, %v465_v0  ;;  %v4025_v16 = vrot.slane %v4017_v9, 9  ;;  %v795_v17 = vrot.slane %v4018_v11, 5  ;;  %v4026_v18 = vrot.slane %v4019_v12, 9  ;;  %v819_v19 = vld [vmem:[%s5776_s15] sm:$0xf]  ;;  %s3965_s8 = sshll.u32 %s5739_s7, 5 }
  0xc4   : > { %3365 = vmatprep.subr.bf16.mxu0 %v4714_v29  ;;  %v483_v15 = vor.u32 %v482_v6, %v479_v5  ;;  %v799_v21 = vrot.slane %v4020_v13, 5  ;;  %v820_v22 = vld [vmem:[%s5776_s15 + $0x8] sm:$0xf]  ;;  %823 = vst [vmem:[#allocation2 + $0x24] sm:$0xf] %v819_v19  ;;  %s3966_s20 = sshll.u32 %s5739_s7, 4 }
  0xc5   : > { %v470_v20 = vrot.slane %v469_v10, 4  ;;  %v796_v24 = vsel %vm5780_vm4, %v4025_v16, %v795_v17  ;;  %824 = vst [vmem:[#allocation2 + $0x6c] sm:$0xf] %v820_v22  ;;  %v4752_v25 = vld [vmem:[#allocation3 + $0xd0] ss:$8 sps:$4 sm:$0xff]   ;;  %s4414_s24 = sshll.u32 %s6012_s16, 6 }
  0xc6   : > { %3154 = vmatpush1.bf16.msra.mxu1 %v4716_v30  ;;  %v484_v23 = vrot.slane %v483_v15, 4  ;;  %v4753_v26 = vld [vmem:[#allocation3 + $0x4d0] ss:$8 sps:$4 sm:$0xff]   ;;  %v800_v28 = vsel %vm5780_vm4, %v4026_v18, %v799_v21  ;;  %813 = vst [vmem:[#allocation2 + $0x20] sm:$0xf] %v796_v24  ;;  %s374_s13 = scalar_lea.vmem [#allocation9], %s3965_s8 }
  0xc7   : > { %3366 = vmatpush1.bf16.msra.mxu0 %v4717_v31  ;;  %3155 = vmatprep.subr.bf16.mxu1 %v4718_v32  ;;  %v475_v27 = vsel %vm5790_vm5, %v470_v20, %v474_v4  ;;  %v4754_v29 = vld [vmem:[#allocation3 + $0xe4] ss:$8 sps:$4 sm:$0xff]   ;;  %814 = vst [vmem:[#allocation2 + $0x68] sm:$0xf] %v800_v28  ;;  %v4758_v32 = vld [vmem:[#allocation3 + $0xe0] ss:$8 sps:$4 sm:$0xff]  }
  0xc8   : > { %3367 = vmatprep.subr.bf16.mxu0 %v4720_v33  ;;  %v4756_v30 = vld [vmem:[#allocation3 + $0x4e4] ss:$8 sps:$4 sm:$0xff]   ;;  %v489_v31 = vsel %vm5790_vm5, %v484_v23, %v488_v7  ;;  %522 = vst [vmem:[#allocation2 + $0x4] sm:$0xf] %v475_v27  ;;  %v4759_v33 = vld [vmem:[#allocation3 + $0x4e0] ss:$8 sps:$4 sm:$0xff]  }
  0xc9   : > { %523 = vst [vmem:[#allocation2 + $0x4c] sm:$0xf] %v489_v31  ;;  %v4778_v48 = vld [vmem:[#allocation3 + $0x110] ss:$8 sps:$4 sm:$0xff]   ;;  %v4789_v51 = vld [vmem:[#allocation3 + $0x524] ss:$8 sps:$4 sm:$0xff]  }
  0xca   : > { %3156 = vmatpush1.bf16.msra.mxu1 %v4722_v34  ;;  %v4760_v34 = vld [vmem:[#allocation3 + $0xf4] ss:$8 sps:$4 sm:$0xff]   ;;  %v4784_v52 = vld [vmem:[#allocation3 + $0x120] ss:$8 sps:$4 sm:$0xff]   ;;  %v4790_v56 = vld [vmem:[#allocation3 + $0x130] ss:$8 sps:$4 sm:$0xff]  }
  0xcb   : > { %3368 = vmatpush1.bf16.msra.mxu0 %v4723_v35  ;;  %3157 = vmatprep.subr.bf16.mxu1 %v4724_v36  ;;  %v4762_v35 = vld [vmem:[#allocation3 + $0x4f4] ss:$8 sps:$4 sm:$0xff]   ;;  %v4764_v36 = vld [vmem:[#allocation3 + $0xf0] ss:$8 sps:$4 sm:$0xff]   ;;  %v4787_v53 = vld [vmem:[#allocation3 + $0x520] ss:$8 sps:$4 sm:$0xff]  }
  0xcc   : > { %3369 = vmatprep.subr.bf16.mxu0 %v4726_v37  ;;  %v4765_v37 = vld [vmem:[#allocation3 + $0x4f0] ss:$8 sps:$4 sm:$0xff]   ;;  %v4792_v54 = vld [vmem:[#allocation3 + $0x134] ss:$8 sps:$4 sm:$0xff]   ;;  %v4798_v58 = vld [vmem:[#allocation3 + $0x144] ss:$8 sps:$4 sm:$0xff]  }
  0xcd   : > { %v4795_v55 = vld [vmem:[#allocation3 + $0x534] ss:$8 sps:$4 sm:$0xff]   ;;  %v4793_v57 = vld [vmem:[#allocation3 + $0x530] ss:$8 sps:$4 sm:$0xff]   ;;  %v4801_v59 = vld [vmem:[#allocation3 + $0x544] ss:$8 sps:$4 sm:$0xff]  }
  0xce   : > { %3158 = vmatpush1.bf16.msra.mxu1 %v4728_v38  ;;  %v4771_v38 = vld [vmem:[#allocation3 + $0x104] ss:$8 sps:$4 sm:$0xff]   ;;  %v4796_v60 = vld [vmem:[#allocation3 + $0x140] ss:$8 sps:$4 sm:$0xff]   ;;  %v4802_v0 = vld [vmem:[#allocation3 + $0x150] ss:$8 sps:$4 sm:$0xff]  }
  0xcf   : > { %3370 = vmatpush1.bf16.msra.mxu0 %v4729_v39  ;;  %3159 = vmatprep.subr.bf16.mxu1 %v4730_v40  ;;  %v4777_v40 = vld [vmem:[#allocation3 + $0x504] ss:$8 sps:$4 sm:$0xff]   ;;  %v4799_v61 = vld [vmem:[#allocation3 + $0x540] ss:$8 sps:$4 sm:$0xff]   ;;  %v4805_v1 = vld [vmem:[#allocation3 + $0x550] ss:$8 sps:$4 sm:$0xff]  }
  0xd0   : > { %3371 = vmatprep.subr.bf16.mxu0 %v4732_v41  ;;  %v4768_v39 = vld [vmem:[#allocation2 + $0x4] ss:$72 sps:$4 sm:$0xff]   ;;  %v4772_v41 = vld [vmem:[#allocation2 + $0x20] ss:$72 sps:$4 sm:$0xff]   ;;  %v4816_v6 = vld [vmem:[#allocation3 + $0x174] ss:$8 sps:$4 sm:$0xff]  }
  0xd1   : > { %3171 = vmatprep.mubr.bf16.mxu1 %v4768_v39  ;;  %v4808_v4 = vld [vmem:[#allocation3 + $0x160] ss:$8 sps:$4 sm:$0xff]   ;;  %v4819_v7 = vld [vmem:[#allocation3 + $0x574] ss:$8 sps:$4 sm:$0xff]   ;;  %v445_v9 = vld [vmem:[%s5761_s12 + $0x10] sm:$0xf] }
  0xd2   : > { %3160 = vmatpush1.bf16.msra.mxu1 %v4734_v42  ;;  %v4774_v42 = vld [vmem:[#allocation2 + $0x24] ss:$72 sps:$4 sm:$0xff]   ;;  %v4811_v5 = vld [vmem:[#allocation3 + $0x560] ss:$8 sps:$4 sm:$0xff]   ;;  %v446_v10 = vld [vmem:[%s5761_s12 + $0x18] sm:$0xf] }
  0xd3   : > { %3372 = vmatpush1.bf16.msra.mxu0 %v4735_v43  ;;  %3161 = vmatprep.subr.bf16.mxu1 %v4736_v44  ;;  %v4766_v43 = vld [vmem:[#allocation2] ss:$72 sps:$4 sm:$0xff]   ;;  %449 = vst [vmem:[#allocation2 + $0x90] sm:$0xf] %v445_v9  ;;  %v455_v11 = vld [vmem:[%s5761_s12 + $0x10] sm:$0xf] }
  0xd4   : > { %3373 = vmatprep.subr.bf16.mxu0 %v4738_v45  ;;  %v4769_v44 = vld [vmem:[#allocation3 + $0x100] ss:$8 sps:$4 sm:$0xff]   ;;  %3383 = vmatprep.mubr.bf16.mxu0 %v4774_v42  ;;  %v456_v12 = vld [vmem:[%s5761_s12 + $0x14] sm:$0x1]  ;;  %v4814_v13 = vld [vmem:[#allocation3 + $0x170] ss:$8 sps:$4 sm:$0xff]  }
  0xd5   : > { %v4775_v45 = vld [vmem:[#allocation3 + $0x500] ss:$8 sps:$4 sm:$0xff]   ;;  %v4817_v15 = vld [vmem:[#allocation3 + $0x570] ss:$8 sps:$4 sm:$0xff]   ;;  %450 = vst [vmem:[#allocation2 + $0xd8] sm:$0xf] %v446_v10 }
  0xd6   : > { %3162 = vmatpush1.bf16.msra.mxu1 %v4740_v46  ;;  %v4780_v46 = vld [vmem:[#allocation3 + $0x114] ss:$8 sps:$4 sm:$0xff]   ;;  %v457_v16 = vld [vmem:[%s5761_s12 + $0x18] sm:$0xf]  ;;  %v491_v18 = vshrl.u32 %v455_v11, 16  ;;  %v494_v19 = vshll.u32 %v455_v11, 16 }
  0xd7   : > { %3374 = vmatpush1.bf16.msra.mxu0 %v4741_v47  ;;  %3163 = vmatprep.subr.bf16.mxu1 %v4742_v49  ;;  %v4783_v47 = vld [vmem:[#allocation3 + $0x514] ss:$8 sps:$4 sm:$0xff]   ;;  %v4781_v49 = vld [vmem:[#allocation3 + $0x510] ss:$8 sps:$4 sm:$0xff]   ;;  %v500_v20 = vshll.u32 %v456_v12, 16  ;;  %v505_v21 = vshrl.u32 %v457_v16, 16 }
  0xd8   : > { %3375 = vmatprep.subr.bf16.mxu0 %v4744_v50  ;;  %v4786_v50 = vld [vmem:[#allocation3 + $0x124] ss:$8 sps:$4 sm:$0xff]   ;;  %v458_v17 = vld [vmem:[%s5761_s12 + $0x1c] sm:$0x1]  ;;  %v508_v22 = vshll.u32 %v457_v16, 16  ;;  %v496_v27 = vrot.slane %v494_v19, 5 }
  0xd9   : > { %v514_v23 = vshll.u32 %v458_v17, 16  ;;  %v4822_v24 = vld [vmem:[#allocation3 + $0x184] ss:$8 sps:$4 sm:$0xff]   ;;  %v502_v28 = vrot.slane %v500_v20, 5  ;;  %v827_v10 = vld [vmem:[%s5776_s15] sm:$0xf] }
  0xda   : > { %3164 = vmatpush1.bf16.msra.mxu1 %v4746_v62  ;;  %v4804_v62 = vld [vmem:[#allocation3 + $0x154] ss:$8 sps:$4 sm:$0xff]   ;;  %v828_v12 = vld [vmem:[%s5776_s15 + $0x4] sm:$0x1]  ;;  %v836_v16 = vshrl.u32 %v827_v10, 16  ;;  %v839_v17 = vshll.u32 %v827_v10, 16 }
  0xdb   : > { %3376 = vmatpush1.bf16.msra.mxu0 %v4747_v63  ;;  %3165 = vmatprep.subr.bf16.mxu1 %v4748_v2  ;;  %v4807_v63 = vld [vmem:[#allocation3 + $0x554] ss:$8 sps:$4 sm:$0xff]   ;;  %v4810_v2 = vld [vmem:[#allocation3 + $0x164] ss:$8 sps:$4 sm:$0xff]   ;;  %v516_v31 = vrot.slane %v514_v23, 5  ;;  %s6192_s11 = sld [smem:[#allocation27_spill]] }
  0xdc   : > { %3377 = vmatprep.subr.bf16.mxu0 %v4750_v3  ;;  %v4813_v3 = vld [vmem:[#allocation3 + $0x564] ss:$8 sps:$4 sm:$0xff]   ;;  %v4838_v20 = vld [vmem:[#allocation3 + $0x1b0] ss:$8 sps:$4 sm:$0xff]   ;;  %v4883_v10 = vld [vmem:[#allocation3 + $0x600] ss:$8 sps:$4 sm:$0xff]  }
  0xdd   : > { %v5126_v8 = vld [vmem:[#allocation3 + $0x880] ss:$8 sps:$4 sm:$0xff]   ;;  %s6193_s19 = sld [smem:[#allocation20_spill]]  ;;  %s6024_s1 = scalar_lea.vmem [#allocation11], %s3966_s20 }
  0xde   : > { %3166 = vmatpush1.bf16.msra.mxu1 %v4752_v25  ;;  %v4825_v25 = vld [vmem:[#allocation3 + $0x584] ss:$8 sps:$4 sm:$0xff]   ;;  %s3735_s6 = sshll.u32 %s6024_s1, 4  ;;  %s5452_s22 = smov [#allocation10]   ;;  %s6063_s6 = int_to_ptr.vmem [resolvable:$true] %s3735_s6 }
  0xdf   : > { %3378 = vmatpush1.bf16.msra.mxu0 %v4753_v26  ;;  %3167 = vmatprep.subr.bf16.mxu1 %v4754_v29  ;;  %v493_v26 = vrot.slane %v491_v18, 4  ;;  %v507_v29 = vrot.slane %v505_v21, 4  ;;  %v845_v18 = vshll.u32 %v828_v12, 16  ;;  %v4841_v21 = vld [vmem:[#allocation3 + $0x5b0] ss:$8 sps:$4 sm:$0xff]   ;;  %s5308_s18 = sshll.u32 %s5452_s22, 4  ;;  %s5309_s18 = int_to_ptr.vmem [resolvable:$false] %s5308_s18 }
  0xe0   : > { %3379 = vmatprep.subr.bf16.mxu0 %v4756_v30  ;;  %v510_v30 = vrot.slane %v508_v22, 5  ;;  %v4891_v12 = vld [vmem:[#allocation3 + $0x614] ss:$8 sps:$4 sm:$0xff]   ;;  %s5310_s4 = scalar_lea.vmem %s5309_s18, 512 }
  0xe1   : > { %s6020_s17 = scalar_lea.hbm %s6192_s11, %s4414_s24 }
  0xe2   : > { %3168 = vmatpush1.bf16.msra.mxu1 %v4758_v32  ;;  %v4021_v32 = vld [vmem:[%s5761_s12 + $0x20] sm:$0xe]  ;;  %v511_v39 = vor.u32 %v510_v30, %v507_v29  ;;  %v838_v29 = vrot.slane %v836_v16, 4  ;;  %v4894_v16 = vld [vmem:[#allocation3 + $0x224] ss:$8 sps:$4 sm:$0xff]  }
  0xe3   : > { %3380 = vmatpush1.bf16.msra.mxu0 %v4759_v33  ;;  %3169 = vmatprep.subr.bf16.mxu1 %v4760_v34  ;;  %v4820_v33 = vld [vmem:[#allocation3 + $0x180] ss:$8 sps:$4 sm:$0xff]   ;;  %p6194_p6 = scmp.ne.s32.totalorder %s6193_s19, 0 }
  0xe4   : > { %3381 = vmatprep.subr.bf16.mxu0 %v4762_v35  ;;  %v4823_v34 = vld [vmem:[#allocation3 + $0x580] ss:$8 sps:$4 sm:$0xff]   ;;  %v497_v35 = vor.u32 %v496_v27, %v493_v26  ;;  %v4849_v26 = vld [vmem:[#allocation3 + $0x5c4] ss:$8 sps:$4 sm:$0xff]  }
  0xe6   : > { %3170 = vmatpush1.bf16.msra.mxu1 %v4764_v36  ;;  %v4022_v36 = vld [vmem:[%s5761_s12 + $0x24] sm:$0x1] }
  0xe7   : > { %3382 = vmatpush1.bf16.msra.mxu0 %v4765_v37  ;;  %3192 = vmatprep.subr.bf16.mxu1 %v4771_v38  ;;  %v4023_v37 = vld [vmem:[%s5761_s12 + $0x28] sm:$0xe]  ;;  %v4024_v38 = vld [vmem:[%s5761_s12 + $0x2c] sm:$0x1] }
  0xe8   : > { %3404 = vmatprep.subr.bf16.mxu0 %v4777_v40  ;;  %v4027_v40 = vrot.slane %v4021_v32, 9  ;;  %v4028_v42 = vrot.slane %v4023_v37, 9  ;;  %v4844_v37 = vld [vmem:[#allocation3 + $0x1c0] ss:$8 sps:$4 sm:$0xff]  }
  0xe9   : > { %3172 = vmatmul.mubr.bf16.vlgmr.msra.gmra.mrb[0].mxu1 %v4766_v43  ;;  %v821_v43 = vld [vmem:[%s5776_s15 + $0x10] sm:$0xf] }
  0xea   : > { %3384 = vmatmul.mubr.bf16.vlgmr.msra.gmra.mrb[0].mxu0 %v4772_v41  ;;  %3193 = vmatpush1.bf16.msra.mxu1 %v4769_v44  ;;  %v803_v41 = vrot.slane %v4022_v36, 5  ;;  %v498_v44 = vrot.slane %v497_v35, 4  ;;  %825 = vst [vmem:[#allocation2 + $0xb4] sm:$0xf] %v821_v43  ;;  %v899_v35 = vld [vmem:[%s5776_s15] sm:$0xe] }
  0xeb   : > { %3405 = vmatpush1.bf16.msra.mxu0 %v4775_v45  ;;  %3194 = vmatprep.subr.bf16.mxu1 %v4780_v46  ;;  %v807_v45 = vrot.slane %v4024_v38, 5  ;;  %v822_v46 = vld [vmem:[%s5776_s15 + $0x18] sm:$0xf]  ;;  %v900_v36 = vld [vmem:[%s5776_s15 + $0x4] sm:$0x1] }
  0xec   : > { %3406 = vmatprep.subr.bf16.mxu0 %v4783_v47  ;;  %v4828_v47 = vld [vmem:[#allocation3 + $0x194] ss:$8 sps:$4 sm:$0xff]   ;;  %826 = vst [vmem:[#allocation2 + $0xfc] sm:$0xf] %v822_v46  ;;  %v917_v43 = vrot.slane %v900_v36, 5 }
  0xed   : > { %v532_v36 = vld [vmem:[%s5761_s12 + $0x18] sm:$0xe] }
  0xee   : > { %3195 = vmatpush1.bf16.msra.mxu1 %v4778_v48  ;;  %v4831_v48 = vld [vmem:[#allocation3 + $0x594] ss:$8 sps:$4 sm:$0xff]  }
  0xef   : > { %3407 = vmatpush1.bf16.msra.mxu0 %v4781_v49  ;;  %3196 = vmatprep.subr.bf16.mxu1 %v4786_v50  ;;  %v512_v49 = vrot.slane %v511_v39, 4  ;;  %v804_v50 = vsel %vm5780_vm4, %v4027_v40, %v803_v41  ;;  %v901_v40 = vld [vmem:[%s5776_s15 + $0x8] sm:$0xe]  ;;  %v902_v41 = vld [vmem:[%s5776_s15 + $0xc] sm:$0x1] }
  0xf0   : > { %3408 = vmatprep.subr.bf16.mxu0 %v4789_v51  ;;  %v4826_v51 = vld [vmem:[#allocation3 + $0x190] ss:$8 sps:$4 sm:$0xff]   ;;  %815 = vst [vmem:[#allocation2 + $0xb0] sm:$0xf] %v804_v50  ;;  %v921_v46 = vrot.slane %v902_v41, 5 }
  0xf2   : > { %3197 = vmatpush1.bf16.msra.mxu1 %v4784_v52  ;;  %v4829_v52 = vld [vmem:[#allocation3 + $0x590] ss:$8 sps:$4 sm:$0xff]  }
  0xf3   : > { %3409 = vmatpush1.bf16.msra.mxu0 %v4787_v53  ;;  %3198 = vmatprep.subr.bf16.mxu1 %v4792_v54  ;;  %v503_v53 = vsel %vm5790_vm5, %v498_v44, %v502_v28  ;;  %v808_v54 = vsel %vm5780_vm4, %v4028_v42, %v807_v45  ;;  %v4861_v22 = vld [vmem:[#allocation2 + $0xb4] ss:$72 sps:$4 sm:$0xff]   ;;  %v4866_v28 = vld [vmem:[#allocation2 + $0x90] ss:$72 sps:$4 sm:$0xff]   ;;  %v4030_v42 = vrot.slane %v899_v35, 9  ;;  %v4031_v45 = vrot.slane %v901_v40, 9 }
  0xf4   : > { %3410 = vmatprep.subr.bf16.mxu0 %v4795_v55  ;;  %v4834_v55 = vld [vmem:[#allocation3 + $0x1a4] ss:$8 sps:$4 sm:$0xff]   ;;  %524 = vst [vmem:[#allocation2 + $0x94] sm:$0xf] %v503_v53  ;;  %816 = vst [vmem:[#allocation2 + $0xf8] sm:$0xf] %v808_v54  ;;  %3393 = vmatprep.mubr.bf16.mxu0 %v4861_v22 }
  0xf5   : > { %v918_v50 = vsel %vm5780_vm4, %v4030_v42, %v917_v43  ;;  %v922_v54 = vsel %vm5780_vm4, %v4031_v45, %v921_v46  ;;  %v4898_v22 = vld [vmem:[#allocation3 + $0x230] ss:$8 sps:$4 sm:$0xff]   ;;  %v531_v35 = vld [vmem:[%s5761_s12 + $0x14] sm:$0x1]  ;;  %v3976_v42 = vrot.slane %v532_v36, 9 }
  0xf6   : > { %3199 = vmatpush1.bf16.msra.mxu1 %v4790_v56  ;;  %v4837_v56 = vld [vmem:[#allocation3 + $0x5a4] ss:$8 sps:$4 sm:$0xff]   ;;  %935 = vst [vmem:[#allocation2 + $0x2c] sm:$0xf] %v918_v50  ;;  %936 = vst [vmem:[#allocation2 + $0x74] sm:$0xf] %v922_v54 }
  0xf7   : > { %3411 = vmatpush1.bf16.msra.mxu0 %v4793_v57  ;;  %3200 = vmatprep.subr.bf16.mxu1 %v4798_v58  ;;  %v517_v57 = vsel %vm5790_vm5, %v512_v49, %v516_v31  ;;  %v526_v58 = vld [vmem:[%s5761_s12] sm:$0xe]  ;;  %v841_v31 = vrot.slane %v839_v17, 5  ;;  %v4897_v17 = vld [vmem:[#allocation3 + $0x624] ss:$8 sps:$4 sm:$0xff]   ;;  %v555_v41 = vrot.slane %v531_v35, 5 }
  0xf8   : > { %3412 = vmatprep.subr.bf16.mxu0 %v4801_v59  ;;  %525 = vst [vmem:[#allocation2 + $0xdc] sm:$0xf] %v517_v57  ;;  %v527_v59 = vld [vmem:[%s5761_s12 + $0x4] sm:$0x1]  ;;  %v3982_v45 = vld [vmem:[%s5761_s12 + $0x20] sm:$0xf] }
  0xf9   : > { %v842_v38 = vor.u32 %v841_v31, %v838_v29  ;;  %v4915_v29 = vld [vmem:[#allocation3 + $0x654] ss:$8 sps:$4 sm:$0xff]   ;;  %v4913_v31 = vld [vmem:[#allocation3 + $0x650] ss:$8 sps:$4 sm:$0xff]   ;;  %580 = vst [vmem:[#allocation2 + $0xe4] sm:$0xf] %v3982_v45 }
  0xfa   : > { %3201 = vmatpush1.bf16.msra.mxu1 %v4796_v60  ;;  %v528_v60 = vld [vmem:[%s5761_s12 + $0x8] sm:$0xe]  ;;  %v4924_v46 = vld [vmem:[#allocation3 + $0x274] ss:$8 sps:$4 sm:$0xff]   ;;  %v4922_v54 = vld [vmem:[#allocation3 + $0x270] ss:$8 sps:$4 sm:$0xff]  }
  0xfb   : > { %3413 = vmatpush1.bf16.msra.mxu0 %v4799_v61  ;;  %3202 = vmatprep.subr.bf16.mxu1 %v4804_v62  ;;  %v529_v61 = vld [vmem:[%s5761_s12 + $0xc] sm:$0x1]  ;;  %v3973_v62 = vrot.slane %v526_v58, 9  ;;  %v4867_v30 = vld [vmem:[#allocation2 + $0xb0] ss:$72 sps:$4 sm:$0xff]   ;;  %v843_v49 = vrot.slane %v842_v38, 4 }
  0xfc   : > { %3414 = vmatprep.subr.bf16.mxu0 %v4807_v63  ;;  %v547_v63 = vrot.slane %v527_v59, 5  ;;  %3394 = vmatmul.mubr.bf16.gmra.mrb[4].mxu0 %v4867_v30  ;;  %v4853_v58 = vld [vmem:[#allocation3 + $0x5d0] ss:$8 sps:$4 sm:$0xff]   ;;  %v4860_v59 = vld [vmem:[#allocation3 + $0x1e4] ss:$8 sps:$4 sm:$0xff]  }
  0xfd   : > { %v4910_v30 = vld [vmem:[#allocation3 + $0x250] ss:$8 sps:$4 sm:$0xff]   ;;  %v4919_v38 = vld [vmem:[#allocation3 + $0x660] ss:$8 sps:$4 sm:$0xff]   ;;  %v3984_v35 = vld [vmem:[%s5761_s12 + $0xc] sm:$0x1] }
  0xfe   : > { %3203 = vmatpush1.bf16.msra.mxu1 %v4802_v0  ;;  %v3974_v0 = vrot.slane %v528_v60, 9  ;;  %v548_v9 = vsel %vm5780_vm4, %v3973_v62, %v547_v63  ;;  %v4865_v60 = vld [vmem:[#allocation3 + $0x5e4] ss:$8 sps:$4 sm:$0xff]   ;;  %v4863_v62 = vld [vmem:[#allocation3 + $0x5e0] ss:$8 sps:$4 sm:$0xff]  }
  0xff   : > { %3415 = vmatpush1.bf16.msra.mxu0 %v4805_v1  ;;  %3204 = vmatprep.subr.bf16.mxu1 %v4810_v2  ;;  %v4832_v1 = vld [vmem:[#allocation3 + $0x1a0] ss:$8 sps:$4 sm:$0xff]   ;;  %565 = vst [vmem:[#allocation2 + $0x8] sm:$0xf] %v548_v9  ;;  %v4856_v27 = vld [vmem:[#allocation2 + $0x94] ss:$72 sps:$4 sm:$0xff]  }
 0x100   : > { %3416 = vmatprep.subr.bf16.mxu0 %v4813_v3  ;;  %v4835_v2 = vld [vmem:[#allocation3 + $0x5a0] ss:$8 sps:$4 sm:$0xff]   ;;  %v551_v3 = vrot.slane %v529_v61, 5  ;;  %3181 = vmatprep.mubr.bf16.mxu1 %v4856_v27  ;;  %v4870_v63 = vld [vmem:[#allocation3 + $0x1f4] ss:$8 sps:$4 sm:$0xff]  }
 0x101   : > { %3182 = vmatmul.mubr.bf16.gmra.mrb[4].mxu1 %v4866_v28  ;;  %v4858_v61 = vld [vmem:[#allocation3 + $0x1e0] ss:$8 sps:$4 sm:$0xff]   ;;  %v4912_v28 = vld [vmem:[#allocation3 + $0x254] ss:$8 sps:$4 sm:$0xff]   ;;  %v3985_v36 = vld [vmem:[%s5761_s12 + $0x10] sm:$0xf] }
 0x102   : > { %3205 = vmatpush1.bf16.msra.mxu1 %v4808_v4  ;;  %v3979_v4 = vld [vmem:[%s5761_s12 + $0x8] sm:$0xf]  ;;  %v552_v11 = vsel %vm5780_vm4, %v3974_v0, %v551_v3  ;;  %v4873_v0 = vld [vmem:[#allocation3 + $0x5f4] ss:$8 sps:$4 sm:$0xff]   ;;  %v4871_v3 = vld [vmem:[#allocation3 + $0x5f0] ss:$8 sps:$4 sm:$0xff]  }
 0x103   : > { %3417 = vmatpush1.bf16.msra.mxu0 %v4811_v5  ;;  %3206 = vmatprep.subr.bf16.mxu1 %v4816_v6  ;;  %v3980_v5 = vld [vmem:[%s5761_s12 + $0x10] sm:$0xf]  ;;  %v4840_v6 = vld [vmem:[#allocation3 + $0x1b4] ss:$8 sps:$4 sm:$0xff]   ;;  %577 = vst [vmem:[#allocation2 + $0xc] sm:$0xf] %v3979_v4 }
 0x104   : > { %3418 = vmatprep.subr.bf16.mxu0 %v4819_v7  ;;  %v4843_v7 = vld [vmem:[#allocation3 + $0x5b4] ss:$8 sps:$4 sm:$0xff]   ;;  %578 = vst [vmem:[#allocation2 + $0x54] sm:$0xf] %v3980_v5  ;;  %566 = vst [vmem:[#allocation2 + $0x50] sm:$0xf] %v552_v11 }
 0x105   : > { %v4879_v4 = vld [vmem:[#allocation3 + $0x204] ss:$8 sps:$4 sm:$0xff]   ;;  %v4888_v11 = vld [vmem:[#allocation3 + $0x214] ss:$8 sps:$4 sm:$0xff]   ;;  %v4907_v27 = vld [vmem:[#allocation3 + $0x640] ss:$8 sps:$4 sm:$0xff]  }
 0x106   : > { %3207 = vmatpush1.bf16.msra.mxu1 %v4814_v13  ;;  %v829_v13 = vld [vmem:[%s5776_s15 + $0x8] sm:$0xf]  ;;  %v4885_v5 = vld [vmem:[#allocation3 + $0x604] ss:$8 sps:$4 sm:$0xff]  }
 0x107   : > { %3419 = vmatpush1.bf16.msra.mxu0 %v4817_v15  ;;  %3208 = vmatprep.subr.bf16.mxu1 %v4822_v24  ;;  %v830_v15 = vld [vmem:[%s5776_s15 + $0xc] sm:$0x1]  ;;  %v850_v19 = vshrl.u32 %v829_v13, 16  ;;  %v853_v23 = vshll.u32 %v829_v13, 16  ;;  %v4886_v13 = vld [vmem:[#allocation3 + $0x210] ss:$8 sps:$4 sm:$0xff]  }
 0x108   : > { %3420 = vmatprep.subr.bf16.mxu0 %v4825_v25  ;;  %v859_v24 = vshll.u32 %v830_v15, 16  ;;  %v4846_v25 = vld [vmem:[#allocation3 + $0x1c4] ss:$8 sps:$4 sm:$0xff]   ;;  %v4889_v15 = vld [vmem:[#allocation3 + $0x610] ss:$8 sps:$4 sm:$0xff]  }
 0x109   : > { %v852_v32 = vrot.slane %v850_v19, 4  ;;  %v4895_v19 = vld [vmem:[#allocation3 + $0x620] ss:$8 sps:$4 sm:$0xff]   ;;  %v3992_v45 = vld [vmem:[%s5761_s12 + $0xc] sm:$0x1] }
 0x10a   : > { %3209 = vmatpush1.bf16.msra.mxu1 %v4820_v33  ;;  %v855_v33 = vrot.slane %v853_v23, 5  ;;  %v861_v44 = vrot.slane %v859_v24, 5  ;;  %v4901_v23 = vld [vmem:[#allocation3 + $0x630] ss:$8 sps:$4 sm:$0xff]   ;;  %v4906_v24 = vld [vmem:[#allocation3 + $0x244] ss:$8 sps:$4 sm:$0xff]  }
 0x10b   : > { %3421 = vmatpush1.bf16.msra.mxu0 %v4823_v34  ;;  %3210 = vmatprep.subr.bf16.mxu1 %v4828_v47  ;;  %v847_v34 = vrot.slane %v845_v18, 5  ;;  %v4847_v47 = vld [vmem:[#allocation3 + $0x5c0] ss:$8 sps:$4 sm:$0xff]  }
 0x10c   : > { %3422 = vmatprep.subr.bf16.mxu0 %v4831_v48  ;;  %v856_v39 = vor.u32 %v855_v33, %v852_v32  ;;  %v4876_v48 = vld [vmem:[#allocation2 + $0xc] ss:$72 sps:$4 sm:$0xff]   ;;  %v4892_v18 = vld [vmem:[#allocation3 + $0x220] ss:$8 sps:$4 sm:$0xff]  }
 0x10d   : > { %3224 = vmatprep.mubr.bf16.mxu1 %v4876_v48  ;;  %v4918_v32 = vld [vmem:[#allocation3 + $0x264] ss:$8 sps:$4 sm:$0xff]  }
 0x10e   : > { %3211 = vmatpush1.bf16.msra.mxu1 %v4826_v51  ;;  %v4852_v51 = vld [vmem:[#allocation3 + $0x1d4] ss:$8 sps:$4 sm:$0xff]   ;;  %v857_v53 = vrot.slane %v856_v39, 4  ;;  %v4921_v33 = vld [vmem:[#allocation3 + $0x664] ss:$8 sps:$4 sm:$0xff]  }
 0x10f   : > { %3423 = vmatpush1.bf16.msra.mxu0 %v4829_v52  ;;  %3212 = vmatprep.subr.bf16.mxu1 %v4834_v55  ;;  %v4855_v52 = vld [vmem:[#allocation3 + $0x5d4] ss:$8 sps:$4 sm:$0xff]   ;;  %v848_v55 = vsel %vm5790_vm5, %v843_v49, %v847_v34  ;;  %v530_v34 = vld [vmem:[%s5761_s12 + $0x10] sm:$0xe] }
 0x110   : > { %3424 = vmatprep.subr.bf16.mxu0 %v4837_v56  ;;  %v4850_v56 = vld [vmem:[#allocation3 + $0x1d0] ss:$8 sps:$4 sm:$0xff]   ;;  %v862_v57 = vsel %vm5790_vm5, %v857_v53, %v861_v44  ;;  %895 = vst [vmem:[#allocation2 + $0x28] sm:$0xf] %v848_v55  ;;  %v533_v39 = vld [vmem:[%s5761_s12 + $0x1c] sm:$0x1] }
 0x111   : > { %896 = vst [vmem:[#allocation2 + $0x70] sm:$0xf] %v862_v57  ;;  %v3975_v40 = vrot.slane %v530_v34, 9  ;;  %v559_v43 = vrot.slane %v533_v39, 5  ;;  %v3981_v44 = vld [vmem:[%s5761_s12 + $0x18] sm:$0xf] }
 0x112   : > { %3213 = vmatpush1.bf16.msra.mxu1 %v4832_v1  ;;  %v4868_v1 = vld [vmem:[#allocation3 + $0x1f0] ss:$8 sps:$4 sm:$0xff]   ;;  %579 = vst [vmem:[#allocation2 + $0x9c] sm:$0xf] %v3981_v44  ;;  %v834_v53 = vld [vmem:[%s5776_s15 + $0x1c] sm:$0x1] }
 0x113   : > { %3425 = vmatpush1.bf16.msra.mxu0 %v4835_v2  ;;  %3214 = vmatprep.subr.bf16.mxu1 %v4840_v6  ;;  %v4882_v2 = vld [vmem:[#allocation2 + $0x2c] ss:$72 sps:$4 sm:$0xff]   ;;  %v4877_v6 = vld [vmem:[#allocation3 + $0x200] ss:$8 sps:$4 sm:$0xff]   ;;  %v556_v48 = vsel %vm5780_vm4, %v3975_v40, %v555_v41  ;;  %v831_v49 = vld [vmem:[%s5776_s15 + $0x10] sm:$0xf]  ;;  %v560_v50 = vsel %vm5780_vm4, %v3976_v42, %v559_v43 }
 0x114   : > { %3426 = vmatprep.subr.bf16.mxu0 %v4843_v7  ;;  %3436 = vmatprep.mubr.bf16.mxu0 %v4882_v2  ;;  %v4874_v7 = vld [vmem:[#allocation2 + $0x8] ss:$72 sps:$4 sm:$0xff]   ;;  %567 = vst [vmem:[#allocation2 + $0x98] sm:$0xf] %v556_v48  ;;  %568 = vst [vmem:[#allocation2 + $0xe0] sm:$0xf] %v560_v50 }
 0x115   : > { %v4925_v55 = vld [vmem:[#allocation3 + $0x670] ss:$8 sps:$4 sm:$0xff]   ;;  %v867_v57 = vshll.u32 %v831_v49, 16  ;;  %v3983_v34 = vld [vmem:[%s5761_s12 + $0x8] sm:$0xf]  ;;  %v599_v40 = vshll.u32 %v3984_v35, 16 }
 0x116   : > { %3215 = vmatpush1.bf16.msra.mxu1 %v4838_v20  ;;  %v4900_v20 = vld [vmem:[#allocation3 + $0x234] ss:$8 sps:$4 sm:$0xff]   ;;  %v905_v2 = vld [vmem:[%s5776_s15 + $0x18] sm:$0xe]  ;;  %v593_v39 = vshll.u32 %v3983_v34, 16  ;;  %v604_v41 = vshrl.u32 %v3985_v36, 16 }
 0x117   : > { %3427 = vmatpush1.bf16.msra.mxu0 %v4841_v21  ;;  %3216 = vmatprep.subr.bf16.mxu1 %v4846_v25  ;;  %v4903_v21 = vld [vmem:[#allocation3 + $0x634] ss:$8 sps:$4 sm:$0xff]   ;;  %v4909_v25 = vld [vmem:[#allocation3 + $0x644] ss:$8 sps:$4 sm:$0xff]   ;;  %v607_v42 = vshll.u32 %v3985_v36, 16 }
 0x118   : > { %3428 = vmatprep.subr.bf16.mxu0 %v4849_v26  ;;  %v4880_v9 = vld [vmem:[#allocation2 + $0x28] ss:$72 sps:$4 sm:$0xff]   ;;  %v606_v50 = vrot.slane %v604_v41, 4  ;;  %v4963_v35 = vld [vmem:[#allocation3 + $0x6d4] ss:$8 sps:$4 sm:$0xff]  }
 0x119   : > { %v4904_v26 = vld [vmem:[#allocation3 + $0x240] ss:$8 sps:$4 sm:$0xff]  }
 0x11a   : > { %3217 = vmatpush1.bf16.msra.mxu1 %v4844_v37  ;;  %v4916_v37 = vld [vmem:[#allocation3 + $0x260] ss:$8 sps:$4 sm:$0xff]  }
 0x11b   : > { %3429 = vmatpush1.bf16.msra.mxu0 %v4847_v47  ;;  %3218 = vmatprep.subr.bf16.mxu1 %v4852_v51  ;;  %v4927_v47 = vld [vmem:[#allocation3 + $0x674] ss:$8 sps:$4 sm:$0xff]   ;;  %v3991_v44 = vld [vmem:[%s5761_s12 + $0x8] sm:$0xe] }
 0x11c   : > { %3430 = vmatprep.subr.bf16.mxu0 %v4855_v52  ;;  %v832_v51 = vld [vmem:[%s5776_s15 + $0x14] sm:$0x1]  ;;  %v833_v52 = vld [vmem:[%s5776_s15 + $0x18] sm:$0xf] }
 0x11e   : > { %3219 = vmatpush1.bf16.msra.mxu1 %v4850_v56  ;;  %v864_v56 = vshrl.u32 %v831_v49, 16  ;;  %v595_v49 = vrot.slane %v593_v39, 5 }
 0x11f   : > { %3431 = vmatpush1.bf16.msra.mxu0 %v4853_v58  ;;  %3220 = vmatprep.subr.bf16.mxu1 %v4860_v59  ;;  %v873_v58 = vshll.u32 %v832_v51, 16  ;;  %v878_v59 = vshrl.u32 %v833_v52, 16  ;;  %v3993_v51 = vld [vmem:[%s5761_s12 + $0x10] sm:$0xe] }
 0x120   : > { %3432 = vmatprep.subr.bf16.mxu0 %v4865_v60  ;;  %v903_v60 = vld [vmem:[%s5776_s15 + $0x10] sm:$0xe] }
 0x122   : > { %3221 = vmatpush1.bf16.msra.mxu1 %v4858_v61  ;;  %v4930_v61 = vld [vmem:[#allocation3 + $0x284] ss:$8 sps:$4 sm:$0xff]  }
 0x123   : > { %3433 = vmatpush1.bf16.msra.mxu0 %v4863_v62  ;;  %3222 = vmatprep.subr.bf16.mxu1 %v4870_v63  ;;  %v4933_v62 = vld [vmem:[#allocation3 + $0x684] ss:$8 sps:$4 sm:$0xff]   ;;  %v881_v63 = vshll.u32 %v833_v52, 16  ;;  %v4948_v52 = vld [vmem:[#allocation3 + $0x2b4] ss:$8 sps:$4 sm:$0xff]  }
 0x124   : > { %3434 = vmatprep.subr.bf16.mxu0 %v4873_v0  ;;  %v887_v0 = vshll.u32 %v834_v53, 16  ;;  %v4951_v53 = vld [vmem:[#allocation3 + $0x6b4] ss:$8 sps:$4 sm:$0xff]  }
 0x126   : > { %3223 = vmatpush1.bf16.msra.mxu1 %v4868_v1  ;;  %v904_v1 = vld [vmem:[%s5776_s15 + $0x14] sm:$0x1] }
 0x127   : > { %3435 = vmatpush1.bf16.msra.mxu0 %v4871_v3  ;;  %3245 = vmatprep.subr.bf16.mxu1 %v4879_v4  ;;  %v866_v3 = vrot.slane %v864_v56, 4  ;;  %v869_v4 = vrot.slane %v867_v57, 5  ;;  %v3999_v56 = vrot.slane %v3991_v44, 9  ;;  %v671_v57 = vrot.slane %v3992_v45, 5  ;;  %v4973_v44 = vld [vmem:[#allocation3 + $0x6e4] ss:$8 sps:$4 sm:$0xff]  }
 0x128   : > { %3457 = vmatprep.subr.bf16.mxu0 %v4885_v5  ;;  %v880_v5 = vrot.slane %v878_v59, 4  ;;  %v601_v59 = vrot.slane %v599_v40, 5  ;;  %v4961_v40 = vld [vmem:[#allocation3 + $0x6d0] ss:$8 sps:$4 sm:$0xff]  }
 0x129   : > { %3225 = vmatmul.mubr.bf16.vlgmr.msra.gmra.mrb[0].mxu1 %v4874_v7  ;;  %v883_v7 = vrot.slane %v881_v63, 5 }
 0x12a   : > { %3437 = vmatmul.mubr.bf16.vlgmr.msra.gmra.mrb[0].mxu0 %v4880_v9  ;;  %3246 = vmatpush1.bf16.msra.mxu1 %v4877_v6  ;;  %v906_v6 = vld [vmem:[%s5776_s15 + $0x1c] sm:$0x1]  ;;  %v4032_v9 = vrot.slane %v903_v60, 9  ;;  %v4000_v60 = vrot.slane %v3993_v51, 9  ;;  %v4976_v51 = vld [vmem:[#allocation3 + $0x2f0] ss:$8 sps:$4 sm:$0xff]  }
 0x12b   : > { %3458 = vmatpush1.bf16.msra.mxu0 %v4883_v10  ;;  %3247 = vmatprep.subr.bf16.mxu1 %v4888_v11  ;;  %v925_v10 = vrot.slane %v904_v1, 5  ;;  %v4928_v11 = vld [vmem:[#allocation3 + $0x280] ss:$8 sps:$4 sm:$0xff]  }
 0x12c   : > { %3459 = vmatprep.subr.bf16.mxu0 %v4891_v12  ;;  %v870_v12 = vor.u32 %v869_v4, %v866_v3  ;;  %v4036_v1 = vld [vmem:[%s5776_s15 + $0x8] sm:$0xf]  ;;  %v4946_v3 = vld [vmem:[#allocation3 + $0x2b0] ss:$8 sps:$4 sm:$0xff]  }
 0x12d   : > { %v4949_v4 = vld [vmem:[#allocation3 + $0x6b0] ss:$8 sps:$4 sm:$0xff]   ;;  %945 = vst [vmem:[#allocation2 + $0x30] sm:$0xf] %v4036_v1  ;;  %v5005_v1 = vld [vmem:[#allocation3 + $0x724] ss:$8 sps:$4 sm:$0xff]  }
 0x12e   : > { %3248 = vmatpush1.bf16.msra.mxu1 %v4886_v13  ;;  %v875_v13 = vrot.slane %v873_v58, 5 }
 0x12f   : > { %3460 = vmatpush1.bf16.msra.mxu0 %v4889_v15  ;;  %3249 = vmatprep.subr.bf16.mxu1 %v4894_v16  ;;  %v4033_v15 = vrot.slane %v905_v2, 9  ;;  %v929_v16 = vrot.slane %v906_v6, 5  ;;  %v4037_v2 = vld [vmem:[%s5776_s15 + $0x10] sm:$0xf] }
 0x130   : > { %3461 = vmatprep.subr.bf16.mxu0 %v4897_v17  ;;  %v4931_v17 = vld [vmem:[#allocation3 + $0x680] ss:$8 sps:$4 sm:$0xff]   ;;  %946 = vst [vmem:[#allocation2 + $0x78] sm:$0xf] %v4037_v2 }
 0x131   : > { %v5000_v2 = vld [vmem:[#allocation3 + $0x320] ss:$8 sps:$4 sm:$0xff]  }
 0x132   : > { %3250 = vmatpush1.bf16.msra.mxu1 %v4892_v18  ;;  %v884_v18 = vor.u32 %v883_v7, %v880_v5  ;;  %v4040_v7 = vld [vmem:[%s5776_s15 + $0x8] sm:$0xf] }
 0x133   : > { %3462 = vmatpush1.bf16.msra.mxu0 %v4895_v19  ;;  %3251 = vmatprep.subr.bf16.mxu1 %v4900_v20  ;;  %v889_v19 = vrot.slane %v887_v0, 5  ;;  %v926_v20 = vsel %vm5780_vm4, %v4032_v9, %v925_v10  ;;  %v672_v0 = vsel %vm5780_vm4, %v3999_v56, %v671_v57  ;;  %v4041_v9 = vld [vmem:[%s5776_s15 + $0xc] sm:$0x1]  ;;  %v4985_v57 = vld [vmem:[#allocation3 + $0x300] ss:$8 sps:$4 sm:$0xff]  }
 0x134   : > { %3463 = vmatprep.subr.bf16.mxu0 %v4903_v21  ;;  %v4936_v21 = vld [vmem:[#allocation3 + $0x294] ss:$8 sps:$4 sm:$0xff]   ;;  %937 = vst [vmem:[#allocation2 + $0xbc] sm:$0xf] %v926_v20  ;;  %689 = vst [vmem:[#allocation2 + $0x14] sm:$0xf] %v672_v0 }
 0x135   : > { %v4954_v10 = vld [vmem:[#allocation3 + $0x2c4] ss:$8 sps:$4 sm:$0xff]   ;;  %v961_v20 = vshll.u32 %v4040_v7, 16 }
 0x136   : > { %3252 = vmatpush1.bf16.msra.mxu1 %v4898_v22  ;;  %v871_v22 = vrot.slane %v870_v12, 4  ;;  %v5002_v0 = vld [vmem:[#allocation3 + $0x324] ss:$8 sps:$4 sm:$0xff]  }
 0x137   : > { %3464 = vmatpush1.bf16.msra.mxu0 %v4901_v23  ;;  %3253 = vmatprep.subr.bf16.mxu1 %v4906_v24  ;;  %v930_v23 = vsel %vm5780_vm4, %v4033_v15, %v929_v16  ;;  %v4939_v24 = vld [vmem:[#allocation3 + $0x694] ss:$8 sps:$4 sm:$0xff]  }
 0x138   : > { %3465 = vmatprep.subr.bf16.mxu0 %v4909_v25  ;;  %v4964_v25 = vld [vmem:[#allocation2 + $0x9c] ss:$72 sps:$4 sm:$0xff]   ;;  %938 = vst [vmem:[#allocation2 + $0x104] sm:$0xf] %v930_v23 }
 0x139   : > { %3234 = vmatprep.mubr.bf16.mxu1 %v4964_v25 }
 0x13a   : > { %3254 = vmatpush1.bf16.msra.mxu1 %v4904_v26  ;;  %v885_v26 = vrot.slane %v884_v18, 4  ;;  %v4043_v18 = vld [vmem:[%s5776_s15 + $0x14] sm:$0x1] }
 0x13b   : > { %3466 = vmatpush1.bf16.msra.mxu0 %v4907_v27  ;;  %3255 = vmatprep.subr.bf16.mxu1 %v4912_v28  ;;  %v4934_v27 = vld [vmem:[#allocation3 + $0x290] ss:$8 sps:$4 sm:$0xff]  }
 0x13c   : > { %3467 = vmatprep.subr.bf16.mxu0 %v4915_v29  ;;  %v4937_v28 = vld [vmem:[#allocation3 + $0x690] ss:$8 sps:$4 sm:$0xff]   ;;  %v876_v29 = vsel %vm5790_vm5, %v871_v22, %v875_v13  ;;  %v967_v22 = vshll.u32 %v4041_v9, 16  ;;  %v5014_v9 = vld [vmem:[#allocation3 + $0x344] ss:$8 sps:$4 sm:$0xff]  }
 0x13d   : > { %897 = vst [vmem:[#allocation2 + $0xb8] sm:$0xf] %v876_v29 }
 0x13e   : > { %3256 = vmatpush1.bf16.msra.mxu1 %v4910_v30  ;;  %v4974_v30 = vld [vmem:[#allocation2 + $0x98] ss:$72 sps:$4 sm:$0xff]  }
 0x13f   : > { %3468 = vmatpush1.bf16.msra.mxu0 %v4913_v31  ;;  %3257 = vmatprep.subr.bf16.mxu1 %v4918_v32  ;;  %v4942_v31 = vld [vmem:[#allocation3 + $0x2a4] ss:$8 sps:$4 sm:$0xff]  }
 0x140   : > { %3469 = vmatprep.subr.bf16.mxu0 %v4921_v33  ;;  %v4945_v32 = vld [vmem:[#allocation3 + $0x6a4] ss:$8 sps:$4 sm:$0xff]   ;;  %v890_v33 = vsel %vm5790_vm5, %v885_v26, %v889_v19  ;;  %3235 = vmatmul.mubr.bf16.gmra.mrb[4].mxu1 %v4974_v30  ;;  %v958_v19 = vshrl.u32 %v4040_v7, 16  ;;  %v963_v26 = vrot.slane %v961_v20, 5  ;;  %v4952_v30 = vld [vmem:[#allocation3 + $0x2c0] ss:$8 sps:$4 sm:$0xff]  }
 0x141   : > { %898 = vst [vmem:[#allocation2 + $0x100] sm:$0xf] %v890_v33  ;;  %v4969_v12 = vld [vmem:[#allocation2 + $0xbc] ss:$72 sps:$4 sm:$0xff]   ;;  %v969_v33 = vrot.slane %v967_v22, 5 }
 0x142   : > { %3258 = vmatpush1.bf16.msra.mxu1 %v4916_v37  ;;  %v3986_v37 = vld [vmem:[%s5761_s12 + $0x14] sm:$0x1]  ;;  %3446 = vmatprep.mubr.bf16.mxu0 %v4969_v12  ;;  %v960_v25 = vrot.slane %v958_v19, 4  ;;  %v5009_v7 = vld [vmem:[#allocation3 + $0x730] ss:$8 sps:$4 sm:$0xff]  }
 0x143   : > { %3470 = vmatpush1.bf16.msra.mxu0 %v4919_v38  ;;  %3259 = vmatprep.subr.bf16.mxu1 %v4924_v46  ;;  %v590_v38 = vshrl.u32 %v3983_v34, 16  ;;  %v613_v43 = vshll.u32 %v3986_v37, 16  ;;  %v4940_v46 = vld [vmem:[#allocation3 + $0x2a0] ss:$8 sps:$4 sm:$0xff]   ;;  %v4960_v34 = vld [vmem:[#allocation3 + $0x2d4] ss:$8 sps:$4 sm:$0xff]  }
 0x144   : > { %3471 = vmatprep.subr.bf16.mxu0 %v4927_v47  ;;  %v4943_v47 = vld [vmem:[#allocation3 + $0x6a0] ss:$8 sps:$4 sm:$0xff]   ;;  %v5029_v19 = vld [vmem:[#allocation3 + $0x764] ss:$8 sps:$4 sm:$0xff]   ;;  %v3987_v20 = vld [vmem:[%s5761_s12 + $0x18] sm:$0xf] }
 0x145   : > { %v592_v48 = vrot.slane %v590_v38, 4  ;;  %v615_v63 = vrot.slane %v613_v43, 5  ;;  %v4958_v38 = vld [vmem:[#allocation3 + $0x2d0] ss:$8 sps:$4 sm:$0xff]   ;;  %v5015_v12 = vld [vmem:[#allocation3 + $0x740] ss:$8 sps:$4 sm:$0xff]  }
 0x146   : > { %3260 = vmatpush1.bf16.msra.mxu1 %v4922_v54  ;;  %v609_v54 = vrot.slane %v607_v42, 5  ;;  %v4968_v42 = vld [vmem:[#allocation3 + $0x2e4] ss:$8 sps:$4 sm:$0xff]   ;;  %v3989_v22 = vld [vmem:[%s5761_s12 + $0x20] sm:$0xf] }
 0x147   : > { %3472 = vmatpush1.bf16.msra.mxu0 %v4925_v55  ;;  %3261 = vmatprep.subr.bf16.mxu1 %v4930_v61  ;;  %v3994_v55 = vld [vmem:[%s5761_s12 + $0x14] sm:$0x1]  ;;  %v596_v58 = vor.u32 %v595_v49, %v592_v48  ;;  %v4971_v48 = vld [vmem:[#allocation3 + $0x6e0] ss:$8 sps:$4 sm:$0xff]  }
 0x148   : > { %3473 = vmatprep.subr.bf16.mxu0 %v4933_v62  ;;  %v675_v61 = vrot.slane %v3994_v55, 5  ;;  %v610_v62 = vor.u32 %v609_v54, %v606_v50  ;;  %v4975_v13 = vld [vmem:[#allocation2 + $0xb8] ss:$72 sps:$4 sm:$0xff]   ;;  %v4978_v49 = vld [vmem:[#allocation3 + $0x2f4] ss:$8 sps:$4 sm:$0xff]  }
 0x149   : > { %v597_v5 = vrot.slane %v596_v58, 4  ;;  %3447 = vmatmul.mubr.bf16.gmra.mrb[4].mxu0 %v4975_v13  ;;  %v4981_v50 = vld [vmem:[#allocation3 + $0x6f4] ss:$8 sps:$4 sm:$0xff]   ;;  %v4993_v55 = vld [vmem:[#allocation3 + $0x704] ss:$8 sps:$4 sm:$0xff]  }
 0x14a   : > { %3262 = vmatpush1.bf16.msra.mxu1 %v4928_v11  ;;  %v676_v6 = vsel %vm5780_vm4, %v4000_v60, %v675_v61  ;;  %v4957_v11 = vld [vmem:[#allocation3 + $0x6c4] ss:$8 sps:$4 sm:$0xff]   ;;  %v611_v15 = vrot.slane %v610_v62, 4  ;;  %v4988_v58 = vld [vmem:[#allocation2 + $0x30] ss:$72 sps:$4 sm:$0xff]  }
 0x14b   : > { %3474 = vmatpush1.bf16.msra.mxu0 %v4931_v17  ;;  %3263 = vmatprep.subr.bf16.mxu1 %v4936_v21  ;;  %690 = vst [vmem:[#allocation2 + $0x5c] sm:$0xf] %v676_v6  ;;  %v602_v16 = vsel %vm5790_vm5, %v597_v5, %v601_v59  ;;  %v4042_v17 = vld [vmem:[%s5776_s15 + $0x10] sm:$0xf]  ;;  %v4991_v59 = vld [vmem:[#allocation3 + $0x700] ss:$8 sps:$4 sm:$0xff]  }
 0x14c   : > { %3475 = vmatprep.subr.bf16.mxu0 %v4939_v24  ;;  %v616_v21 = vsel %vm5790_vm5, %v611_v15, %v615_v63  ;;  %649 = vst [vmem:[#allocation2 + $0x10] sm:$0xf] %v602_v16  ;;  %v972_v23 = vshrl.u32 %v4042_v17, 16  ;;  %v975_v24 = vshll.u32 %v4042_v17, 16  ;;  %v4996_v60 = vld [vmem:[#allocation3 + $0x314] ss:$8 sps:$4 sm:$0xff]  }
 0x14d   : > { %650 = vst [vmem:[#allocation2 + $0x58] sm:$0xf] %v616_v21  ;;  %v4999_v61 = vld [vmem:[#allocation3 + $0x714] ss:$8 sps:$4 sm:$0xff]   ;;  %v4994_v62 = vld [vmem:[#allocation3 + $0x310] ss:$8 sps:$4 sm:$0xff]  }
 0x14e   : > { %3264 = vmatpush1.bf16.msra.mxu1 %v4934_v27  ;;  %v981_v27 = vshll.u32 %v4043_v18, 16  ;;  %v977_v29 = vrot.slane %v975_v24, 5  ;;  %v4997_v63 = vld [vmem:[#allocation3 + $0x710] ss:$8 sps:$4 sm:$0xff]   ;;  %v5011_v5 = vld [vmem:[#allocation3 + $0x734] ss:$8 sps:$4 sm:$0xff]  }
 0x14f   : > { %3476 = vmatpush1.bf16.msra.mxu0 %v4937_v28  ;;  %3265 = vmatprep.subr.bf16.mxu1 %v4942_v31  ;;  %v974_v28 = vrot.slane %v972_v23, 4  ;;  %v4955_v31 = vld [vmem:[#allocation3 + $0x6c0] ss:$8 sps:$4 sm:$0xff]   ;;  %v5006_v6 = vld [vmem:[#allocation3 + $0x330] ss:$8 sps:$4 sm:$0xff]   ;;  %v618_v24 = vshrl.u32 %v3987_v20, 16 }
 0x150   : > { %3477 = vmatprep.subr.bf16.mxu0 %v4945_v32  ;;  %v964_v32 = vor.u32 %v963_v26, %v960_v25  ;;  %v983_v37 = vrot.slane %v981_v27, 5  ;;  %v5020_v13 = vld [vmem:[#allocation3 + $0x354] ss:$8 sps:$4 sm:$0xff]   ;;  %v5018_v16 = vld [vmem:[#allocation3 + $0x350] ss:$8 sps:$4 sm:$0xff]   ;;  %v621_v25 = vshll.u32 %v3987_v20, 16 }
 0x151   : > { %v978_v36 = vor.u32 %v977_v29, %v974_v28  ;;  %v5023_v15 = vld [vmem:[#allocation3 + $0x754] ss:$8 sps:$4 sm:$0xff]   ;;  %v5021_v17 = vld [vmem:[#allocation3 + $0x750] ss:$8 sps:$4 sm:$0xff]   ;;  %v5026_v18 = vld [vmem:[#allocation3 + $0x364] ss:$8 sps:$4 sm:$0xff]  }
 0x152   : > { %3266 = vmatpush1.bf16.msra.mxu1 %v4940_v46  ;;  %v965_v39 = vrot.slane %v964_v32, 4  ;;  %v4984_v45 = vld [vmem:[#allocation2 + $0x14] ss:$72 sps:$4 sm:$0xff]   ;;  %v3990_v23 = vld [vmem:[%s5761_s12 + $0x24] sm:$0x1]  ;;  %v632_v29 = vshrl.u32 %v3989_v22, 16 }
 0x153   : > { %3478 = vmatpush1.bf16.msra.mxu0 %v4943_v47  ;;  %3267 = vmatprep.subr.bf16.mxu1 %v4948_v52  ;;  %v979_v41 = vrot.slane %v978_v36, 4  ;;  %v4966_v47 = vld [vmem:[#allocation3 + $0x2e0] ss:$8 sps:$4 sm:$0xff]   ;;  %v4979_v52 = vld [vmem:[#allocation3 + $0x6f0] ss:$8 sps:$4 sm:$0xff]   ;;  %v623_v36 = vrot.slane %v621_v25, 5 }
 0x154   : > { %3479 = vmatprep.subr.bf16.mxu0 %v4951_v53  ;;  %v970_v43 = vsel %vm5790_vm5, %v965_v39, %v969_v33  ;;  %3277 = vmatprep.mubr.bf16.mxu1 %v4984_v45  ;;  %v4987_v53 = vld [vmem:[#allocation3 + $0x304] ss:$8 sps:$4 sm:$0xff]   ;;  %v4982_v56 = vld [vmem:[#allocation2 + $0x10] ss:$72 sps:$4 sm:$0xff]   ;;  %v3988_v21 = vld [vmem:[%s5761_s12 + $0x1c] sm:$0x1] }
 0x155   : > { %v984_v46 = vsel %vm5790_vm5, %v979_v41, %v983_v37  ;;  %1017 = vst [vmem:[#allocation2 + $0x34] sm:$0xf] %v970_v43  ;;  %v5024_v26 = vld [vmem:[#allocation3 + $0x360] ss:$8 sps:$4 sm:$0xff]   ;;  %v627_v28 = vshll.u32 %v3988_v21, 16 }
 0x156   : > { %3268 = vmatpush1.bf16.msra.mxu1 %v4946_v3  ;;  %1018 = vst [vmem:[#allocation2 + $0x7c] sm:$0xf] %v984_v46  ;;  %v5003_v3 = vld [vmem:[#allocation3 + $0x720] ss:$8 sps:$4 sm:$0xff]   ;;  %v3995_v32 = vld [vmem:[%s5761_s12 + $0x18] sm:$0xe] }
 0x157   : > { %3480 = vmatpush1.bf16.msra.mxu0 %v4949_v4  ;;  %3269 = vmatprep.subr.bf16.mxu1 %v4954_v10  ;;  %v5008_v4 = vld [vmem:[#allocation3 + $0x334] ss:$8 sps:$4 sm:$0xff]   ;;  %v5017_v10 = vld [vmem:[#allocation3 + $0x744] ss:$8 sps:$4 sm:$0xff]   ;;  %v5027_v27 = vld [vmem:[#allocation3 + $0x760] ss:$8 sps:$4 sm:$0xff]  }
 0x158   : > { %3481 = vmatprep.subr.bf16.mxu0 %v4957_v11  ;;  %v5012_v11 = vld [vmem:[#allocation3 + $0x340] ss:$8 sps:$4 sm:$0xff]   ;;  %v5032_v33 = vld [vmem:[#allocation3 + $0x374] ss:$8 sps:$4 sm:$0xff]   ;;  %v629_v39 = vrot.slane %v627_v28, 5  ;;  %v4001_v45 = vrot.slane %v3995_v32, 9 }
 0x159   : > { %v3996_v37 = vld [vmem:[%s5761_s12 + $0x1c] sm:$0x1]  ;;  %v3998_v43 = vld [vmem:[%s5761_s12 + $0x24] sm:$0x1]  ;;  %v4005_v25 = vld [vmem:[%s5761_s12 + $0x10] sm:$0xf] }
 0x15a   : > { %3270 = vmatpush1.bf16.msra.mxu1 %v4952_v30  ;;  %v635_v30 = vshll.u32 %v3989_v22, 16  ;;  %v679_v46 = vrot.slane %v3996_v37, 5  ;;  %v5042_v22 = vld [vmem:[#allocation3 + $0x390] ss:$8 sps:$4 sm:$0xff]   ;;  %701 = vst [vmem:[#allocation2 + $0x18] sm:$0xf] %v4005_v25 }
 0x15b   : > { %3482 = vmatpush1.bf16.msra.mxu0 %v4955_v31  ;;  %3271 = vmatprep.subr.bf16.mxu1 %v4960_v34  ;;  %v641_v31 = vshll.u32 %v3990_v23, 16  ;;  %v5035_v34 = vld [vmem:[#allocation3 + $0x774] ss:$8 sps:$4 sm:$0xff]   ;;  %v5045_v23 = vld [vmem:[#allocation3 + $0x790] ss:$8 sps:$4 sm:$0xff]  }
 0x15c   : > { %3483 = vmatprep.subr.bf16.mxu0 %v4963_v35  ;;  %v620_v35 = vrot.slane %v618_v24, 4  ;;  %v637_v41 = vrot.slane %v635_v30, 5  ;;  %v4009_v30 = vld [vmem:[%s5761_s12 + $0x10] sm:$0xf]  ;;  %v4010_v32 = vld [vmem:[%s5761_s12 + $0x14] sm:$0x1] }
 0x15d   : > { %v4990_v54 = vld [vmem:[#allocation2 + $0x34] ss:$72 sps:$4 sm:$0xff]   ;;  %v717_v37 = vshll.u32 %v4009_v30, 16  ;;  %v4016_v25 = vld [vmem:[%s5761_s12 + $0x2c] sm:$0x1] }
 0x15e   : > { %3272 = vmatpush1.bf16.msra.mxu1 %v4958_v38  ;;  %3489 = vmatprep.mubr.bf16.mxu0 %v4990_v54  ;;  %v3997_v38 = vld [vmem:[%s5761_s12 + $0x20] sm:$0xe]  ;;  %v4044_v54 = vld [vmem:[%s5776_s15 + $0x18] sm:$0xf] }
 0x15f   : > { %3484 = vmatpush1.bf16.msra.mxu0 %v4961_v40  ;;  %3273 = vmatprep.subr.bf16.mxu1 %v4968_v42  ;;  %v634_v40 = vrot.slane %v632_v29, 4  ;;  %v643_v42 = vrot.slane %v641_v31, 5  ;;  %v4006_v29 = vld [vmem:[%s5761_s12 + $0x18] sm:$0xf] }
 0x160   : > { %3485 = vmatprep.subr.bf16.mxu0 %v4973_v44  ;;  %v624_v44 = vor.u32 %v623_v36, %v620_v35  ;;  %702 = vst [vmem:[#allocation2 + $0x60] sm:$0xf] %v4006_v29  ;;  %v714_v36 = vshrl.u32 %v4009_v30, 16  ;;  %v4052_v30 = vld [vmem:[%s5776_s15 + $0x18] sm:$0xe] }
 0x162   : > { %3274 = vmatpush1.bf16.msra.mxu1 %v4966_v47  ;;  %v4002_v47 = vrot.slane %v3997_v38, 9  ;;  %v723_v38 = vshll.u32 %v4010_v32, 16  ;;  %v765_v32 = vshll.u32 %v4016_v25, 16 }
 0x163   : > { %3486 = vmatpush1.bf16.msra.mxu0 %v4971_v48  ;;  %3275 = vmatprep.subr.bf16.mxu1 %v4978_v49  ;;  %v4038_v48 = vld [vmem:[%s5776_s15 + $0x18] sm:$0xf] }
 0x164   : > { %3487 = vmatprep.subr.bf16.mxu0 %v4981_v50  ;;  %v5030_v49 = vld [vmem:[#allocation3 + $0x370] ss:$8 sps:$4 sm:$0xff]   ;;  %947 = vst [vmem:[#allocation2 + $0xc0] sm:$0xf] %v4038_v48  ;;  %v719_v48 = vrot.slane %v717_v37, 5 }
 0x165   : > { %v5033_v50 = vld [vmem:[#allocation3 + $0x770] ss:$8 sps:$4 sm:$0xff]  }
 0x166   : > { %3276 = vmatpush1.bf16.msra.mxu1 %v4976_v51  ;;  %v638_v51 = vor.u32 %v637_v41, %v634_v40  ;;  %v5048_v40 = vld [vmem:[#allocation3 + $0x3a0] ss:$8 sps:$4 sm:$0xff]  }
 0x167   : > { %3488 = vmatpush1.bf16.msra.mxu0 %v4979_v52  ;;  %3298 = vmatprep.subr.bf16.mxu1 %v4987_v53  ;;  %v683_v52 = vrot.slane %v3998_v43, 5  ;;  %v4039_v53 = vld [vmem:[%s5776_s15 + $0x20] sm:$0xf] }
 0x168   : > { %3510 = vmatprep.subr.bf16.mxu0 %v4993_v55  ;;  %v5038_v55 = vld [vmem:[#allocation3 + $0x384] ss:$8 sps:$4 sm:$0xff]   ;;  %948 = vst [vmem:[#allocation2 + $0x108] sm:$0xf] %v4039_v53  ;;  %v5051_v41 = vld [vmem:[#allocation3 + $0x7a0] ss:$8 sps:$4 sm:$0xff]  }
 0x169   : > { %3278 = vmatmul.mubr.bf16.vlgmr.msra.gmra.mrb[0].mxu1 %v4982_v56  ;;  %v625_v56 = vrot.slane %v624_v44, 4 }
 0x16a   : > { %3490 = vmatmul.mubr.bf16.vlgmr.msra.gmra.mrb[0].mxu0 %v4988_v58  ;;  %3299 = vmatpush1.bf16.msra.mxu1 %v4985_v57  ;;  %v680_v57 = vsel %vm5780_vm4, %v4001_v45, %v679_v46  ;;  %v4045_v58 = vld [vmem:[%s5776_s15 + $0x1c] sm:$0x1] }
 0x16b   : > { %3511 = vmatpush1.bf16.msra.mxu0 %v4991_v59  ;;  %3300 = vmatprep.subr.bf16.mxu1 %v4996_v60  ;;  %v4046_v59 = vld [vmem:[%s5776_s15 + $0x20] sm:$0xf]  ;;  %v986_v60 = vshrl.u32 %v4044_v54, 16  ;;  %691 = vst [vmem:[#allocation2 + $0xa4] sm:$0xf] %v680_v57 }
 0x16c   : > { %3512 = vmatprep.subr.bf16.mxu0 %v4999_v61  ;;  %v639_v61 = vrot.slane %v638_v51, 4  ;;  %v5056_v45 = vld [vmem:[#allocation3 + $0x3b4] ss:$8 sps:$4 sm:$0xff]   ;;  %v4049_v51 = vld [vmem:[%s5776_s15 + $0xc] sm:$0x1] }
 0x16d   : > { %v5059_v46 = vld [vmem:[#allocation3 + $0x7b4] ss:$8 sps:$4 sm:$0xff]  }
 0x16e   : > { %3301 = vmatpush1.bf16.msra.mxu1 %v4994_v62  ;;  %v684_v62 = vsel %vm5780_vm4, %v4002_v47, %v683_v52  ;;  %v716_v47 = vrot.slane %v714_v36, 4  ;;  %v5069_v36 = vld [vmem:[#allocation3 + $0x7d0] ss:$8 sps:$4 sm:$0xff]  }
 0x16f   : > { %3513 = vmatpush1.bf16.msra.mxu0 %v4997_v63  ;;  %3302 = vmatprep.subr.bf16.mxu1 %v5002_v0  ;;  %v4047_v63 = vld [vmem:[%s5776_s15 + $0x24] sm:$0x1]  ;;  %v989_v0 = vshll.u32 %v4044_v54, 16  ;;  %692 = vst [vmem:[#allocation2 + $0xec] sm:$0xf] %v684_v62 }
 0x170   : > { %3514 = vmatprep.subr.bf16.mxu0 %v5005_v1  ;;  %v995_v1 = vshll.u32 %v4045_v58, 16  ;;  %v4050_v54 = vld [vmem:[%s5776_s15 + $0x10] sm:$0xe] }
 0x171   : > { %v4057_v62 = vrot.slane %v4050_v54, 9  ;;  %v4064_v54 = vld [vmem:[%s5776_s15 + $0x20] sm:$0xf] }
 0x172   : > { %3303 = vmatpush1.bf16.msra.mxu1 %v5000_v2  ;;  %v5041_v2 = vld [vmem:[#allocation3 + $0x784] ss:$8 sps:$4 sm:$0xff]   ;;  %1069 = vst [vmem:[#allocation2 + $0xcc] sm:$0xf] %v4064_v54 }
 0x173   : > { %3515 = vmatpush1.bf16.msra.mxu0 %v5003_v3  ;;  %3304 = vmatprep.subr.bf16.mxu1 %v5008_v4  ;;  %v630_v3 = vsel %vm5790_vm5, %v625_v56, %v629_v39  ;;  %v988_v4 = vrot.slane %v986_v60, 4  ;;  %v4048_v39 = vld [vmem:[%s5776_s15 + $0x8] sm:$0xe]  ;;  %v720_v56 = vor.u32 %v719_v48, %v716_v47  ;;  %v4062_v60 = vld [vmem:[%s5776_s15 + $0x10] sm:$0xf] }
 0x174   : > { %3516 = vmatprep.subr.bf16.mxu0 %v5011_v5  ;;  %v1000_v5 = vshrl.u32 %v4046_v59, 16  ;;  %651 = vst [vmem:[#allocation2 + $0xa0] sm:$0xf] %v630_v3  ;;  %v4056_v58 = vrot.slane %v4048_v39, 9  ;;  %1067 = vst [vmem:[#allocation2 + $0x3c] sm:$0xf] %v4062_v60 }
 0x175   : > { %v4073_v54 = vld [vmem:[%s5776_s15 + $0x2c] sm:$0x1] }
 0x176   : > { %3305 = vmatpush1.bf16.msra.mxu1 %v5006_v6  ;;  %v1003_v6 = vshll.u32 %v4046_v59, 16  ;;  %v1039_v59 = vrot.slane %v4049_v51, 5 }
 0x177   : > { %3517 = vmatpush1.bf16.msra.mxu0 %v5009_v7  ;;  %3306 = vmatprep.subr.bf16.mxu1 %v5014_v9  ;;  %v644_v7 = vsel %vm5790_vm5, %v639_v61, %v643_v42  ;;  %v991_v9 = vrot.slane %v989_v0, 5  ;;  %v5072_v42 = vld [vmem:[#allocation2 + $0xa4] ss:$72 sps:$4 sm:$0xff]   ;;  %v5054_v61 = vld [vmem:[#allocation3 + $0x3b0] ss:$8 sps:$4 sm:$0xff]  }
 0x178   : > { %3518 = vmatprep.subr.bf16.mxu0 %v5017_v10  ;;  %v1009_v10 = vshll.u32 %v4047_v63, 16  ;;  %652 = vst [vmem:[#allocation2 + $0xe8] sm:$0xf] %v644_v7  ;;  %3287 = vmatprep.mubr.bf16.mxu1 %v5072_v42  ;;  %v4063_v0 = vld [vmem:[%s5776_s15 + $0x18] sm:$0xf] }
 0x179   : > { %1068 = vst [vmem:[#allocation2 + $0x84] sm:$0xf] %v4063_v0  ;;  %v5065_v7 = vld [vmem:[#allocation3 + $0x7c4] ss:$8 sps:$4 sm:$0xff]   ;;  %v5089_v0 = vld [vmem:[#allocation3 + $0x7f4] ss:$8 sps:$4 sm:$0xff]  }
 0x17a   : > { %3307 = vmatpush1.bf16.msra.mxu1 %v5012_v11  ;;  %v5036_v11 = vld [vmem:[#allocation3 + $0x380] ss:$8 sps:$4 sm:$0xff]   ;;  %v1011_v21 = vrot.slane %v1009_v10, 5  ;;  %v5083_v42 = vld [vmem:[#allocation3 + $0x7e4] ss:$8 sps:$4 sm:$0xff]  }
 0x17b   : > { %3519 = vmatpush1.bf16.msra.mxu0 %v5015_v12  ;;  %3308 = vmatprep.subr.bf16.mxu1 %v5020_v13  ;;  %v1002_v12 = vrot.slane %v1000_v5, 4  ;;  %v1005_v13 = vrot.slane %v1003_v6, 5  ;;  %v1040_v5 = vsel %vm5780_vm4, %v4056_v58, %v1039_v59  ;;  %v5062_v6 = vld [vmem:[#allocation3 + $0x3c4] ss:$8 sps:$4 sm:$0xff]  }
 0x17c   : > { %3520 = vmatprep.subr.bf16.mxu0 %v5023_v15  ;;  %v5039_v15 = vld [vmem:[#allocation3 + $0x780] ss:$8 sps:$4 sm:$0xff]   ;;  %1057 = vst [vmem:[#allocation2 + $0x38] sm:$0xf] %v1040_v5 }
 0x17d   : > { %v1006_v20 = vor.u32 %v1005_v13, %v1002_v12  ;;  %v5090_v5 = vld [vmem:[#allocation2 + $0x18] ss:$72 sps:$4 sm:$0xff]  }
 0x17e   : > { %3309 = vmatpush1.bf16.msra.mxu1 %v5018_v16  ;;  %v5044_v16 = vld [vmem:[#allocation3 + $0x394] ss:$8 sps:$4 sm:$0xff]  }
 0x17f   : > { %3521 = vmatpush1.bf16.msra.mxu0 %v5021_v17  ;;  %3310 = vmatprep.subr.bf16.mxu1 %v5026_v18  ;;  %v992_v17 = vor.u32 %v991_v9, %v988_v4  ;;  %v997_v18 = vrot.slane %v995_v1, 5  ;;  %v1007_v28 = vrot.slane %v1006_v20, 4  ;;  %v5076_v43 = vld [vmem:[#allocation2 + $0xa0] ss:$72 sps:$4 sm:$0xff]   ;;  %v5057_v1 = vld [vmem:[#allocation3 + $0x7b0] ss:$8 sps:$4 sm:$0xff]  }
 0x180   : > { %3522 = vmatprep.subr.bf16.mxu0 %v5029_v19  ;;  %v5047_v19 = vld [vmem:[#allocation3 + $0x794] ss:$8 sps:$4 sm:$0xff]   ;;  %3288 = vmatmul.mubr.bf16.gmra.mrb[4].mxu1 %v5076_v43 }
 0x181   : > { %v993_v24 = vrot.slane %v992_v17, 4  ;;  %v1012_v35 = vsel %vm5790_vm5, %v1007_v28, %v1011_v21  ;;  %v4007_v17 = vld [vmem:[%s5761_s12 + $0x20] sm:$0xf]  ;;  %v5068_v20 = vld [vmem:[#allocation3 + $0x3d4] ss:$8 sps:$4 sm:$0xff]  }
 0x182   : > { %3311 = vmatpush1.bf16.msra.mxu1 %v5024_v26  ;;  %v5050_v26 = vld [vmem:[#allocation3 + $0x3a4] ss:$8 sps:$4 sm:$0xff]   ;;  %1020 = vst [vmem:[#allocation2 + $0x10c] sm:$0xf] %v1012_v35  ;;  %v5071_v21 = vld [vmem:[#allocation3 + $0x7d4] ss:$8 sps:$4 sm:$0xff]  }
 0x183   : > { %3523 = vmatpush1.bf16.msra.mxu0 %v5027_v27  ;;  %3312 = vmatprep.subr.bf16.mxu1 %v5032_v33  ;;  %v5053_v27 = vld [vmem:[#allocation3 + $0x7a4] ss:$8 sps:$4 sm:$0xff]   ;;  %v998_v31 = vsel %vm5790_vm5, %v993_v24, %v997_v18  ;;  %v4011_v33 = vld [vmem:[%s5761_s12 + $0x18] sm:$0xf]  ;;  %v4008_v18 = vld [vmem:[%s5761_s12 + $0x28] sm:$0xf] }
 0x184   : > { %3524 = vmatprep.subr.bf16.mxu0 %v5035_v34  ;;  %v4012_v34 = vld [vmem:[%s5761_s12 + $0x1c] sm:$0x1]  ;;  %1019 = vst [vmem:[#allocation2 + $0xc4] sm:$0xf] %v998_v31  ;;  %v728_v44 = vshrl.u32 %v4011_v33, 16 }
 0x185   : > { %v737_v53 = vshll.u32 %v4012_v34, 16  ;;  %703 = vst [vmem:[#allocation2 + $0xa8] sm:$0xf] %v4007_v17  ;;  %704 = vst [vmem:[#allocation2 + $0xf0] sm:$0xf] %v4008_v18 }
 0x186   : > { %3313 = vmatpush1.bf16.msra.mxu1 %v5030_v49  ;;  %v725_v49 = vrot.slane %v723_v38, 5  ;;  %v730_v52 = vrot.slane %v728_v44, 4  ;;  %v4015_v24 = vld [vmem:[%s5761_s12 + $0x28] sm:$0xf]  ;;  %v4054_v34 = vld [vmem:[%s5776_s15 + $0x20] sm:$0xe] }
 0x187   : > { %3525 = vmatpush1.bf16.msra.mxu0 %v5033_v50  ;;  %3314 = vmatprep.subr.bf16.mxu1 %v5038_v55  ;;  %v731_v50 = vshll.u32 %v4011_v33, 16  ;;  %v4051_v55 = vld [vmem:[%s5776_s15 + $0x14] sm:$0x1]  ;;  %v739_v4 = vrot.slane %v737_v53, 5  ;;  %v756_v29 = vshrl.u32 %v4015_v24, 16  ;;  %v759_v31 = vshll.u32 %v4015_v24, 16 }
 0x188   : > { %3526 = vmatprep.subr.bf16.mxu0 %v5041_v2  ;;  %v1043_v63 = vrot.slane %v4051_v55, 5  ;;  %v721_v2 = vrot.slane %v720_v56, 4  ;;  %v4053_v33 = vld [vmem:[%s5776_s15 + $0x1c] sm:$0x1]  ;;  %v5066_v35 = vld [vmem:[#allocation3 + $0x3d0] ss:$8 sps:$4 sm:$0xff]  }
 0x189   : > { %v733_v57 = vrot.slane %v731_v50, 5  ;;  %v758_v39 = vrot.slane %v756_v29, 4  ;;  %v761_v43 = vrot.slane %v759_v31, 5  ;;  %v4058_v44 = vrot.slane %v4052_v30, 9  ;;  %v4065_v55 = vld [vmem:[%s5776_s15 + $0x28] sm:$0xf] }
 0x18a   : > { %3315 = vmatpush1.bf16.msra.mxu1 %v5036_v11  ;;  %v1044_v9 = vsel %vm5780_vm4, %v4057_v62, %v1043_v63  ;;  %v5080_v11 = vld [vmem:[#allocation2 + $0xc0] ss:$72 sps:$4 sm:$0xff]   ;;  %v726_v12 = vsel %vm5790_vm5, %v721_v2, %v725_v49  ;;  %v767_v49 = vrot.slane %v765_v32, 5  ;;  %v4059_v50 = vrot.slane %v4054_v34, 9  ;;  %1070 = vst [vmem:[#allocation2 + $0x114] sm:$0xf] %v4065_v55 }
 0x18b   : > { %3527 = vmatpush1.bf16.msra.mxu0 %v5039_v15  ;;  %3316 = vmatprep.subr.bf16.mxu1 %v5044_v16  ;;  %v734_v3 = vor.u32 %v733_v57, %v730_v52  ;;  %v5074_v10 = vld [vmem:[#allocation2 + $0xc4] ss:$72 sps:$4 sm:$0xff]   ;;  %1058 = vst [vmem:[#allocation2 + $0x80] sm:$0xf] %v1044_v9  ;;  %v5060_v15 = vld [vmem:[#allocation3 + $0x3c0] ss:$8 sps:$4 sm:$0xff]   ;;  %v762_v51 = vor.u32 %v761_v43, %v758_v39 }
 0x18c   : > { %3528 = vmatprep.subr.bf16.mxu0 %v5047_v19  ;;  %v5063_v16 = vld [vmem:[#allocation3 + $0x7c0] ss:$8 sps:$4 sm:$0xff]   ;;  %773 = vst [vmem:[#allocation2 + $0x1c] sm:$0xf] %v726_v12  ;;  %3499 = vmatprep.mubr.bf16.mxu0 %v5074_v10  ;;  %v5086_v62 = vld [vmem:[#allocation3 + $0x3f4] ss:$8 sps:$4 sm:$0xff]  }
 0x18d   : > { %v735_v13 = vrot.slane %v734_v3, 4  ;;  %v4013_v19 = vld [vmem:[%s5761_s12 + $0x20] sm:$0xf]  ;;  %3500 = vmatmul.mubr.bf16.gmra.mrb[4].mxu0 %v5080_v11  ;;  %v763_v59 = vrot.slane %v762_v51, 4  ;;  %v5084_v2 = vld [vmem:[#allocation3 + $0x3f0] ss:$8 sps:$4 sm:$0xff]  }
 0x18e   : > { %3317 = vmatpush1.bf16.msra.mxu1 %v5042_v22  ;;  %v5077_v57 = vld [vmem:[#allocation3 + $0x3e0] ss:$8 sps:$4 sm:$0xff]   ;;  %v5087_v3 = vld [vmem:[#allocation3 + $0x7f0] ss:$8 sps:$4 sm:$0xff]   ;;  %v5101_v9 = vld [vmem:[#allocation3 + $0x814] ss:$8 sps:$4 sm:$0xff]  }
 0x18f   : > { %3529 = vmatpush1.bf16.msra.mxu0 %v5045_v23  ;;  %3318 = vmatprep.subr.bf16.mxu1 %v5050_v26  ;;  %v740_v22 = vsel %vm5790_vm5, %v735_v13, %v739_v4  ;;  %v4014_v23 = vld [vmem:[%s5761_s12 + $0x24] sm:$0x1]  ;;  %v742_v26 = vshrl.u32 %v4013_v19, 16  ;;  %v5099_v12 = vld [vmem:[#allocation3 + $0x810] ss:$8 sps:$4 sm:$0xff]   ;;  %s3697_s12 = scalar_lea.sflag [#allocation5], %s5739_s7 }
 0x190   : > { %3530 = vmatprep.subr.bf16.mxu0 %v5053_v27  ;;  %774 = vst [vmem:[#allocation2 + $0x64] sm:$0xf] %v740_v22  ;;  %v745_v27 = vshll.u32 %v4013_v19, 16  ;;  %v751_v28 = vshll.u32 %v4014_v23, 16  ;;  %v5098_v4 = vld [vmem:[#allocation3 + $0x804] ss:$8 sps:$4 sm:$0xff]  }
 0x191   : > { %v744_v37 = vrot.slane %v742_v26, 4  ;;  %v5104_v10 = vld [vmem:[#allocation2 + $0xcc] ss:$72 sps:$4 sm:$0xff]   ;;  %v5108_v17 = vld [vmem:[#allocation3 + $0x820] ss:$8 sps:$4 sm:$0xff]  }
 0x192   : > { %3319 = vmatpush1.bf16.msra.mxu1 %v5048_v40  ;;  %v747_v38 = vrot.slane %v745_v27, 5  ;;  %v4055_v40 = vld [vmem:[%s5776_s15 + $0x24] sm:$0x1]  ;;  %v753_v48 = vrot.slane %v751_v28, 5  ;;  %v5113_v18 = vld [vmem:[#allocation3 + $0x834] ss:$8 sps:$4 sm:$0xff]  }
 0x193   : > { %3531 = vmatpush1.bf16.msra.mxu0 %v5051_v41  ;;  %3320 = vmatprep.subr.bf16.mxu1 %v5056_v45  ;;  %v5079_v41 = vld [vmem:[#allocation3 + $0x3e4] ss:$8 sps:$4 sm:$0xff]   ;;  %v1047_v45 = vrot.slane %v4053_v33, 5  ;;  %v1051_v53 = vrot.slane %v4055_v40, 5  ;;  %v5111_v19 = vld [vmem:[#allocation3 + $0x830] ss:$8 sps:$4 sm:$0xff]  }
 0x194   : > { %3532 = vmatprep.subr.bf16.mxu0 %v5059_v46  ;;  %v5095_v46 = vld [vmem:[#allocation2 + $0x3c] ss:$72 sps:$4 sm:$0xff]   ;;  %v748_v47 = vor.u32 %v747_v38, %v744_v37  ;;  %v4067_v22 = vld [vmem:[%s5776_s15 + $0x14] sm:$0x1]  ;;  %v4068_v23 = vld [vmem:[%s5776_s15 + $0x18] sm:$0xf] }
 0x195   : > { %v1048_v52 = vsel %vm5780_vm4, %v4058_v44, %v1047_v45  ;;  %3542 = vmatprep.mubr.bf16.mxu0 %v5095_v46  ;;  %v1052_v60 = vsel %vm5780_vm4, %v4059_v50, %v1051_v53  ;;  %v5110_v13 = vld [vmem:[#allocation3 + $0x824] ss:$8 sps:$4 sm:$0xff]   ;;  %v4069_v24 = vld [vmem:[%s5776_s15 + $0x1c] sm:$0x1]  ;;  %v1089_v27 = vshll.u32 %v4067_v22, 16  ;;  %v1094_v28 = vshrl.u32 %v4068_v23, 16 }
 0x196   : > { %3321 = vmatpush1.bf16.msra.mxu1 %v5054_v61  ;;  %v749_v56 = vrot.slane %v748_v47, 4  ;;  %1059 = vst [vmem:[#allocation2 + $0xc8] sm:$0xf] %v1048_v52  ;;  %v5081_v61 = vld [vmem:[#allocation3 + $0x7e0] ss:$8 sps:$4 sm:$0xff]   ;;  %v1097_v31 = vshll.u32 %v4068_v23, 16 }
 0x197   : > { %3533 = vmatpush1.bf16.msra.mxu0 %v5057_v1  ;;  %3322 = vmatprep.subr.bf16.mxu1 %v5062_v6  ;;  %v5092_v58 = vld [vmem:[#allocation2 + $0x1c] ss:$72 sps:$4 sm:$0xff]   ;;  %1060 = vst [vmem:[#allocation2 + $0x110] sm:$0xf] %v1052_v60  ;;  %v768_v1 = vsel %vm5790_vm5, %v763_v59, %v767_v49  ;;  %v5093_v6 = vld [vmem:[#allocation2 + $0x38] ss:$72 sps:$4 sm:$0xff]  }
 0x198   : > { %3534 = vmatprep.subr.bf16.mxu0 %v5065_v7  ;;  %v754_v63 = vsel %vm5790_vm5, %v749_v56, %v753_v48  ;;  %3330 = vmatprep.mubr.bf16.mxu1 %v5092_v58  ;;  %776 = vst [vmem:[#allocation2 + $0xf4] sm:$0xf] %v768_v1  ;;  %v5096_v7 = vld [vmem:[#allocation3 + $0x800] ss:$8 sps:$4 sm:$0xff]   ;;  %v4074_v29 = vld [vmem:[%s5776_s15 + $0x10] sm:$0xe] }
 0x199   : > { %775 = vst [vmem:[#allocation2 + $0xac] sm:$0xf] %v754_v63  ;;  %v5114_v30 = vld [vmem:[#allocation3 + $0x840] ss:$8 sps:$4 sm:$0xff]   ;;  %v1103_v32 = vshll.u32 %v4069_v24, 16  ;;  %v1091_v38 = vrot.slane %v1089_v27, 5 }
 0x19a   : > { %3323 = vmatpush1.bf16.msra.mxu1 %v5060_v15  ;;  %v5106_v15 = vld [vmem:[#allocation2 + $0xa8] ss:$72 sps:$4 sm:$0xff]   ;;  %v4075_v33 = vld [vmem:[%s5776_s15 + $0x14] sm:$0x1]  ;;  %v4076_v34 = vld [vmem:[%s5776_s15 + $0x18] sm:$0xe] }
 0x19b   : > { %3535 = vmatpush1.bf16.msra.mxu0 %v5063_v16  ;;  %3324 = vmatprep.subr.bf16.mxu1 %v5068_v20  ;;  %v5116_v20 = vld [vmem:[#allocation3 + $0x844] ss:$8 sps:$4 sm:$0xff]   ;;  %v1096_v39 = vrot.slane %v1094_v28, 4  ;;  %v4077_v40 = vld [vmem:[%s5776_s15 + $0x1c] sm:$0x1]  ;;  %v4082_v43 = vrot.slane %v4074_v29, 9 }
 0x19c   : > { %3536 = vmatprep.subr.bf16.mxu0 %v5071_v21  ;;  %v4066_v21 = vld [vmem:[%s5776_s15 + $0x10] sm:$0xf]  ;;  %v1161_v44 = vrot.slane %v4075_v33, 5  ;;  %v4070_v45 = vld [vmem:[%s5776_s15 + $0x20] sm:$0xf]  ;;  %v4083_v47 = vrot.slane %v4076_v34, 9 }
 0x19d   : > { %v1080_v25 = vshrl.u32 %v4066_v21, 16  ;;  %v1083_v26 = vshll.u32 %v4066_v21, 16  ;;  %v1165_v48 = vrot.slane %v4077_v40, 5  ;;  %v4071_v49 = vld [vmem:[%s5776_s15 + $0x24] sm:$0x1]  ;;  %v1108_v55 = vshrl.u32 %v4070_v45, 16 }
 0x19e   : > { %3325 = vmatpush1.bf16.msra.mxu1 %v5066_v35  ;;  %v5107_v16 = vld [vmem:[#allocation2 + $0xc8] ss:$72 sps:$4 sm:$0xff]   ;;  %v5119_v35 = vld [vmem:[#allocation3 + $0x854] ss:$8 sps:$4 sm:$0xff]   ;;  %v1162_v53 = vsel %vm5780_vm4, %v4082_v43, %v1161_v44  ;;  %v1111_v56 = vshll.u32 %v4070_v45, 16 }
 0x19f   : > { %3537 = vmatpush1.bf16.msra.mxu0 %v5069_v36  ;;  %3326 = vmatprep.subr.bf16.mxu1 %v5079_v41  ;;  %v1082_v36 = vrot.slane %v1080_v25, 4  ;;  %v1085_v37 = vrot.slane %v1083_v26, 5  ;;  %v1099_v41 = vrot.slane %v1097_v31, 5  ;;  %v4072_v50 = vld [vmem:[%s5776_s15 + $0x28] sm:$0xf]  ;;  %v1166_v60 = vsel %vm5780_vm4, %v4083_v47, %v1165_v48 }
 0x1a0   : > { %3538 = vmatprep.subr.bf16.mxu0 %v5083_v42  ;;  %v5102_v11 = vld [vmem:[#allocation2 + $0xac] ss:$72 sps:$4 sm:$0xff]   ;;  %v1105_v42 = vrot.slane %v1103_v32, 5  ;;  %v5117_v51 = vld [vmem:[#allocation3 + $0x850] ss:$8 sps:$4 sm:$0xff]   ;;  %v1110_v1 = vrot.slane %v1108_v55, 4  ;;  %v1509_v48 = vlaneseq }
 0x1a1   : > { %v1086_v46 = vor.u32 %v1085_v37, %v1082_v36  ;;  %v1100_v52 = vor.u32 %v1099_v41, %v1096_v39  ;;  %v5122_v58 = vld [vmem:[#allocation3 + $0x864] ss:$8 sps:$4 sm:$0xff]   ;;  %1179 = vst [vmem:[#allocation2 + $0x44] sm:$0xf] %v1162_v53  ;;  %1180 = vst [vmem:[#allocation2 + $0x8c] sm:$0xf] %v1166_v60 }
 0x1a2   : > { %3327 = vmatpush1.bf16.msra.mxu1 %v5077_v57  ;;  %v4078_v57 = vld [vmem:[%s5776_s15 + $0x20] sm:$0xe]  ;;  %v4079_v63 = vld [vmem:[%s5776_s15 + $0x24] sm:$0x1]  ;;  %v5125_v23 = vld [vmem:[#allocation3 + $0x874] ss:$8 sps:$4 sm:$0xff]  }
 0x1a3   : > { %3539 = vmatpush1.bf16.msra.mxu0 %v5081_v61  ;;  %3328 = vmatprep.subr.bf16.mxu1 %v5086_v62  ;;  %v1087_v59 = vrot.slane %v1086_v46, 4  ;;  %v1117_v61 = vshll.u32 %v4071_v49, 16  ;;  %v1122_v62 = vshrl.u32 %v4072_v50, 16  ;;  %v5123_v28 = vld [vmem:[#allocation3 + $0x870] ss:$8 sps:$4 sm:$0xff]   ;;  %v1510_v49 = vshrl.u32 %v1509_v48, 7 }
 0x1a4   : > { %3540 = vmatprep.subr.bf16.mxu0 %v5089_v0  ;;  %v1101_v0 = vrot.slane %v1100_v52, 4  ;;  %v5131_v32 = vld [vmem:[#allocation3 + $0x894] ss:$8 sps:$4 sm:$0xff]   ;;  %v5129_v33 = vld [vmem:[#allocation3 + $0x890] ss:$8 sps:$4 sm:$0xff]  }
 0x1a5   : > { %v5137_v36 = vld [vmem:[#allocation3 + $0x8b4] ss:$8 sps:$4 sm:$0xff]   ;;  %v5135_v37 = vld [vmem:[#allocation3 + $0x8b0] ss:$8 sps:$4 sm:$0xff]   ;;  %v5138_v39 = vld [vmem:[#allocation3 + $0x8c0] ss:$8 sps:$4 sm:$0xff]  }
 0x1a6   : > { %3329 = vmatpush1.bf16.msra.mxu1 %v5084_v2  ;;  %v1113_v2 = vrot.slane %v1111_v56, 5  ;;  %v5143_v40 = vld [vmem:[#allocation3 + $0x8d4] ss:$8 sps:$4 sm:$0xff]   ;;  %v5141_v41 = vld [vmem:[#allocation3 + $0x8d0] ss:$8 sps:$4 sm:$0xff]   ;;  %v1511_v53 = vsub.s32 0, %v1510_v49 }
 0x1a7   : > { %3541 = vmatpush1.bf16.msra.mxu0 %v5087_v3  ;;  %4450 = vmatprep.subr.bf16.mxu1 %v5098_v4  ;;  %v1125_v3 = vshll.u32 %v4072_v50, 16  ;;  %v5144_v43 = vld [vmem:[#allocation3 + $0x8e0] ss:$8 sps:$4 sm:$0xff]   ;;  %v5149_v44 = vld [vmem:[#allocation3 + $0x8f4] ss:$8 sps:$4 sm:$0xff]   ;;  %v1515_v56 = vsub.s32 1, %v1510_v49 }
 0x1a8   : > { %3563 = vmatprep.subr.bf16.mxu0 %v5098_v4  ;;  %v4080_v4 = vld [vmem:[%s5776_s15 + $0x28] sm:$0xe]  ;;  %v5152_v31 = vld [vmem:[#allocation2 + $0x44] ss:$72 sps:$4 sm:$0xff]   ;;  %v5147_v45 = vld [vmem:[#allocation3 + $0x8f0] ss:$8 sps:$4 sm:$0xff]  }
 0x1a9   : > { %3331 = vmatmul.mubr.bf16.vlgmr.msra.gmra.mrb[0].mxu1 %v5090_v5  ;;  %v1092_v5 = vsel %vm5790_vm5, %v1087_v59, %v1091_v38  ;;  %v5140_v38 = vld [vmem:[#allocation3 + $0x8c4] ss:$8 sps:$4 sm:$0xff]   ;;  %v1507_v55 = vld [vmem:[#allocation6] sm:$0x3] }
 0x1aa   : > { %3543 = vmatmul.mubr.bf16.vlgmr.msra.gmra.mrb[0].mxu0 %v5093_v6  ;;  %4466 = vmatpush1.bf16.msra.mxu1 %v5096_v7  ;;  %v1119_v6 = vrot.slane %v1117_v61, 5  ;;  %1139 = vst [vmem:[#allocation2 + $0x40] sm:$0xf] %v1092_v5 }
 0x1ab   : > { %3564 = vmatpush1.bf16.msra.mxu0 %v5096_v7  ;;  %4451 = vmatprep.subr.bf16.mxu1 %v5101_v9  ;;  %v1124_v7 = vrot.slane %v1122_v62, 4 }
 0x1ac   : > { %3565 = vmatprep.subr.bf16.mxu0 %v5101_v9  ;;  %3340 = vmatprep.mubr.bf16.mxu1 %v5102_v11  ;;  %v1131_v9 = vshll.u32 %v4073_v54, 16  ;;  %v1106_v11 = vsel %vm5790_vm5, %v1101_v0, %v1105_v42  ;;  %v5146_v42 = vld [vmem:[#allocation3 + $0x8e4] ss:$8 sps:$4 sm:$0xff]  }
 0x1ad   : > { %3552 = vmatprep.mubr.bf16.mxu0 %v5104_v10  ;;  %v4081_v10 = vld [vmem:[%s5776_s15 + $0x2c] sm:$0x1]  ;;  %1140 = vst [vmem:[#allocation2 + $0x88] sm:$0xf] %v1106_v11 }
 0x1ae   : > { %4467 = vmatpush1.bf16.msra.mxu1 %v5099_v12  ;;  %v1133_v22 = vrot.slane %v1131_v9, 5 }
 0x1af   : > { %3566 = vmatpush1.bf16.msra.mxu0 %v5099_v12  ;;  %4452 = vmatprep.subr.bf16.mxu1 %v5110_v13  ;;  %v1114_v12 = vor.u32 %v1113_v2, %v1110_v1 }
 0x1b0   : > { %3567 = vmatprep.subr.bf16.mxu0 %v5110_v13  ;;  %v1127_v13 = vrot.slane %v1125_v3, 5 }
 0x1b1   : > { %3341 = vmatmul.mubr.bf16.gmra.mrb[4].mxu1 %v5106_v15  ;;  %v4084_v15 = vrot.slane %v4078_v57, 9  ;;  %v1512_v57 = vrot.slane %v1507_v55, %v1511_v53 }
 0x1b2   : > { %3553 = vmatmul.mubr.bf16.gmra.mrb[4].mxu0 %v5107_v16  ;;  %4468 = vmatpush1.bf16.msra.mxu1 %v5108_v17  ;;  %v1169_v16 = vrot.slane %v4079_v63, 5  ;;  %v1128_v21 = vor.u32 %v1127_v13, %v1124_v7 }
 0x1b3   : > { %3568 = vmatpush1.bf16.msra.mxu0 %v5108_v17  ;;  %4453 = vmatprep.subr.bf16.mxu1 %v5113_v18  ;;  %v4085_v17 = vrot.slane %v4080_v4, 9 }
 0x1b4   : > { %3569 = vmatprep.subr.bf16.mxu0 %v5113_v18  ;;  %v1173_v18 = vrot.slane %v4081_v10, 5  ;;  %v1170_v24 = vsel %vm5780_vm4, %v4084_v15, %v1169_v16  ;;  %v1129_v27 = vrot.slane %v1128_v21, 4  ;;  %3595 = vmatprep.mubr.bf16.mxu0 %v5152_v31  ;;  %v5150_v46 = vld [vmem:[#allocation2 + $0x40] ss:$72 sps:$4 sm:$0xff]  }
 0x1b5   : > { %1181 = vst [vmem:[#allocation2 + $0xd4] sm:$0xf] %v1170_v24  ;;  %v3616_v16 = vld [vmem:[%s5742_s21] sm:$0xff] }
 0x1b6   : > { %4469 = vmatpush1.bf16.msra.mxu1 %v5111_v19  ;;  %v1174_v25 = vsel %vm5780_vm4, %v4085_v17, %v1173_v18  ;;  %v1134_v29 = vsel %vm5790_vm5, %v1129_v27, %v1133_v22  ;;  %v3620_v18 = vld [vmem:[%s5742_s21 + $0x20] sm:$0xff] }
 0x1b7   : > { %3570 = vmatpush1.bf16.msra.mxu0 %v5111_v19  ;;  %4454 = vmatprep.subr.bf16.mxu1 %v5116_v20  ;;  %v5120_v19 = vld [vmem:[#allocation3 + $0x860] ss:$8 sps:$4 sm:$0xff]   ;;  %1182 = vst [vmem:[#allocation2 + $0x11c] sm:$0xf] %v1174_v25  ;;  %1142 = vst [vmem:[#allocation2 + $0x118] sm:$0xf] %v1134_v29 }
 0x1b8   : > { %3571 = vmatprep.subr.bf16.mxu0 %v5116_v20  ;;  %v1115_v20 = vrot.slane %v1114_v12, 4  ;;  %v3621_v25 = vld [vmem:[%s5742_s21 + $0x28] sm:$0xff] }
 0x1ba   : > { %4470 = vmatpush1.bf16.msra.mxu1 %v5114_v30  ;;  %v1120_v26 = vsel %vm5790_vm5, %v1115_v20, %v1119_v6 }
 0x1bb   : > { %3572 = vmatpush1.bf16.msra.mxu0 %v5114_v30  ;;  %4455 = vmatprep.subr.bf16.mxu1 %v5119_v35  ;;  %1141 = vst [vmem:[#allocation2 + $0xd0] sm:$0xf] %v1120_v26  ;;  %v5128_v30 = vld [vmem:[#allocation3 + $0x884] ss:$8 sps:$4 sm:$0xff]  }
 0x1bc   : > { %3573 = vmatprep.subr.bf16.mxu0 %v5119_v35  ;;  %v5132_v35 = vld [vmem:[#allocation3 + $0x8a0] ss:$8 sps:$4 sm:$0xff]  }
 0x1be   : > { %4471 = vmatpush1.bf16.msra.mxu1 %v5117_v51  ;;  %v5155_v34 = vld [vmem:[#allocation2 + $0xd4] ss:$72 sps:$4 sm:$0xff]  }
 0x1bf   : > { %3574 = vmatpush1.bf16.msra.mxu0 %v5117_v51  ;;  %4456 = vmatprep.subr.bf16.mxu1 %v5122_v58 }
 0x1c0   : > { %3575 = vmatprep.subr.bf16.mxu0 %v5122_v58  ;;  %3605 = vmatprep.mubr.bf16.mxu1 %v5155_v34  ;;  %v1516_v58 = vrot.slane %v1507_v55, %v1515_v56 }
 0x1c2   : > { %4472 = vmatpush1.bf16.msra.mxu1 %v5120_v19  ;;  %v5153_v47 = vld [vmem:[#allocation2 + $0xd0] ss:$72 sps:$4 sm:$0xff]  }
 0x1c3   : > { %3576 = vmatpush1.bf16.msra.mxu0 %v5120_v19  ;;  %4457 = vmatprep.subr.bf16.mxu1 %v5125_v23 }
 0x1c4   : > { %3577 = vmatprep.subr.bf16.mxu0 %v5125_v23  ;;  %v3617_v23 = vld [vmem:[%s5742_s21 + $0x8] sm:$0xff] }
 0x1c6   : > { %4473 = vmatpush1.bf16.msra.mxu1 %v5123_v28 }
 0x1c7   : > { %3578 = vmatpush1.bf16.msra.mxu0 %v5123_v28  ;;  %4458 = vmatprep.subr.bf16.mxu1 %v5128_v30 }
 0x1c8   : > { %3579 = vmatprep.subr.bf16.mxu0 %v5128_v30  ;;  %v3618_v30 = vld [vmem:[%s5742_s21 + $0x10] sm:$0xff] }
 0x1ca   : > { %4474 = vmatpush1.bf16.msra.mxu1 %v5126_v8 }
 0x1cb   : > { %3580 = vmatpush1.bf16.msra.mxu0 %v5126_v8  ;;  %4459 = vmatprep.subr.bf16.mxu1 %v5131_v32  ;;  %v3622_v8 = vld [vmem:[%s5742_s21 + $0x30] sm:$0xff] }
 0x1cc   : > { %3581 = vmatprep.subr.bf16.mxu0 %v5131_v32 }
 0x1ce   : > { %4475 = vmatpush1.bf16.msra.mxu1 %v5129_v33 }
 0x1cf   : > { %3582 = vmatpush1.bf16.msra.mxu0 %v5129_v33  ;;  %4460 = vmatprep.subr.bf16.mxu1 %v5134_v14 }
 0x1d0   : > { %3583 = vmatprep.subr.bf16.mxu0 %v5134_v14 }
 0x1d2   : > { %4476 = vmatpush1.bf16.msra.mxu1 %v5132_v35 }
 0x1d3   : > { %3584 = vmatpush1.bf16.msra.mxu0 %v5132_v35  ;;  %4461 = vmatprep.subr.bf16.mxu1 %v5137_v36 }
 0x1d4   : > { %3585 = vmatprep.subr.bf16.mxu0 %v5137_v36  ;;  %v3619_v36 = vld [vmem:[%s5742_s21 + $0x18] sm:$0xff] }
 0x1d6   : > { %4477 = vmatpush1.bf16.msra.mxu1 %v5135_v37 }
 0x1d7   : > { %3586 = vmatpush1.bf16.msra.mxu0 %v5135_v37  ;;  %4462 = vmatprep.subr.bf16.mxu1 %v5140_v38 }
 0x1d8   : > { %3587 = vmatprep.subr.bf16.mxu0 %v5140_v38  ;;  %v3623_v38 = vld [vmem:[%s5742_s21 + $0x38] sm:$0xff]  ;;  %s417_s21 = scalar_lea.vmem [#allocation10], %s3966_s20 }
 0x1d9   : > { %s3717_s9 = sshll.u32 %s417_s21, 4  ;;  %s6022_s9 = int_to_ptr.vmem [resolvable:$true] %s3717_s9 }
 0x1da   : > { %4478 = vmatpush1.bf16.msra.mxu1 %v5138_v39  ;;  %s5304_s23 = scalar_lea.vmem %s6022_s9, 256  ;;  %p5311_p10 = scmp.lt.s32.totalorder %s6022_s9, %s5309_s18 }
 0x1db   : > { %3588 = vmatpush1.bf16.msra.mxu0 %v5138_v39  ;;  %4463 = vmatprep.subr.bf16.mxu1 %v5143_v40  ;;  %p5305_p13 = scmp.ne.s32.totalorder %s6022_s9, %s5304_s23  ;;  %p5312_p3 = scmp.lt.s32.totalorder %s5310_s4, %s5304_s23 }
 0x1dc   : > { %3589 = vmatprep.subr.bf16.mxu0 %v5143_v40 }
 0x1dd   : > { %p5306_p12 = pnand %p5305_p13, %p6194_p6  ;;  %p5313_p7 = por %p5312_p3, %p5311_p10 }
 0x1de   : > { %4479 = vmatpush1.bf16.msra.mxu1 %v5141_v41 }
 0x1df   : > { %3590 = vmatpush1.bf16.msra.mxu0 %v5141_v41  ;;  %4464 = vmatprep.subr.bf16.mxu1 %v5146_v42  ;;  %p5307_p2 = pneg %p5306_p12 }
 0x1e0   : > { %3591 = vmatprep.subr.bf16.mxu0 %v5146_v42 }
 0x1e1   : > { %p5314_p0 = pnand %p5313_p7, %p5307_p2 }
 0x1e2   : > { %4480 = vmatpush1.bf16.msra.mxu1 %v5144_v43 }
 0x1e3   : > { %3592 = vmatpush1.bf16.msra.mxu0 %v5144_v43  ;;  %4465 = vmatprep.subr.bf16.mxu1 %v5149_v44 }
 0x1e4   : > { %3593 = vmatprep.subr.bf16.mxu0 %v5149_v44 }
 0x1e6   : > { %4481 = vmatpush1.bf16.msra.mxu1 %v5147_v45 }
 0x1e7   : > { %3594 = vmatpush1.bf16.msra.mxu0 %v5147_v45 }
 0x1e9   : > { %3606 = vmatmul.mubr.bf16.vlgmr.msra.gmra.mrb[8].mxu1 %v5153_v47 }
 0x1ea   : > { %3596 = vmatmul.mubr.bf16.vlgmr.msra.gmra.mrb[0].mxu0 %v5150_v46 }
 0x27c   : > { %v3332_v50 = vpop.f32.mrb[0].mxu1 }
 0x27d   : > { %v3334_v51 = vpop.f32.mrb[1].mxu1  ;;  %v4482_v12 = vadd.f32 %v3332_v50, %v1512_v57 }
 0x27e   : > { %v3336_v52 = vpop.f32.mrb[2].mxu1  ;;  %v4484_v13 = vadd.f32 %v3334_v51, %v1516_v58 }
 0x27f   : > { %v3338_v54 = vpop.f32.mrb[3].mxu1  ;;  %v4486_v19 = vadd.f32 %v3336_v52, %v1512_v57 }
 0x280   : > { %v4488_v26 = vadd.f32 %v3338_v54, %v1516_v58 }
 0x284   : > { %v3342_v59 = vpop.f32.mrb[4].mxu1 }
 0x285   : > { %v3554_v60 = vpop.f32.mrb[4].mxu0  ;;  %v4490_v61 = vadd.f32 %v3342_v59, %v1512_v57  ;;  %v3344_v62 = vpop.f32.mrb[5].mxu1 }
 0x286   : > { %v3556_v63 = vpop.f32.mrb[5].mxu0  ;;  %v4493_v0 = vadd.f32 %v3344_v62, %v1516_v58  ;;  %v3346_v1 = vpop.f32.mrb[6].mxu1 }
 0x287   : > { %v3558_v2 = vpop.f32.mrb[6].mxu0  ;;  %v4491_v3 = vadd.f32 %v4490_v61, %v3554_v60  ;;  %v4496_v4 = vadd.f32 %v3346_v1, %v1512_v57  ;;  %v3348_v5 = vpop.f32.mrb[7].mxu1 }
 0x288   : > { %v3560_v6 = vpop.f32.mrb[7].mxu0  ;;  %v4494_v7 = vadd.f32 %v4493_v0, %v3556_v63  ;;  %v4499_v9 = vadd.f32 %v3348_v5, %v1516_v58 }
 0x289   : > { %v4497_v10 = vadd.f32 %v4496_v4, %v3558_v2 }
 0x28a   : > { %v4500_v11 = vadd.f32 %v4499_v9, %v3560_v6 }
 0x2bc   : > { %v3607_v17 = vpop.f32.mrb[8].mxu1 }
 0x2bd   : > { %v3597_v15 = vpop.f32.mrb[0].mxu0  ;;  %v4492_v21 = vadd.f32 %v4491_v3, %v3607_v17  ;;  %v3609_v24 = vpop.f32.mrb[9].mxu1 }
 0x2be   : > { %v4483_v20 = vadd.f32 %v4482_v12, %v3597_v15  ;;  %v3599_v22 = vpop.f32.mrb[1].mxu0  ;;  %v4495_v28 = vadd.f32 %v4494_v7, %v3609_v24  ;;  %v3611_v31 = vpop.f32.mrb[10].mxu1 }
 0x2bf   : > { %v4485_v27 = vadd.f32 %v4484_v13, %v3599_v22  ;;  %v3601_v29 = vpop.f32.mrb[2].mxu0  ;;  %v3632_v33 = vadd.f32 %v4492_v21, %v3620_v18  ;;  %v4498_v14 = vadd.f32 %v4497_v10, %v3611_v31  ;;  %v3613_v37 = vpop.f32.mrb[11].mxu1  ;;  %v3624_v22 = vld [vmem:[%s374_s13] sm:$0xff] }
 0x2c0   : > { %v3628_v32 = vadd.f32 %v4483_v20, %v3616_v16  ;;  %v4487_v34 = vadd.f32 %v4486_v19, %v3601_v29  ;;  %v3603_v35 = vpop.f32.mrb[3].mxu0  ;;  %v3633_v40 = vadd.f32 %v4495_v28, %v3621_v25  ;;  %v4501_v42 = vadd.f32 %v4500_v11, %v3613_v37  ;;  %v3626_v25 = vld [vmem:[%s374_s13 + $0x10] sm:$0xff] }
 0x2c1   : > { %v3629_v39 = vadd.f32 %v4485_v27, %v3617_v23  ;;  %v4489_v41 = vadd.f32 %v4488_v26, %v3603_v35  ;;  %v3640_v44 = vsub.f32 0.0, %v3632_v33  ;;  %v3634_v46 = vadd.f32 %v4498_v14, %v3622_v8  ;;  %v3625_v23 = vld [vmem:[%s374_s13 + $0x8] sm:$0xff]  ;;  %v3627_v27 = vld [vmem:[%s374_s13 + $0x18] sm:$0xff] }
 0x2c2   : > { %v3636_v43 = vsub.f32 0.0, %v3628_v32  ;;  %v3630_v45 = vadd.f32 %v4487_v34, %v3618_v30  ;;  %v3641_v48 = vsub.f32 0.0, %v3633_v40  ;;  %v3635_v50 = vadd.f32 %v4501_v42, %v3623_v38 }
 0x2c3   : > { %v3637_v47 = vsub.f32 0.0, %v3629_v39  ;;  %v3631_v49 = vadd.f32 %v4489_v41, %v3619_v36  ;;  %v3652_v52 = vmul.f32 1.442695, %v3640_v44  ;;  %v3642_v54 = vsub.f32 0.0, %v3634_v46 }
 0x2c4   : > { %v3644_v51 = vmul.f32 1.442695, %v3636_v43  ;;  %v3638_v53 = vsub.f32 0.0, %v3630_v45  ;;  %v3654_v56 = vmul.f32 1.442695, %v3641_v48  ;;  %v3643_v58 = vsub.f32 0.0, %v3635_v50 }
 0x2c5   : > { %v3646_v55 = vmul.f32 1.442695, %v3637_v47  ;;  %v3639_v57 = vsub.f32 0.0, %v3631_v49  ;;  %v3656_v60 = vmul.f32 1.442695, %v3642_v54 }
 0x2c6   : > { %5156 = vpow2.f32 %v3644_v51  ;;  %v3648_v59 = vmul.f32 1.442695, %v3638_v53  ;;  %v3658_v62 = vmul.f32 1.442695, %v3643_v58 }
 0x2c7   : > { %5158 = vpow2.f32 %v3652_v52  ;;  %v3650_v61 = vmul.f32 1.442695, %v3639_v57 }
 0x2c8   : > { %5160 = vpow2.f32 %v3646_v55 }
 0x2c9   : > { %5162 = vpow2.f32 %v3654_v56 }
 0x2ca   : > { %5164 = vpow2.f32 %v3648_v59 }
 0x2cb   : > { %5166 = vpow2.f32 %v3656_v60 }
 0x2cc   : > { %5168 = vpow2.f32 %v3650_v61 }
 0x2cd   : > { %5170 = vpow2.f32 %v3658_v62 }
 0x2d0   : > { %v5157_v63 = vpop.eup %5156 }
 0x2d1   : > { %v5159_v0 = vpop.eup %5158  ;;  %v3660_v1 = vadd.f32 1.0, %v5157_v63 }
 0x2d2   : > { %v5161_v2 = vpop.eup %5160  ;;  %v3664_v3 = vadd.f32 1.0, %v5159_v0 }
 0x2d3   : > { %v5163_v4 = vpop.eup %5162  ;;  %5172 = vrcp.f32 %v3660_v1  ;;  %v3661_v5 = vadd.f32 1.0, %v5161_v2 }
 0x2d4   : > { %v5165_v6 = vpop.eup %5164  ;;  %5174 = vrcp.f32 %v3664_v3  ;;  %v3665_v7 = vadd.f32 1.0, %v5163_v4 }
 0x2d5   : > { %v5167_v9 = vpop.eup %5166  ;;  %5176 = vrcp.f32 %v3661_v5  ;;  %v3662_v10 = vadd.f32 1.0, %v5165_v6 }
 0x2d6   : > { %v5169_v11 = vpop.eup %5168  ;;  %5178 = vrcp.f32 %v3665_v7  ;;  %v3666_v12 = vadd.f32 1.0, %v5167_v9 }
 0x2d7   : > { %v5171_v13 = vpop.eup %5170  ;;  %5180 = vrcp.f32 %v3662_v10  ;;  %v3663_v15 = vadd.f32 1.0, %v5169_v11 }
 0x2d8   : > { %5182 = vrcp.f32 %v3666_v12  ;;  %v3667_v16 = vadd.f32 1.0, %v5171_v13 }
 0x2d9   : > { %5184 = vrcp.f32 %v3663_v15 }
 0x2da   : > { %5186 = vrcp.f32 %v3667_v16 }
 0x2dd   : > { %v5173_v17 = vpop.eup %5172 }
 0x2de   : > { %v5175_v18 = vpop.eup %5174 }
 0x2df   : > { %v5177_v19 = vpop.eup %5176 }
 0x2e0   : > { %v5179_v20 = vpop.eup %5178  ;;  %v3676_v31 = vmul.f32 %v5177_v19, %v3624_v22 }
 0x2e1   : > { %v5181_v21 = vpop.eup %5180  ;;  %v3678_v32 = vmul.f32 %v5179_v20, %v3626_v25 }
 0x2e2   : > { %v5183_v24 = vpop.eup %5182  ;;  %v4431_v26 = vpack.c.bf16 %v5181_v21, %v5173_v17 }
 0x2e3   : > { %v5185_v28 = vpop.eup %5184  ;;  %v4436_v29 = vpack.c.bf16 %v5183_v24, %v5175_v18 }
 0x2e4   : > { %v5187_v30 = vpop.eup %5186  ;;  %v3677_v8 = vmul.f32 %v5185_v28, %v3625_v23  ;;  %4432 = vst [vmem:[%s417_s21] sm:$0xff] %v4431_v26  }
 0x2e5   : > { %v3679_v33 = vmul.f32 %v5187_v30, %v3627_v27  ;;  %4448 = vst [vmem:[%s417_s21 + $0x8] sm:$0xff] %v4436_v29  }
 0x2e6   : > { %5317 = shalt.err (!%p5314_p0)
}
 0x2e7   : > { %s5318_s15 = scalar_lea.hbm %s6020_s17, 256  ;;  %s5322_s8 = scalar_lea.hbm %s6192_s11, 1024 }
 0x2e8   : > { %p5319_p8 = scmp.ne.s32.totalorder %s6020_s17, %s5318_s15  ;;  %p5323_p11 = scmp.lt.u32.totalorder %s6020_s17, %s6192_s11 }
 0x2e9   : > { %p5324_p1 = scmp.lt.u32.totalorder %s5322_s8, %s5318_s15  ;;  %p5326_p13 = scmp.lt.u32.totalorder %s5318_s15, %s6020_s17 }
 0x2ea   : > { %p5320_p9 = pnand %p5319_p8, %p6194_p6 }
 0x2eb   : > { %p5325_p5 = por %p5324_p1, %p5323_p11 }
 0x2ec   : > { %p5321_p4 = pneg %p5320_p9 }
 0x2ed   : > { %p5327_p12 = por %p5326_p13, %p5325_p5 }
 0x2ef   : > { %p5328_p2 = pnand %p5327_p12, %p5321_p4 }
 0x2f1   : > { %5331 = shalt.err (!%p5328_p2)
}
 0x2f2   : > { %s5453_s13 = smov 64   ;;  %s5454_s27 = smov 4   ;;  %v4441_v34 = vpack.c.bf16 %v3677_v8, %v3676_v31  ;;  %v4446_v14 = vpack.c.bf16 %v3679_v33, %v3678_v32 }
 0x2f3   : > { %4567 = dma.vmem_to_hbm [thread:$0]  (%p6194_p6), %s6022_s9, 256, %s6020_s17, %s3697_s12, %s5453_s13, %s5453_s13, %s5454_s27  }
 0x2f4   : > { %s6195_s22 = sld [smem:[#allocation28_spill]]  ;;  %4442 = vst [vmem:[%s6024_s1] sm:$0xff] %v4441_v34   ;;  %4449 = vst [vmem:[%s6024_s1 + $0x8] sm:$0xff] %v4446_v14   ;;  %s3702_s4 = scalar_lea.sflag [#allocation12], %s5739_s7 }
 0x2f5   : > { %s5332_s15 = scalar_lea.vmem %s6063_s6, 256  ;;  %s5455_s16 = smov [#allocation11]  }
 0x2f6   : > { %p5333_p10 = scmp.ne.s32.totalorder %s6063_s6, %s5332_s15  ;;  %s5336_s9 = sshll.u32 %s5455_s16, 4  ;;  %s5337_s9 = int_to_ptr.vmem [resolvable:$false] %s5336_s9 }
 0x2f7   : > { %s5338_s17 = scalar_lea.vmem %s5337_s9, 512  ;;  %p5339_p0 = scmp.lt.s32.totalorder %s6063_s6, %s5337_s9 }
 0x2f8   : > { %p5334_p3 = pnand %p5333_p10, %p6194_p6  ;;  %p5340_p8 = scmp.lt.s32.totalorder %s5338_s17, %s5332_s15 }
 0x2fa   : > { %s6059_s18 = scalar_lea.hbm %s6195_s22, %s4414_s24  ;;  %p5335_p7 = pneg %p5334_p3 }
 0x2fb   : > { %p5341_p9 = por %p5340_p8, %p5339_p0 }
 0x2fd   : > { %p5342_p4 = pnand %p5341_p9, %p5335_p7 }
 0x2ff   : > { %5345 = shalt.err (!%p5342_p4)
}
 0x300   : > { %s5346_s24 = scalar_lea.hbm %s6059_s18, 256  ;;  %s5350_s14 = scalar_lea.hbm %s6195_s22, 1024 }
 0x301   : > { %p5347_p11 = scmp.ne.s32.totalorder %s6059_s18, %s5346_s24  ;;  %p5351_p13 = scmp.lt.u32.totalorder %s6059_s18, %s6195_s22 }
 0x302   : > { %p5352_p12 = scmp.lt.u32.totalorder %s5350_s14, %s5346_s24  ;;  %p5354_p10 = scmp.lt.u32.totalorder %s5346_s24, %s6059_s18 }
 0x303   : > { %p5348_p1 = pnand %p5347_p11, %p6194_p6 }
 0x304   : > { %p5353_p2 = por %p5352_p12, %p5351_p13 }
 0x305   : > { %p5349_p5 = pneg %p5348_p1 }
 0x306   : > { %p5355_p3 = por %p5354_p10, %p5353_p2 }
 0x308   : > { %p5356_p7 = pnand %p5355_p3, %p5349_p5 }
 0x30a   : > { %5359 = shalt.err (!%p5356_p7)
}
 0x30b   : > { %4568 = dma.vmem_to_hbm [thread:$0]  (%p6194_p6), %s6063_s6, 256, %s6059_s18, %s3702_s4, %s5453_s13, %s5453_s13, %s5454_s27  }
 0x30c PF: > { %s6196_s20 = sld [smem:[#allocation19_spill]]  ;;  %s6197_s21 = sld [smem:[#allocation18_spill]] }
 0x30d   : > { %s6198_s28 = sld [smem:[#allocation21_spill]] }
 0x312   : > { %p4597_p0 = scmp.ge.s32.totalorder %s6196_s20, 2  ;;  %s3750_s23 = sand.u32 1, %s6197_s21  }
 0x313   : > { %p6199_p8 = scmp.ne.s32.totalorder %s6198_s28, 0  ;;  %s3751_s15 = scalar_lea.sflag [#allocation5], %s3750_s23 }
 0x315   : > { %p4586_p9 = pnand %p4597_p0, %p6199_p8 }
 0x317   : > { %5405 = dma.done.wait (!%p4586_p9), %s3751_s15, 256  }
 0x318   : > { %5407 = vsyncadd (!%p4586_p9), %s3751_s15, 4294967040  ;;  %s3760_s19 = scalar_lea.sflag [#allocation12], %s3750_s23 }
 0x319   : > { %5409 = dma.done.wait (!%p4586_p9), %s3760_s19, 256  }
 0x31a   : > { %5411 = vsyncadd (!%p4586_p9), %s3760_s19, 4294967040  ;;  %s26_s8 = sadd.s32 1, %s6196_s20   ;;  %s6200_s7 = sld [smem:[#allocation22_spill]] }
 0x31b   : > { %p23_p4 = scmp.ge.s32.totalorder %s26_s8, 6   ;;  %s6201_s24 = smov %s5418_s25 }
 0x31c   : > { %s6202_s25 = smov %s5422_s26  ;;  %s6203_s26 = smov %s5639_s0 }
 0x31d   : > { %s6204_s27 = smov %s5434_s29  ;;  %s6205_s28 = smov %s5438_s30 }
 0x31e   : > { %s6207_s30 = smov %s6213_s10  ;;  %25 = sbr.rel (!%p23_p4) target bundleno = 16 (0x10), region = 136 }
 0x320   : > { %s6206_s29 = smov %s6200_s7 }
 0x325   :  { %3765 = vsyncpa [#allocation4], 1 }
 0x326   :  { %3767 = vsyncpa [#allocation4 + $0x1], 1 }
 0x327   :  { %3768 = vsyncpa [#allocation7], 1 }
 0x328   :  { %3769 = vsyncpa [#allocation5], 1 }
 0x329   :  { %3771 = vsyncpa [#allocation5 + $0x1], 1 }
 0x32a   :  { %3772 = vsyncpa [#allocation12], 1 }
 0x32b   :  { %3774 = vsyncpa [#allocation12 + $0x1], 1 }

</bundles_post_ra>
